<compile_context>
chip_gen: v6e
topology: v6e:2x2x1
jax: 0.10.0
libtpu: 0.0.40
codegen_flags: <defaults>
</compile_context>

<pallas_src>
import jax
import jax.numpy as jnp
from jax.experimental import pallas as pl
from jax.experimental.pallas import tpu as pltpu

NEG_SLOPE_GAT = 0.2    # GATv2Conv internal leaky_relu slope
NEG_SLOPE_OUT = 0.01   # torch.nn.functional.leaky_relu default slope
LANES = 128

# TODO(synk): on v6e/v7x the (N,N,HC) message slab could be built in bfloat16
# (bf16-native VPU/EUP) to halve vreg pressure; kept f32 here so the same code
# is optimal on v5e (no bf16 VPU) and matches the PyTorch reference tightly.
MSG_DTYPE = jnp.float32


def _leaky(x, slope):
    return jnp.where(x > 0, x, slope * x)


def _lane_pad(v):
    return jnp.pad(v, ((0, 0), (0, LANES - v.shape[1])))


# --------------------------------------------------------------------------
# Fused per-graph kernel: 2x GATv2Conv(+leaky_relu) -> jump('cat')
#                         -> global_mean_pool -> cat(problemType)
#                         -> fc1 -> fc2 -> fcLast
# Grid axis 0 = graphs (parallel).
# --------------------------------------------------------------------------
def gat_save_kernel(pt_ref, x_ref, adj_ref, ea_ref, wproj_ref, small_ref,
                    w1_ref, w2_ref, w3_ref, bmlp_ref, out_ref):
    g_idx = pl.program_id(0)
    _, N, D = x_ref.shape
    passes = wproj_ref.shape[0]
    P = wproj_ref.shape[2]                 # 2 * heads * C (lane-dense, = 128 here)
    C = D                                  # out_channels == inputLayerSize
    heads = P // (2 * C)
    HC = heads * C

    x = x_ref[0]                           # (N, D)   this graph's node features
    adj = adj_ref[0]                       # (N, N)   adj[i, j]=1 iff edge j->i (+self loop)
    ea = ea_ref[0]                         # (N, N)   scalar edge attribute
    mask = adj > 0.0

    wproj = wproj_ref[...]                 # (passes, D, P)  [wl_0..wl_H-1 | wr_0..wr_H-1]
    smalls = small_ref[...]                # (passes, 8, 128)

    xs = [x]
    cur = x
    for layer in range(passes):            # static layer loop
        W = wproj[layer]                   # (D, P)
        s = smalls[layer]                  # (8, 128)
        bproj = s[0:1, 0:P]                # packed [bl_0..|br_0..]
        we_pk = s[1:2, 0:HC]               # packed lin_edge weights
        att_pk = s[1:2, HC:2 * HC]         # packed attention vectors
        bias_out = s[2:3, 0:C]             # conv output bias (concat=False)

        # one lane-dense (N,D)@(D,128) matmul for both heads' lin_l and lin_r
        g = jnp.dot(cur, W, preferred_element_type=jnp.float32) + bproj   # (N, P)
        gl = g[:, 0:HC]                    # [gl_0 | gl_1]  (source / lin_l)
        gr = g[:, HC:2 * HC]               # [gr_0 | gr_1]  (target / lin_r)

        # head-packed GATv2 messages: m[i, j] = gr_i + gl_j + e_ij * W_e
        m = (gr[:, None, :] + gl[None, :, :]
             + ea[:, :, None] * we_pk[None, :, :]).astype(MSG_DTYPE)
        m = _leaky(m, NEG_SLOPE_GAT)

        # per-head masked softmax; att multiply fused into the reduction so the
        # full sc slab never exists; masked entries underflow to exactly 0.
        ps = []
        for h in range(heads):             # static head loop
            att_h = att_pk[:, h * C:(h + 1) * C]                       # (1, C)
            scores = jnp.sum(m[:, :, h * C:(h + 1) * C]
                             * att_h[None, :, :], axis=-1).astype(jnp.float32)
            scores = jnp.where(mask, scores, -1e30)
            scores = scores - jnp.max(scores, axis=1, keepdims=True)
            p = jnp.exp(scores)                                        # 0 where masked
            p = p / jnp.sum(p, axis=1, keepdims=True)                  # exact recip
            ps.append(p)

        # fused aggregation: [p0 | p1] (N,2N) @ [gl0; gl1] (2N,C) on the MXU
        p_pack = jnp.concatenate(ps, axis=1)                           # (N, heads*N)
        gl_stack = jnp.concatenate(
            [gl[:, h * C:(h + 1) * C] for h in range(heads)], axis=0)  # (heads*N, C)
        acc = jnp.dot(p_pack, gl_stack, preferred_element_type=jnp.float32)
        acc = acc * (1.0 / heads) + bias_out       # mean over heads + bias
        cur = _leaky(acc, NEG_SLOPE_OUT)           # f.leaky_relu in GAT_SAVE.forward
        xs.append(cur)

    # JumpingKnowledge('cat') + global_mean_pool + cat problemType + MLP.
    # Pooling commutes with fc1, so: X_cat @ W1 (M=N matmul) then one row-mean.
    bm = bmlp_ref[...]                     # (8, 128)  b1 | b2 | b3 | w1_problemType
    b1 = bm[0:1, :]
    b2 = bm[1:2, :]
    b3 = bm[2:3, :]
    w1_pt = bm[3:4, :]
    pt = pt_ref[g_idx]                     # SMEM scalar (this graph's problemType)

    x_cat = jnp.concatenate(xs, axis=1)                                # (N, (passes+1)*D)
    h1 = jnp.dot(x_cat, w1_ref[...], preferred_element_type=jnp.float32)
    h1 = jnp.mean(h1, axis=0, keepdims=True) + pt * w1_pt + b1         # (1, 128)
    h1 = _leaky(h1, NEG_SLOPE_OUT)
    h2 = jnp.dot(h1, w2_ref[...], preferred_element_type=jnp.float32) + b2
    h2 = _leaky(h2, NEG_SLOPE_OUT)
    final = jnp.dot(h2, w3_ref[...], preferred_element_type=jnp.float32) + b3  # (1, 128)

    # lane- and sublane-dense (8,128) output slab -> unmasked store; row 0 holds
    # the logits (padded lanes are exactly zero), sliced off outside the kernel.
    out_ref[...] = jnp.broadcast_to(final, (8, LANES))[None, :, :]


def gat_save_forward(packed, x, adj, eattr, problem_type, out_dim):
    B, N, D = x.shape
    pt = problem_type.astype(jnp.float32).reshape(B)
    full = lambda shape: pl.BlockSpec(shape, lambda g, p, nd=len(shape): (0,) * nd)

    out_padded = pl.pallas_call(
        gat_save_kernel,
        grid_spec=pltpu.PrefetchScalarGridSpec(
            num_scalar_prefetch=1,                       # problemType -> SMEM
            grid=(B,),                                   # one graph per grid step
            in_specs=[
                pl.BlockSpec((1, N, D), lambda g, p: (g, 0, 0)),
                pl.BlockSpec((1, N, N), lambda g, p: (g, 0, 0)),
                pl.BlockSpec((1, N, N), lambda g, p: (g, 0, 0)),
                full(packed["wproj"].shape),             # weights: constant block
                full(packed["small"].shape),             # -> DMA'd once, reused
                full(packed["w1"].shape),
                full(packed["w2"].shape),
                full(packed["w3"].shape),
                full(packed["bmlp"].shape),
            ],
            out_specs=pl.BlockSpec((1, 8, LANES), lambda g, p: (g, 0, 0)),
        ),
        out_shape=jax.ShapeDtypeStruct((B, 8, LANES), jnp.float32),
        compiler_params=pltpu.CompilerParams(
            dimension_semantics=("parallel",)),          # v7x: graphs across both TCs
    )(pt, x, adj, eattr, packed["wproj"], packed["small"],
      packed["w1"], packed["w2"], packed["w3"], packed["bmlp"])
    return out_padded[:, 0, :out_dim]


# --------------------------------------------------------------------------
# Glue: dense graph construction (remove self loops, add them back with
# fill_value='mean' like PyG GATv2Conv), parameter init and packing.
# --------------------------------------------------------------------------
def build_dense_graph(src, dst, edge_attr, N):
    # NOTE: assumes no duplicate (src, dst) pairs (a set would drop multiplicity).
    adj = jnp.zeros((N, N), jnp.float32).at[dst, src].set(1.0)
    ea = jnp.zeros((N, N), jnp.float32).at[dst, src].set(edge_attr)
    diag = jnp.eye(N, dtype=jnp.float32)
    adj = adj * (1.0 - diag)                         # remove_self_loops
    ea = ea * (1.0 - diag)
    deg = adj.sum(axis=1)
    mean_attr = jnp.where(deg > 0, ea.sum(axis=1) / jnp.maximum(deg, 1.0), 0.0)
    adj = adj + diag                                 # add_self_loops
    ea = ea + diag * mean_attr[:, None]              # fill_value='mean'
    return adj, ea


def init_params(key, passes, d, heads, out_dim):
    c = d                                            # out_channels == inputLayerSize
    keys = jax.random.split(key, passes + 1)
    s = float(1.0 / (d ** 0.5))
    gats = []
    for i in range(passes):
        ks = jax.random.split(keys[i], 7)
        gats.append(dict(
            wl=jax.random.normal(ks[0], (heads, d, c), jnp.float32) * s,
            bl=jax.random.normal(ks[1], (heads, c), jnp.float32) * 0.01,
            wr=jax.random.normal(ks[2], (heads, d, c), jnp.float32) * s,
            br=jax.random.normal(ks[3], (heads, c), jnp.float32) * 0.01,
            we=jax.random.normal(ks[4], (heads, c), jnp.float32) * s,
            att=jax.random.normal(ks[5], (heads, c), jnp.float32) * s,
            bias=jax.random.normal(ks[6], (1, c), jnp.float32) * 0.01,
        ))
    fc_in = (passes + 1) * d + 1                     # mode='cat', k=1
    hdim = fc_in // 2
    km = jax.random.split(keys[-1], 3)
    mlp = dict(
        w1=jax.random.normal(km[0], (fc_in, hdim), jnp.float32) * float(fc_in ** -0.5),
        b1=jnp.zeros((1, hdim), jnp.float32),
        w2=jax.random.normal(km[1], (hdim, hdim), jnp.float32) * float(hdim ** -0.5),
        b2=jnp.zeros((1, hdim), jnp.float32),
        w3=jax.random.normal(km[2], (hdim, out_dim), jnp.float32) * float(hdim ** -0.5),
        b3=jnp.zeros((1, out_dim), jnp.float32),
    )
    return dict(gats=gats, mlp=mlp)


def pack_params(params):
    """Pack per-head weights lane-dense, collapse tiny params into (8,128) slabs,
    and lane-pad the MLP weights so every matmul / store is 128-lane dense."""
    heads, D, C = params["gats"][0]["wl"].shape
    assert 2 * heads * C <= LANES, "packed projection must fit 128 lanes"
    wproj, small = [], []
    for lp in params["gats"]:
        W = jnp.concatenate([lp["wl"][h] for h in range(heads)]
                            + [lp["wr"][h] for h in range(heads)], axis=1)       # (D, 2HC)
        bproj = jnp.concatenate([lp["bl"][h] for h in range(heads)]
                                + [lp["br"][h] for h in range(heads)])[None, :]  # (1, 2HC)
        wea = jnp.concatenate([lp["we"][h] for h in range(heads)]
                              + [lp["att"][h] for h in range(heads)])[None, :]   # (1, 2HC)
        rows = [_lane_pad(bproj), _lane_pad(wea), _lane_pad(lp["bias"])]
        small.append(jnp.concatenate(
            rows + [jnp.zeros((8 - len(rows), LANES), jnp.float32)], axis=0))    # (8,128)
        wproj.append(W)
    mlp = params["mlp"]
    F = mlp["w1"].shape[0] - 1                       # (passes+1)*D
    hdim = mlp["w1"].shape[1]
    out_dim = mlp["w3"].shape[1]
    bmlp = jnp.concatenate([
        _lane_pad(mlp["b1"]), _lane_pad(mlp["b2"]), _lane_pad(mlp["b3"]),
        _lane_pad(mlp["w1"][F][None, :]),
        jnp.zeros((4, LANES), jnp.float32)], axis=0)                             # (8,128)
    return dict(
        wproj=jnp.stack(wproj),                                                  # (passes, D, 2HC)
        small=jnp.stack(small),                                                  # (passes, 8, 128)
        w1=jnp.pad(mlp["w1"][:F, :], ((0, 0), (0, LANES - hdim))),               # (F, 128)
        w2=jnp.pad(mlp["w2"], ((0, LANES - hdim), (0, LANES - hdim))),           # (128, 128)
        w3=jnp.pad(mlp["w3"], ((0, LANES - hdim), (0, LANES - out_dim))),        # (128, 128)
        bmlp=bmlp,
    )


if __name__ == "__main__":
    passes = 2            # GAT_SAVE(passes=2, inputLayerSize=32, outputLayerSize=2,
    D = 32                #          numAttentionLayers=2, mode='cat', pool='mean',
    heads = 2             #          k=1, dropout=0, shouldJump=True)
    out_dim = 2
    N = 16                # nodes per graph
    B = 4                 # graphs per pallas_call (parallel grid axis)

    key = jax.random.PRNGKey(0)
    k_p, k_data = jax.random.split(key)
    params = init_params(k_p, passes, D, heads, out_dim)
    packed = pack_params(params)

    # deterministic batch of graphs: ring edges + skip-(2+b) edges (no dups / self loops)
    xs, adjs, eas, pts = [], [], [], []
    for b in range(B):
        kb = jax.random.fold_in(k_data, b)
        k_x, k_e = jax.random.split(kb)
        skip = 2 + b
        src = jnp.concatenate([jnp.arange(N), jnp.arange(N)])
        dst = jnp.concatenate([(jnp.arange(N) + 1) % N, (jnp.arange(N) + skip) % N])
        edge_attr = jax.random.normal(k_e, (src.shape[0],), jnp.float32)
        adj_b, ea_b = build_dense_graph(src, dst, edge_attr, N)
        xs.append(jax.random.normal(k_x, (N, D), jnp.float32))
        adjs.append(adj_b)
        eas.append(ea_b)
        pts.append(float(b % 3))
    x = jnp.stack(xs)                                # (B, N, D)
    adj = jnp.stack(adjs)                            # (B, N, N)
    eattr = jnp.stack(eas)                           # (B, N, N)
    problem_type = jnp.array(pts, jnp.float32)       # (B,)

    # TODO(synk): dropout is identity here (eval mode); other pool modes
    # ('sort', 'attention', 'multiset') are not implemented. If N grows beyond
    # toy size, the dense (N,N,H*C) message slab must be source-tiled
    # (flash-style) with the tile budget derived from v7x's 64 MiB VMEM
    # (not 128 MiB) and vmem_limit_bytes set explicitly.
    fwd = jax.jit(lambda pk, x_, a_, e_, p_: gat_save_forward(pk, x_, a_, e_, p_, out_dim))
    out = fwd(packed, x, adj, eattr, problem_type)
    out = jax.block_until_ready(out)
    assert out.shape == (B, out_dim) and out.dtype == jnp.float32
    assert bool(jnp.all(jnp.isfinite(out)))
    print("KERNEL_OK")
</pallas_src>

<mosaic_0001>
module attributes {stable_mosaic.version = 11 : i64} {
  func.func @gat_save_kernel(%arg0: i32, %arg1: memref<4xf32, #tpu.memory_space<smem>>, %arg2: memref<1x16x32xf32, #tpu.memory_space<vmem>>, %arg3: memref<1x16x16xf32, #tpu.memory_space<vmem>>, %arg4: memref<1x16x16xf32, #tpu.memory_space<vmem>>, %arg5: memref<2x32x128xf32, #tpu.memory_space<vmem>>, %arg6: memref<2x8x128xf32, #tpu.memory_space<vmem>>, %arg7: memref<96x128xf32, #tpu.memory_space<vmem>>, %arg8: memref<128x128xf32, #tpu.memory_space<vmem>>, %arg9: memref<128x128xf32, #tpu.memory_space<vmem>>, %arg10: memref<8x128xf32, #tpu.memory_space<vmem>>, %arg11: memref<1x8x128xf32, #tpu.memory_space<vmem>>) attributes {dimension_semantics = [#tpu.dimension_semantics<parallel>], iteration_bounds = array<i64: 4>, scalar_prefetch = 1 : i64, scratch_operands = 0 : i64, tpu.core_type = #tpu.core_type<tc>, window_params = [{transform_indices = @transform_0, window_bounds = array<i64: 1, 16, 32>}, {transform_indices = @transform_1, window_bounds = array<i64: 1, 16, 16>}, {transform_indices = @transform_2, window_bounds = array<i64: 1, 16, 16>}, {pipeline_mode = #tpu.pipeline_mode<synchronous>, transform_indices = @transform_3, window_bounds = array<i64: 2, 32, 128>}, {pipeline_mode = #tpu.pipeline_mode<synchronous>, transform_indices = @transform_4, window_bounds = array<i64: 2, 8, 128>}, {pipeline_mode = #tpu.pipeline_mode<synchronous>, transform_indices = @transform_5, window_bounds = array<i64: 96, 128>}, {pipeline_mode = #tpu.pipeline_mode<synchronous>, transform_indices = @transform_6, window_bounds = array<i64: 128, 128>}, {pipeline_mode = #tpu.pipeline_mode<synchronous>, transform_indices = @transform_7, window_bounds = array<i64: 128, 128>}, {pipeline_mode = #tpu.pipeline_mode<synchronous>, transform_indices = @transform_8, window_bounds = array<i64: 8, 128>}, {transform_indices = @transform_9, window_bounds = array<i64: 1, 8, 128>}]} {
    %c0 = arith.constant 0 : index
    %c0_0 = arith.constant 0 : index
    %c0_1 = arith.constant 0 : index
    %0 = vector.load %arg2[%c0, %c0_0, %c0_1] : memref<1x16x32xf32, #tpu.memory_space<vmem>>, vector<1x16x32xf32>
    %1 = vector.shape_cast %0 : vector<1x16x32xf32> to vector<16x32xf32>
    %c0_2 = arith.constant 0 : index
    %c0_3 = arith.constant 0 : index
    %c0_4 = arith.constant 0 : index
    %2 = vector.load %arg3[%c0_2, %c0_3, %c0_4] : memref<1x16x16xf32, #tpu.memory_space<vmem>>, vector<1x16x16xf32>
    %3 = vector.shape_cast %2 : vector<1x16x16xf32> to vector<16x16xf32>
    %c0_5 = arith.constant 0 : index
    %c0_6 = arith.constant 0 : index
    %c0_7 = arith.constant 0 : index
    %4 = vector.load %arg4[%c0_5, %c0_6, %c0_7] : memref<1x16x16xf32, #tpu.memory_space<vmem>>, vector<1x16x16xf32>
    %5 = vector.shape_cast %4 : vector<1x16x16xf32> to vector<16x16xf32>
    %cst = arith.constant 0.000000e+00 : f32
    %6 = vector.broadcast %cst : f32 to vector<16x16xf32>
    %7 = arith.cmpf ogt, %3, %6 : vector<16x16xf32>
    %c0_8 = arith.constant 0 : index
    %c0_9 = arith.constant 0 : index
    %c0_10 = arith.constant 0 : index
    %8 = vector.load %arg5[%c0_8, %c0_9, %c0_10] : memref<2x32x128xf32, #tpu.memory_space<vmem>>, vector<2x32x128xf32>
    %c0_11 = arith.constant 0 : index
    %c0_12 = arith.constant 0 : index
    %c0_13 = arith.constant 0 : index
    %9 = vector.load %arg6[%c0_11, %c0_12, %c0_13] : memref<2x8x128xf32, #tpu.memory_space<vmem>>, vector<2x8x128xf32>
    %10 = vector.extract_strided_slice %8 {offsets = [0, 0, 0], sizes = [1, 32, 128], strides = [1, 1, 1]} : vector<2x32x128xf32> to vector<1x32x128xf32>
    %11 = vector.shape_cast %10 : vector<1x32x128xf32> to vector<32x128xf32>
    %12 = vector.extract_strided_slice %9 {offsets = [0, 0, 0], sizes = [1, 8, 128], strides = [1, 1, 1]} : vector<2x8x128xf32> to vector<1x8x128xf32>
    %13 = vector.shape_cast %12 : vector<1x8x128xf32> to vector<8x128xf32>
    %14 = vector.extract_strided_slice %13 {offsets = [0, 0], sizes = [1, 128], strides = [1, 1]} : vector<8x128xf32> to vector<1x128xf32>
    %15 = vector.extract_strided_slice %13 {offsets = [1, 0], sizes = [1, 64], strides = [1, 1]} : vector<8x128xf32> to vector<1x64xf32>
    %16 = vector.extract_strided_slice %13 {offsets = [1, 64], sizes = [1, 64], strides = [1, 1]} : vector<8x128xf32> to vector<1x64xf32>
    %17 = vector.extract_strided_slice %13 {offsets = [2, 0], sizes = [1, 32], strides = [1, 1]} : vector<8x128xf32> to vector<1x32xf32>
    %cst_14 = arith.constant dense<0.000000e+00> : vector<16x128xf32>
    %18 = tpu.matmul %1, %11, %cst_14 {dimension_numbers = #tpu.dot_dimension_numbers<[1], [0], [0], [1], [0, 0, 1, 1], [], []>} : vector<16x32xf32>, vector<32x128xf32>, vector<16x128xf32> -> vector<16x128xf32>
    %19 = vector.broadcast %14 : vector<1x128xf32> to vector<16x128xf32>
    %20 = arith.addf %18, %19 : vector<16x128xf32>
    %21 = vector.extract_strided_slice %20 {offsets = [0, 0], sizes = [16, 64], strides = [1, 1]} : vector<16x128xf32> to vector<16x64xf32>
    %22 = vector.extract_strided_slice %20 {offsets = [0, 64], sizes = [16, 64], strides = [1, 1]} : vector<16x128xf32> to vector<16x64xf32>
    %23 = vector.shape_cast %22 : vector<16x64xf32> to vector<16x1x64xf32>
    %24 = vector.shape_cast %21 : vector<16x64xf32> to vector<1x16x64xf32>
    %25 = vector.broadcast %23 : vector<16x1x64xf32> to vector<16x16x64xf32>
    %26 = vector.broadcast %24 : vector<1x16x64xf32> to vector<16x16x64xf32>
    %27 = arith.addf %25, %26 : vector<16x16x64xf32>
    %28 = vector.shape_cast %5 : vector<16x16xf32> to vector<16x16x1xf32>
    %29 = vector.shape_cast %15 : vector<1x64xf32> to vector<1x1x64xf32>
    %30 = vector.broadcast %28 : vector<16x16x1xf32> to vector<16x16x64xf32>
    %31 = vector.broadcast %29 : vector<1x1x64xf32> to vector<16x16x64xf32>
    %32 = arith.mulf %30, %31 : vector<16x16x64xf32>
    %33 = arith.addf %27, %32 : vector<16x16x64xf32>
    %cst_15 = arith.constant 0.000000e+00 : f32
    %34 = vector.broadcast %cst_15 : f32 to vector<16x16x64xf32>
    %35 = arith.cmpf ogt, %33, %34 : vector<16x16x64xf32>
    %cst_16 = arith.constant 2.000000e-01 : f32
    %36 = vector.broadcast %cst_16 : f32 to vector<16x16x64xf32>
    %37 = arith.mulf %36, %33 : vector<16x16x64xf32>
    %38 = arith.select %35, %33, %37 : vector<16x16x64xi1>, vector<16x16x64xf32>
    %39 = vector.extract_strided_slice %16 {offsets = [0, 0], sizes = [1, 32], strides = [1, 1]} : vector<1x64xf32> to vector<1x32xf32>
    %40 = vector.extract_strided_slice %38 {offsets = [0, 0, 0], sizes = [16, 16, 32], strides = [1, 1, 1]} : vector<16x16x64xf32> to vector<16x16x32xf32>
    %41 = vector.shape_cast %39 : vector<1x32xf32> to vector<1x1x32xf32>
    %42 = vector.broadcast %41 : vector<1x1x32xf32> to vector<16x16x32xf32>
    %43 = arith.mulf %40, %42 : vector<16x16x32xf32>
    %cst_17 = arith.constant dense<0.000000e+00> : vector<16x16xf32>
    %44 = vector.multi_reduction <add>, %43, %cst_17 [2] : vector<16x16x32xf32> to vector<16x16xf32>
    %cst_18 = arith.constant -1.000000e+30 : f32
    %45 = vector.broadcast %cst_18 : f32 to vector<16x16xf32>
    %46 = arith.select %7, %44, %45 : vector<16x16xi1>, vector<16x16xf32>
    %cst_19 = arith.constant dense<0xFF800000> : vector<16xf32>
    %47 = vector.multi_reduction <maximumf>, %46, %cst_19 [1] : vector<16x16xf32> to vector<16xf32>
    %48 = vector.shape_cast %47 : vector<16xf32> to vector<16x1xf32>
    %49 = vector.broadcast %48 : vector<16x1xf32> to vector<16x16xf32>
    %50 = arith.subf %46, %49 : vector<16x16xf32>
    %51 = math.exp %50 : vector<16x16xf32>
    %cst_20 = arith.constant dense<0.000000e+00> : vector<16xf32>
    %52 = vector.multi_reduction <add>, %51, %cst_20 [1] : vector<16x16xf32> to vector<16xf32>
    %53 = vector.shape_cast %52 : vector<16xf32> to vector<16x1xf32>
    %54 = vector.broadcast %53 : vector<16x1xf32> to vector<16x16xf32>
    %55 = arith.divf %51, %54 : vector<16x16xf32>
    %56 = vector.extract_strided_slice %16 {offsets = [0, 32], sizes = [1, 32], strides = [1, 1]} : vector<1x64xf32> to vector<1x32xf32>
    %57 = vector.extract_strided_slice %38 {offsets = [0, 0, 32], sizes = [16, 16, 32], strides = [1, 1, 1]} : vector<16x16x64xf32> to vector<16x16x32xf32>
    %58 = vector.shape_cast %56 : vector<1x32xf32> to vector<1x1x32xf32>
    %59 = vector.broadcast %58 : vector<1x1x32xf32> to vector<16x16x32xf32>
    %60 = arith.mulf %57, %59 : vector<16x16x32xf32>
    %cst_21 = arith.constant dense<0.000000e+00> : vector<16x16xf32>
    %61 = vector.multi_reduction <add>, %60, %cst_21 [2] : vector<16x16x32xf32> to vector<16x16xf32>
    %cst_22 = arith.constant -1.000000e+30 : f32
    %62 = vector.broadcast %cst_22 : f32 to vector<16x16xf32>
    %63 = arith.select %7, %61, %62 : vector<16x16xi1>, vector<16x16xf32>
    %cst_23 = arith.constant dense<0xFF800000> : vector<16xf32>
    %64 = vector.multi_reduction <maximumf>, %63, %cst_23 [1] : vector<16x16xf32> to vector<16xf32>
    %65 = vector.shape_cast %64 : vector<16xf32> to vector<16x1xf32>
    %66 = vector.broadcast %65 : vector<16x1xf32> to vector<16x16xf32>
    %67 = arith.subf %63, %66 : vector<16x16xf32>
    %68 = math.exp %67 : vector<16x16xf32>
    %cst_24 = arith.constant dense<0.000000e+00> : vector<16xf32>
    %69 = vector.multi_reduction <add>, %68, %cst_24 [1] : vector<16x16xf32> to vector<16xf32>
    %70 = vector.shape_cast %69 : vector<16xf32> to vector<16x1xf32>
    %71 = vector.broadcast %70 : vector<16x1xf32> to vector<16x16xf32>
    %72 = arith.divf %68, %71 : vector<16x16xf32>
    %73 = tpu.concatenate %55, %72 in 1 : vector<16x16xf32>, vector<16x16xf32> -> vector<16x32xf32>
    %74 = vector.extract_strided_slice %21 {offsets = [0, 0], sizes = [16, 32], strides = [1, 1]} : vector<16x64xf32> to vector<16x32xf32>
    %75 = vector.extract_strided_slice %21 {offsets = [0, 32], sizes = [16, 32], strides = [1, 1]} : vector<16x64xf32> to vector<16x32xf32>
    %76 = tpu.concatenate %74, %75 in 0 : vector<16x32xf32>, vector<16x32xf32> -> vector<32x32xf32>
    %cst_25 = arith.constant dense<0.000000e+00> : vector<16x32xf32>
    %77 = tpu.matmul %73, %76, %cst_25 {dimension_numbers = #tpu.dot_dimension_numbers<[1], [0], [0], [1], [0, 0, 1, 1], [], []>} : vector<16x32xf32>, vector<32x32xf32>, vector<16x32xf32> -> vector<16x32xf32>
    %cst_26 = arith.constant 5.000000e-01 : f32
    %78 = vector.broadcast %cst_26 : f32 to vector<16x32xf32>
    %79 = arith.mulf %77, %78 : vector<16x32xf32>
    %80 = vector.broadcast %17 : vector<1x32xf32> to vector<16x32xf32>
    %81 = arith.addf %79, %80 : vector<16x32xf32>
    %cst_27 = arith.constant 0.000000e+00 : f32
    %82 = vector.broadcast %cst_27 : f32 to vector<16x32xf32>
    %83 = arith.cmpf ogt, %81, %82 : vector<16x32xf32>
    %cst_28 = arith.constant 0.00999999977 : f32
    %84 = vector.broadcast %cst_28 : f32 to vector<16x32xf32>
    %85 = arith.mulf %84, %81 : vector<16x32xf32>
    %86 = arith.select %83, %81, %85 : vector<16x32xi1>, vector<16x32xf32>
    %87 = vector.extract_strided_slice %8 {offsets = [1, 0, 0], sizes = [1, 32, 128], strides = [1, 1, 1]} : vector<2x32x128xf32> to vector<1x32x128xf32>
    %88 = vector.shape_cast %87 : vector<1x32x128xf32> to vector<32x128xf32>
    %89 = vector.extract_strided_slice %9 {offsets = [1, 0, 0], sizes = [1, 8, 128], strides = [1, 1, 1]} : vector<2x8x128xf32> to vector<1x8x128xf32>
    %90 = vector.shape_cast %89 : vector<1x8x128xf32> to vector<8x128xf32>
    %91 = vector.extract_strided_slice %90 {offsets = [0, 0], sizes = [1, 128], strides = [1, 1]} : vector<8x128xf32> to vector<1x128xf32>
    %92 = vector.extract_strided_slice %90 {offsets = [1, 0], sizes = [1, 64], strides = [1, 1]} : vector<8x128xf32> to vector<1x64xf32>
    %93 = vector.extract_strided_slice %90 {offsets = [1, 64], sizes = [1, 64], strides = [1, 1]} : vector<8x128xf32> to vector<1x64xf32>
    %94 = vector.extract_strided_slice %90 {offsets = [2, 0], sizes = [1, 32], strides = [1, 1]} : vector<8x128xf32> to vector<1x32xf32>
    %cst_29 = arith.constant dense<0.000000e+00> : vector<16x128xf32>
    %95 = tpu.matmul %86, %88, %cst_29 {dimension_numbers = #tpu.dot_dimension_numbers<[1], [0], [0], [1], [0, 0, 1, 1], [], []>} : vector<16x32xf32>, vector<32x128xf32>, vector<16x128xf32> -> vector<16x128xf32>
    %96 = vector.broadcast %91 : vector<1x128xf32> to vector<16x128xf32>
    %97 = arith.addf %95, %96 : vector<16x128xf32>
    %98 = vector.extract_strided_slice %97 {offsets = [0, 0], sizes = [16, 64], strides = [1, 1]} : vector<16x128xf32> to vector<16x64xf32>
    %99 = vector.extract_strided_slice %97 {offsets = [0, 64], sizes = [16, 64], strides = [1, 1]} : vector<16x128xf32> to vector<16x64xf32>
    %100 = vector.shape_cast %99 : vector<16x64xf32> to vector<16x1x64xf32>
    %101 = vector.shape_cast %98 : vector<16x64xf32> to vector<1x16x64xf32>
    %102 = vector.broadcast %100 : vector<16x1x64xf32> to vector<16x16x64xf32>
    %103 = vector.broadcast %101 : vector<1x16x64xf32> to vector<16x16x64xf32>
    %104 = arith.addf %102, %103 : vector<16x16x64xf32>
    %105 = vector.shape_cast %5 : vector<16x16xf32> to vector<16x16x1xf32>
    %106 = vector.shape_cast %92 : vector<1x64xf32> to vector<1x1x64xf32>
    %107 = vector.broadcast %105 : vector<16x16x1xf32> to vector<16x16x64xf32>
    %108 = vector.broadcast %106 : vector<1x1x64xf32> to vector<16x16x64xf32>
    %109 = arith.mulf %107, %108 : vector<16x16x64xf32>
    %110 = arith.addf %104, %109 : vector<16x16x64xf32>
    %cst_30 = arith.constant 0.000000e+00 : f32
    %111 = vector.broadcast %cst_30 : f32 to vector<16x16x64xf32>
    %112 = arith.cmpf ogt, %110, %111 : vector<16x16x64xf32>
    %cst_31 = arith.constant 2.000000e-01 : f32
    %113 = vector.broadcast %cst_31 : f32 to vector<16x16x64xf32>
    %114 = arith.mulf %113, %110 : vector<16x16x64xf32>
    %115 = arith.select %112, %110, %114 : vector<16x16x64xi1>, vector<16x16x64xf32>
    %116 = vector.extract_strided_slice %93 {offsets = [0, 0], sizes = [1, 32], strides = [1, 1]} : vector<1x64xf32> to vector<1x32xf32>
    %117 = vector.extract_strided_slice %115 {offsets = [0, 0, 0], sizes = [16, 16, 32], strides = [1, 1, 1]} : vector<16x16x64xf32> to vector<16x16x32xf32>
    %118 = vector.shape_cast %116 : vector<1x32xf32> to vector<1x1x32xf32>
    %119 = vector.broadcast %118 : vector<1x1x32xf32> to vector<16x16x32xf32>
    %120 = arith.mulf %117, %119 : vector<16x16x32xf32>
    %cst_32 = arith.constant dense<0.000000e+00> : vector<16x16xf32>
    %121 = vector.multi_reduction <add>, %120, %cst_32 [2] : vector<16x16x32xf32> to vector<16x16xf32>
    %cst_33 = arith.constant -1.000000e+30 : f32
    %122 = vector.broadcast %cst_33 : f32 to vector<16x16xf32>
    %123 = arith.select %7, %121, %122 : vector<16x16xi1>, vector<16x16xf32>
    %cst_34 = arith.constant dense<0xFF800000> : vector<16xf32>
    %124 = vector.multi_reduction <maximumf>, %123, %cst_34 [1] : vector<16x16xf32> to vector<16xf32>
    %125 = vector.shape_cast %124 : vector<16xf32> to vector<16x1xf32>
    %126 = vector.broadcast %125 : vector<16x1xf32> to vector<16x16xf32>
    %127 = arith.subf %123, %126 : vector<16x16xf32>
    %128 = math.exp %127 : vector<16x16xf32>
    %cst_35 = arith.constant dense<0.000000e+00> : vector<16xf32>
    %129 = vector.multi_reduction <add>, %128, %cst_35 [1] : vector<16x16xf32> to vector<16xf32>
    %130 = vector.shape_cast %129 : vector<16xf32> to vector<16x1xf32>
    %131 = vector.broadcast %130 : vector<16x1xf32> to vector<16x16xf32>
    %132 = arith.divf %128, %131 : vector<16x16xf32>
    %133 = vector.extract_strided_slice %93 {offsets = [0, 32], sizes = [1, 32], strides = [1, 1]} : vector<1x64xf32> to vector<1x32xf32>
    %134 = vector.extract_strided_slice %115 {offsets = [0, 0, 32], sizes = [16, 16, 32], strides = [1, 1, 1]} : vector<16x16x64xf32> to vector<16x16x32xf32>
    %135 = vector.shape_cast %133 : vector<1x32xf32> to vector<1x1x32xf32>
    %136 = vector.broadcast %135 : vector<1x1x32xf32> to vector<16x16x32xf32>
    %137 = arith.mulf %134, %136 : vector<16x16x32xf32>
    %cst_36 = arith.constant dense<0.000000e+00> : vector<16x16xf32>
    %138 = vector.multi_reduction <add>, %137, %cst_36 [2] : vector<16x16x32xf32> to vector<16x16xf32>
    %cst_37 = arith.constant -1.000000e+30 : f32
    %139 = vector.broadcast %cst_37 : f32 to vector<16x16xf32>
    %140 = arith.select %7, %138, %139 : vector<16x16xi1>, vector<16x16xf32>
    %cst_38 = arith.constant dense<0xFF800000> : vector<16xf32>
    %141 = vector.multi_reduction <maximumf>, %140, %cst_38 [1] : vector<16x16xf32> to vector<16xf32>
    %142 = vector.shape_cast %141 : vector<16xf32> to vector<16x1xf32>
    %143 = vector.broadcast %142 : vector<16x1xf32> to vector<16x16xf32>
    %144 = arith.subf %140, %143 : vector<16x16xf32>
    %145 = math.exp %144 : vector<16x16xf32>
    %cst_39 = arith.constant dense<0.000000e+00> : vector<16xf32>
    %146 = vector.multi_reduction <add>, %145, %cst_39 [1] : vector<16x16xf32> to vector<16xf32>
    %147 = vector.shape_cast %146 : vector<16xf32> to vector<16x1xf32>
    %148 = vector.broadcast %147 : vector<16x1xf32> to vector<16x16xf32>
    %149 = arith.divf %145, %148 : vector<16x16xf32>
    %150 = tpu.concatenate %132, %149 in 1 : vector<16x16xf32>, vector<16x16xf32> -> vector<16x32xf32>
    %151 = vector.extract_strided_slice %98 {offsets = [0, 0], sizes = [16, 32], strides = [1, 1]} : vector<16x64xf32> to vector<16x32xf32>
    %152 = vector.extract_strided_slice %98 {offsets = [0, 32], sizes = [16, 32], strides = [1, 1]} : vector<16x64xf32> to vector<16x32xf32>
    %153 = tpu.concatenate %151, %152 in 0 : vector<16x32xf32>, vector<16x32xf32> -> vector<32x32xf32>
    %cst_40 = arith.constant dense<0.000000e+00> : vector<16x32xf32>
    %154 = tpu.matmul %150, %153, %cst_40 {dimension_numbers = #tpu.dot_dimension_numbers<[1], [0], [0], [1], [0, 0, 1, 1], [], []>} : vector<16x32xf32>, vector<32x32xf32>, vector<16x32xf32> -> vector<16x32xf32>
    %cst_41 = arith.constant 5.000000e-01 : f32
    %155 = vector.broadcast %cst_41 : f32 to vector<16x32xf32>
    %156 = arith.mulf %154, %155 : vector<16x32xf32>
    %157 = vector.broadcast %94 : vector<1x32xf32> to vector<16x32xf32>
    %158 = arith.addf %156, %157 : vector<16x32xf32>
    %cst_42 = arith.constant 0.000000e+00 : f32
    %159 = vector.broadcast %cst_42 : f32 to vector<16x32xf32>
    %160 = arith.cmpf ogt, %158, %159 : vector<16x32xf32>
    %cst_43 = arith.constant 0.00999999977 : f32
    %161 = vector.broadcast %cst_43 : f32 to vector<16x32xf32>
    %162 = arith.mulf %161, %158 : vector<16x32xf32>
    %163 = arith.select %160, %158, %162 : vector<16x32xi1>, vector<16x32xf32>
    %c0_44 = arith.constant 0 : index
    %c0_45 = arith.constant 0 : index
    %164 = vector.load %arg10[%c0_44, %c0_45] : memref<8x128xf32, #tpu.memory_space<vmem>>, vector<8x128xf32>
    %165 = vector.extract_strided_slice %164 {offsets = [0, 0], sizes = [1, 128], strides = [1, 1]} : vector<8x128xf32> to vector<1x128xf32>
    %166 = vector.extract_strided_slice %164 {offsets = [1, 0], sizes = [1, 128], strides = [1, 1]} : vector<8x128xf32> to vector<1x128xf32>
    %167 = vector.extract_strided_slice %164 {offsets = [2, 0], sizes = [1, 128], strides = [1, 1]} : vector<8x128xf32> to vector<1x128xf32>
    %168 = vector.extract_strided_slice %164 {offsets = [3, 0], sizes = [1, 128], strides = [1, 1]} : vector<8x128xf32> to vector<1x128xf32>
    %169 = arith.index_cast %arg0 : i32 to index
    %170 = memref.load %arg1[%169] : memref<4xf32, #tpu.memory_space<smem>>
    %171 = tpu.concatenate %1, %86, %163 in 1 : vector<16x32xf32>, vector<16x32xf32>, vector<16x32xf32> -> vector<16x96xf32>
    %c0_46 = arith.constant 0 : index
    %c0_47 = arith.constant 0 : index
    %172 = vector.load %arg7[%c0_46, %c0_47] : memref<96x128xf32, #tpu.memory_space<vmem>>, vector<96x128xf32>
    %cst_48 = arith.constant dense<0.000000e+00> : vector<16x128xf32>
    %173 = tpu.matmul %171, %172, %cst_48 {dimension_numbers = #tpu.dot_dimension_numbers<[1], [0], [0], [1], [0, 0, 1, 1], [], []>} : vector<16x96xf32>, vector<96x128xf32>, vector<16x128xf32> -> vector<16x128xf32>
    %cst_49 = arith.constant dense<0.000000e+00> : vector<128xf32>
    %174 = vector.multi_reduction <add>, %173, %cst_49 [0] : vector<16x128xf32> to vector<128xf32>
    %175 = vector.shape_cast %174 : vector<128xf32> to vector<1x128xf32>
    %cst_50 = arith.constant 1.600000e+01 : f32
    %176 = vector.broadcast %cst_50 : f32 to vector<1x128xf32>
    %177 = arith.divf %175, %176 : vector<1x128xf32>
    %178 = vector.broadcast %170 : f32 to vector<1x128xf32>
    %179 = arith.mulf %178, %168 : vector<1x128xf32>
    %180 = arith.addf %177, %179 : vector<1x128xf32>
    %181 = arith.addf %180, %165 : vector<1x128xf32>
    %cst_51 = arith.constant 0.000000e+00 : f32
    %182 = vector.broadcast %cst_51 : f32 to vector<1x128xf32>
    %183 = arith.cmpf ogt, %181, %182 : vector<1x128xf32>
    %cst_52 = arith.constant 0.00999999977 : f32
    %184 = vector.broadcast %cst_52 : f32 to vector<1x128xf32>
    %185 = arith.mulf %184, %181 : vector<1x128xf32>
    %186 = arith.select %183, %181, %185 : vector<1x128xi1>, vector<1x128xf32>
    %c0_53 = arith.constant 0 : index
    %c0_54 = arith.constant 0 : index
    %187 = vector.load %arg8[%c0_53, %c0_54] : memref<128x128xf32, #tpu.memory_space<vmem>>, vector<128x128xf32>
    %cst_55 = arith.constant dense<0.000000e+00> : vector<1x128xf32>
    %188 = tpu.matmul %186, %187, %cst_55 {dimension_numbers = #tpu.dot_dimension_numbers<[1], [0], [0], [1], [0, 0, 1, 1], [], []>} : vector<1x128xf32>, vector<128x128xf32>, vector<1x128xf32> -> vector<1x128xf32>
    %189 = arith.addf %188, %166 : vector<1x128xf32>
    %cst_56 = arith.constant 0.000000e+00 : f32
    %190 = vector.broadcast %cst_56 : f32 to vector<1x128xf32>
    %191 = arith.cmpf ogt, %189, %190 : vector<1x128xf32>
    %cst_57 = arith.constant 0.00999999977 : f32
    %192 = vector.broadcast %cst_57 : f32 to vector<1x128xf32>
    %193 = arith.mulf %192, %189 : vector<1x128xf32>
    %194 = arith.select %191, %189, %193 : vector<1x128xi1>, vector<1x128xf32>
    %c0_58 = arith.constant 0 : index
    %c0_59 = arith.constant 0 : index
    %195 = vector.load %arg9[%c0_58, %c0_59] : memref<128x128xf32, #tpu.memory_space<vmem>>, vector<128x128xf32>
    %cst_60 = arith.constant dense<0.000000e+00> : vector<1x128xf32>
    %196 = tpu.matmul %194, %195, %cst_60 {dimension_numbers = #tpu.dot_dimension_numbers<[1], [0], [0], [1], [0, 0, 1, 1], [], []>} : vector<1x128xf32>, vector<128x128xf32>, vector<1x128xf32> -> vector<1x128xf32>
    %197 = arith.addf %196, %167 : vector<1x128xf32>
    %198 = vector.shape_cast %197 : vector<1x128xf32> to vector<1x128xf32>
    %199 = vector.broadcast %198 : vector<1x128xf32> to vector<8x128xf32>
    %200 = vector.shape_cast %199 : vector<8x128xf32> to vector<1x8x128xf32>
    %c0_61 = arith.constant 0 : index
    %c0_62 = arith.constant 0 : index
    %c0_63 = arith.constant 0 : index
    %201 = vector.load %arg11[%c0_61, %c0_62, %c0_63] : memref<1x8x128xf32, #tpu.memory_space<vmem>>, vector<1x8x128xf32>
    tpu.vector_store %arg11[%c0_61, %c0_62, %c0_63], %200 {strides = array<i32>} : memref<1x8x128xf32, #tpu.memory_space<vmem>>, vector<1x8x128xf32>,
    return
  }
  func.func @transform_0(%arg0: i32, %arg1: memref<4xf32, #tpu.memory_space<smem>>) -> (i32, i32, i32) {
    %c0_i32 = arith.constant 0 : i32
    %c0_i32_0 = arith.constant 0 : i32
    %c0_i32_1 = arith.constant 0 : i32
    return %arg0, %c0_i32, %c0_i32_0 : i32, i32, i32
  }
  func.func @transform_1(%arg0: i32, %arg1: memref<4xf32, #tpu.memory_space<smem>>) -> (i32, i32, i32) {
    %c0_i32 = arith.constant 0 : i32
    %c0_i32_0 = arith.constant 0 : i32
    %c0_i32_1 = arith.constant 0 : i32
    return %arg0, %c0_i32, %c0_i32_0 : i32, i32, i32
  }
  func.func @transform_2(%arg0: i32, %arg1: memref<4xf32, #tpu.memory_space<smem>>) -> (i32, i32, i32) {
    %c0_i32 = arith.constant 0 : i32
    %c0_i32_0 = arith.constant 0 : i32
    %c0_i32_1 = arith.constant 0 : i32
    return %arg0, %c0_i32, %c0_i32_0 : i32, i32, i32
  }
  func.func @transform_3(%arg0: i32, %arg1: memref<4xf32, #tpu.memory_space<smem>>) -> (i32, i32, i32) {
    %c0_i32 = arith.constant 0 : i32
    %c0_i32_0 = arith.constant 0 : i32
    %c0_i32_1 = arith.constant 0 : i32
    %c0_i32_2 = arith.constant 0 : i32
    return %c0_i32, %c0_i32_0, %c0_i32_1 : i32, i32, i32
  }
  func.func @transform_4(%arg0: i32, %arg1: memref<4xf32, #tpu.memory_space<smem>>) -> (i32, i32, i32) {
    %c0_i32 = arith.constant 0 : i32
    %c0_i32_0 = arith.constant 0 : i32
    %c0_i32_1 = arith.constant 0 : i32
    %c0_i32_2 = arith.constant 0 : i32
    return %c0_i32, %c0_i32_0, %c0_i32_1 : i32, i32, i32
  }
  func.func @transform_5(%arg0: i32, %arg1: memref<4xf32, #tpu.memory_space<smem>>) -> (i32, i32) {
    %c0_i32 = arith.constant 0 : i32
    %c0_i32_0 = arith.constant 0 : i32
    %c0_i32_1 = arith.constant 0 : i32
    return %c0_i32, %c0_i32_0 : i32, i32
  }
  func.func @transform_6(%arg0: i32, %arg1: memref<4xf32, #tpu.memory_space<smem>>) -> (i32, i32) {
    %c0_i32 = arith.constant 0 : i32
    %c0_i32_0 = arith.constant 0 : i32
    %c0_i32_1 = arith.constant 0 : i32
    return %c0_i32, %c0_i32_0 : i32, i32
  }
  func.func @transform_7(%arg0: i32, %arg1: memref<4xf32, #tpu.memory_space<smem>>) -> (i32, i32) {
    %c0_i32 = arith.constant 0 : i32
    %c0_i32_0 = arith.constant 0 : i32
    %c0_i32_1 = arith.constant 0 : i32
    return %c0_i32, %c0_i32_0 : i32, i32
  }
  func.func @transform_8(%arg0: i32, %arg1: memref<4xf32, #tpu.memory_space<smem>>) -> (i32, i32) {
    %c0_i32 = arith.constant 0 : i32
    %c0_i32_0 = arith.constant 0 : i32
    %c0_i32_1 = arith.constant 0 : i32
    return %c0_i32, %c0_i32_0 : i32, i32
  }
  func.func @transform_9(%arg0: i32, %arg1: memref<4xf32, #tpu.memory_space<smem>>) -> (i32, i32, i32) {
    %c0_i32 = arith.constant 0 : i32
    %c0_i32_0 = arith.constant 0 : i32
    %c0_i32_1 = arith.constant 0 : i32
    return %arg0, %c0_i32, %c0_i32_0 : i32, i32, i32
  }
}

</mosaic_0001>

<bundles_post_ra>
// kernel: _lambda_.1
= control target key start
LH: loop header
LB: loop body
LE: loop exit
PB: predicated region body
PF: predicated region fallthrough
CT: control target
= control target key end

     0   :  { %s7411_s0 = inlined_call_operand.vmem [shape: f32[4], index: 0, kind: input, shape index: {}]   ;;  %s7412_s1 = inlined_call_operand.hbm [shape: f32[4,16,32], index: 1, kind: input, shape index: {}]   ;;  %s7413_s2 = inlined_call_operand.hbm [shape: f32[4,16,16], index: 2, kind: input, shape index: {}]   ;;  %s7414_s3 = inlined_call_operand.hbm [shape: f32[4,16,16], index: 3, kind: input, shape index: {}]   ;;  %s7415_s4 = inlined_call_operand.hbm [shape: f32[2,32,128], index: 4, kind: input, shape index: {}]   ;;  %s7416_s5 = inlined_call_operand.hbm [shape: f32[2,8,128], index: 5, kind: input, shape index: {}]   ;;  %s7417_s6 = inlined_call_operand.hbm [shape: f32[96,128], index: 6, kind: input, shape index: {}]   ;;  %s7418_s7 = inlined_call_operand.hbm [shape: f32[128,128], index: 7, kind: input, shape index: {}]   ;;  %s7419_s8 = inlined_call_operand.hbm [shape: f32[128,128], index: 8, kind: input, shape index: {}]   ;;  %s7420_s9 = inlined_call_operand.hbm [shape: f32[8,128], index: 9, kind: input, shape index: {}]   ;;  %s7421_s10 = inlined_call_operand.vmem [shape: f32[4,8,128], index: 10, kind: output, shape index: {}]  }
   0x1   :  { %7489 = sst [smem:[#allocation65_spill]] %s7413_s2  ;;  %s15_s15 = sshll.u32 %s7411_s0, 4  ;;  %s16_s15 = int_to_ptr.vmem [resolvable:$true] %s15_s15 }
   0x2   :  { %7490 = sst [smem:[#allocation66_spill]] %s7415_s4  ;;  %s4798_s16 = scalar_lea.vmem %s16_s15, 16 }
   0x3   :  { %7491 = sst [smem:[#allocation67_spill]] %s7416_s5  ;;  %p4799_p0 = scmp.ne.s32.totalorder %s16_s15, %s4798_s16 }
   0x4   :  { %7492 = sst [smem:[#allocation68_spill]] %s7417_s6  ;;  %p4803_p1 = scmp.lt.s32.totalorder %s16_s15, %s16_s15 }
   0x5   :  { %7493 = sst [smem:[#allocation69_spill]] %s7419_s8  ;;  %p4804_p2 = scmp.lt.s32.totalorder %s4798_s16, %s4798_s16 }
   0x7   :  { %p4805_p3 = por %p4804_p2, %p4803_p1 }
   0x9   :  { %p4806_p4 = pnand %p4805_p3, %p4799_p0 }
   0xb   :  { %4809 = shalt.err (!%p4806_p4)  }
   0xc   :  { %s5104_s17 = smov [#allocation3]  }
   0xd   :  { %18 = dma.vmem_to_smem %s16_s15, 16, %s5104_s17, [#allocation2] }
   0xe   :  { %5066 = dma.done.wait [#allocation2], 16 }
   0xf   :  { %5067 = vsyncadd [#allocation2], 4294967280 }
  0x10   :  { %20 = sfence }
  0x11   :  { %21 = vsyncpa [#allocation5], 0 }
  0x12   :  { %23 = vsyncpa [#allocation5 + $0x1], 0 }
  0x13   :  { %24 = vsyncpa [#allocation7], 0 }
  0x14   :  { %26 = vsyncpa [#allocation7 + $0x1], 0 }
  0x15   :  { %27 = vsyncpa [#allocation10], 0 }
  0x16   :  { %28 = vsyncpa [#allocation13], 0 }
  0x17   :  { %29 = vsyncpa [#allocation16], 0  ;;  %s5181_s0 = smov 0   ;;  %s5183_s18 = smov 0  }
  0x18   :  { %s5185_s19 = smov 0   ;;  %s5187_s20 = smov 0  }
  0x19 LB: > { %s5105_s21 = smov [#allocation9]   ;;  %s5202_s23 = sadd.s32 4294967295, %s5102_s20   ;;  %s5102_s20 = sphi %s5187_s20, %s7629_s20   ;;  %s5098_s19 = sphi %s5185_s19, %s7628_s19   ;;  %s5094_s18 = sphi %s5183_s18, %s7627_s18   ;;  %s5090_s0 = sphi %s5181_s0, %s7626_s0  }
  0x1a   : > { %s282_s22 = sshll.u32 %s5105_s21, 4  ;;  %p4386_p5 = scmp.ge.s32.totalorder %s5102_s20, 1  ;;  %s283_s22 = int_to_ptr.vmem [resolvable:$true] %s282_s22 }
  0x1b   : > { %p7427_p6 = scmp.eq.s32.totalorder %s5202_s23, 0  ;;  %p270_p7 = scmp.lt.s32.totalorder %s5102_s20, 5 }
  0x1c   : > { %s5106_s25 = smov [#allocation12]   ;;  %s5107_s28 = smov [#allocation15]  }
  0x1d   : > { %p5207_p8 = pnand %p4386_p5, %p270_p7  ;;  %s308_s26 = sshll.u32 %s5106_s25, 4  ;;  %s5219_s26 = int_to_ptr.vmem [resolvable:$true] %s308_s26 }
  0x1e   : > { %s334_s29 = sshll.u32 %s5107_s28, 4  ;;  %s4821_s11 = scalar_lea.vmem %s283_s22, 1024  ;;  %s5221_s29 = int_to_ptr.vmem [resolvable:$true] %s334_s29 }
  0x1f   : > { %s7494_s24 = scalar_select %p5207_p8, 1, 0 }
  0x20   : > { %p4672_p9 = pneg %p5207_p8  ;;  %p4822_p12 = scmp.ne.s32.totalorder %s283_s22, %s4821_s11 }
  0x21   : > { %p4829_p1 = scmp.lt.s32.totalorder %s283_s22, %s283_s22  ;;  %p4830_p2 = scmp.lt.s32.totalorder %s4821_s11, %s4821_s11 }
  0x22   : > { %p5215_p10 = pnand %p4672_p9, %p7427_p6 }
  0x23   : > { %p4831_p3 = por %p4830_p2, %p4829_p1 }
  0x24   : > { %s7495_s27 = scalar_select %p5215_p10, 1, 0 }
  0x25   : > { %p5225_p11 = pneg %p5215_p10 }
  0x27   : > { %s7496_s30 = scalar_select %p5225_p11, 1, 0 }
  0x28   : > { %p4824_p13 = pnand %p4822_p12, %p5225_p11 }
  0x2a   : > { %p4825_p0 = pneg %p4824_p13 }
  0x2c   : > { %p4832_p4 = pnand %p4831_p3, %p4825_p0 }
  0x2e   : > { %4835 = shalt.err (!%p4832_p4)
}
  0x2f   : > { %s7423_s12 = smov 128   ;;  %s7425_s13 = smov 8  }
  0x30   : > { %s7497_s4 = sld [smem:[#allocation66_spill]]  ;;  %s4847_s16 = scalar_lea.vmem %s5219_s26, 1536 }
  0x31   : > { %p4848_p5 = scmp.ne.s32.totalorder %s5219_s26, %s4847_s16  ;;  %p4855_p12 = scmp.lt.s32.totalorder %s5219_s26, %s5219_s26 }
  0x32   : > { %p4856_p13 = scmp.lt.s32.totalorder %s4847_s16, %s4847_s16 }
  0x33   : > { %p4850_p7 = pnand %p4848_p5, %p5225_p11 }
  0x34   : > { %p4857_p0 = por %p4856_p13, %p4855_p12 }
  0x35   : > { %p4851_p9 = pneg %p4850_p7 }
  0x36   : > { %4675 = dma.hbm_to_vmem [thread:$0]  (!%p5215_p10), %s7497_s4, 1024, %s283_s22, [#allocation10], %s7423_s12, %s7423_s12, %s7425_s13  }
  0x37   : > { %p4858_p1 = pnand %p4857_p0, %p4851_p9 }
  0x39   : > { %4861 = shalt.err (!%p4858_p1)
}
  0x3a   : > { %s7498_s6 = sld [smem:[#allocation68_spill]]  ;;  %s4873_s22 = scalar_lea.vmem %s5221_s29, 2048 }
  0x3b   : > { %p4874_p2 = scmp.ne.s32.totalorder %s5221_s29, %s4873_s22  ;;  %p4881_p5 = scmp.lt.s32.totalorder %s5221_s29, %s5221_s29 }
  0x3c   : > { %p4882_p7 = scmp.lt.s32.totalorder %s4873_s22, %s4873_s22 }
  0x3d   : > { %p4876_p3 = pnand %p4874_p2, %p5225_p11 }
  0x3e   : > { %p4883_p9 = por %p4882_p7, %p4881_p5 }
  0x3f   : > { %p4877_p4 = pneg %p4876_p3 }
  0x40   : > { %4681 = dma.hbm_to_vmem [thread:$0]  (!%p5215_p10), %s7498_s6, 1536, %s5219_s26, [#allocation13], %s7423_s12, %s7423_s12, %s7425_s13  }
  0x41   : > { %p4884_p12 = pnand %p4883_p9, %p4877_p4 }
  0x43   : > { %4887 = shalt.err (!%p4884_p12)
}
  0x44   : > { %s7499_s8 = sld [smem:[#allocation69_spill]]  ;;  %s5270_s26 = sadd.s32 1, %s5102_s20  }
  0x45   : > { %s39_s11 = ssub.s32 %s5102_s20, %s5270_s26  ;;  %s42_s14 = sadd.s32 1, %s5098_s19 }
  0x46   : > { %p40_p13 = scmp.eq.s32.totalorder %s39_s11, 0  ;;  %p49_p0 = scmp.ne.s32.totalorder %s5098_s19, %s5094_s18 }
  0x47   : > { %p50_p1 = scmp.eq.s32.totalorder %s5102_s20, 0  ;;  %p55_p2 = scmp.ne.s32.totalorder %s5094_s18, %s5090_s0 }
  0x48   : > { %s5281_s15 = scalar_select %p40_p13, %s5098_s19, %s42_s14  }
  0x49   : > { %p51_p3 = por %p50_p1, %p49_p0  ;;  %p5285_p4 = por %p7427_p6, %p55_p2 }
  0x4a   : > { %4687 = dma.hbm_to_vmem [thread:$0]  (!%p5215_p10), %s7499_s8, 2048, %s5221_s29, [#allocation16], %s7423_s12, %s7423_s12, %s7425_s13  }
  0x4b   : > { %7500 = sst [smem:[#allocation24_spill]] %s5281_s15  ;;  %p4707_p5 = scmp.lt.s32.totalorder %s5102_s20, 4 }
  0x4c   : > { %s7501_s16 = scalar_select %p5285_p4, 1, 0 }
  0x4d   : > { %s7422_s29 = sand.u32 1, %s5098_s19   ;;  %s5296_s21 = sshll.u32 %s5102_s20, 8 }
  0x4e   : > { %s5293_s17 = sshll.u32 %s7422_s29, 4  ;;  %p5298_p7 = pnand %p4707_p5, %p51_p3 }
  0x4f   : > { %s380_s0 = sand.u32 1, %s5102_s20   ;;  %s7503_s2 = sld [smem:[#allocation65_spill]] }
  0x50   : > { %s384_s14 = scalar_lea.vmem [#allocation6], %s5293_s17  ;;  %s5110_s12 = smov [#allocation11]  }
  0x51   : > { %s391_s29 = sshll.u32 %s384_s14, 4  ;;  %s5312_s13 = sshll.u32 %s5110_s12, 4  ;;  %s5310_s29 = int_to_ptr.vmem [resolvable:$true] %s391_s29  ;;  %s296_s13 = int_to_ptr.vmem [resolvable:$true] %s5312_s13 }
  0x52   : > { %s5314_s4 = scalar_lea.sflag [#allocation7], %s380_s0  ;;  %p5320_p12 = pneg %p5298_p7 }
  0x55   : > { %s5307_s11 = scalar_lea.hbm %s7503_s2, %s5296_s21  ;;  %s4893_s14 = scalar_lea.hbm %s7503_s2, 1024 }
  0x56   : > { %s4888_s6 = scalar_lea.hbm %s5307_s11, 256  ;;  %p4894_p1 = scmp.lt.s32.totalorder %s5307_s11, %s7503_s2 }
  0x57   : > { %p4889_p9 = scmp.ne.s32.totalorder %s5307_s11, %s4888_s6  ;;  %p4895_p2 = scmp.lt.s32.totalorder %s4893_s14, %s4888_s6 }
  0x59   : > { %p4891_p13 = pnand %p5320_p12, %p4889_p9  ;;  %p4896_p3 = por %p4895_p2, %p4894_p1 }
  0x5b   : > { %p4892_p0 = pneg %p4891_p13 }
  0x5d   : > { %p4897_p5 = pnand %p4896_p3, %p4892_p0 }
  0x5f   : > { %4900 = shalt.err (!%p4897_p5)
}
  0x60   : > { %s4901_s0 = scalar_lea.vmem %s5310_s29, 256  ;;  %s5111_s15 = smov [#allocation6]  }
  0x61   : > { %p4902_p6 = scmp.ne.s32.totalorder %s5310_s29, %s4901_s0  ;;  %s4906_s25 = sshll.u32 %s5111_s15, 4  ;;  %s4907_s25 = int_to_ptr.vmem [resolvable:$false] %s4906_s25 }
  0x62   : > { %s4908_s28 = scalar_lea.vmem %s4907_s25, 512  ;;  %p4909_p4 = scmp.lt.s32.totalorder %s5310_s29, %s4907_s25 }
  0x63   : > { %p4904_p9 = pnand %p4902_p6, %p5320_p12  ;;  %p4910_p8 = scmp.lt.s32.totalorder %s4908_s28, %s4901_s0 }
  0x65   : > { %p4905_p13 = pneg %p4904_p9  ;;  %p4911_p10 = por %p4910_p8, %p4909_p4 }
  0x67   : > { %p4912_p11 = pnand %p4911_p10, %p4905_p13 }
  0x69   : > { %4915 = shalt.err (!%p4912_p11)
}
  0x6a   : > { %s7505_s6 = smov 8   ;;  %s7506_s8 = smov 128  }
  0x6b   : > { %4697 = dma.hbm_to_vmem [thread:$0]  (!%p5298_p7), %s5307_s11, 256, %s5310_s29, %s5314_s4, %s7506_s8, %s7506_s8, %s7505_s6  }
  0x6c   : > { %s4927_s15 = scalar_lea.vmem %s296_s13, 256  ;;  %p7507_p0 = scmp.ne.s32.totalorder %s7496_s30, 0 }
  0x6d   : > { %p4928_p6 = scmp.ne.s32.totalorder %s296_s13, %s4927_s15  ;;  %p4935_p8 = scmp.lt.s32.totalorder %s296_s13, %s296_s13 }
  0x6e   : > { %p4936_p10 = scmp.lt.s32.totalorder %s4927_s15, %s4927_s15 }
  0x6f   : > { %p4930_p1 = pnand %p4928_p6, %p7507_p0 }
  0x70   : > { %p4937_p11 = por %p4936_p10, %p4935_p8 }
  0x71   : > { %p4931_p2 = pneg %p4930_p1 }
  0x73   : > { %p4938_p4 = pnand %p4937_p11, %p4931_p2 }
  0x75   : > { %4941 = shalt.err (!%p4938_p4)
}
  0x76   : > { %p7508_p3 = scmp.ne.s32.totalorder %s7495_s27, 0  ;;  %s7509_s5 = sld [smem:[#allocation67_spill]] }
  0x77   : > { %s5112_s29 = smov [#allocation14]   ;;  %s5113_s0 = smov [#allocation17]  }
  0x78   : > { %s321_s11 = sshll.u32 %s5112_s29, 4  ;;  %s348_s25 = sshll.u32 %s5113_s0, 4  ;;  %s322_s11 = int_to_ptr.vmem [resolvable:$true] %s321_s11  ;;  %s349_s25 = int_to_ptr.vmem [resolvable:$true] %s348_s25 }
  0x79   : > { %s4953_s28 = scalar_lea.vmem %s322_s11, 2048  ;;  %p4961_p6 = scmp.lt.s32.totalorder %s322_s11, %s322_s11 }
  0x7a   : > { %p4954_p5 = scmp.ne.s32.totalorder %s322_s11, %s4953_s28  ;;  %p4962_p1 = scmp.lt.s32.totalorder %s4953_s28, %s4953_s28 }
  0x7c   : > { %4678 = dma.hbm_to_vmem [thread:$0]  (!%p7508_p3), %s7509_s5, 256, %s296_s13, [#allocation10], %s7506_s8, %s7506_s8, %s7505_s6  }
  0x7d   : > { %p4956_p9 = pnand %p4954_p5, %p7507_p0  ;;  %p4963_p2 = por %p4962_p1, %p4961_p6 }
  0x7f   : > { %p4957_p13 = pneg %p4956_p9 }
  0x81   : > { %p4964_p8 = pnand %p4963_p2, %p4957_p13 }
  0x83   : > { %4967 = shalt.err (!%p4964_p8)
}
  0x84   : > { %4684 = dma.hbm_to_vmem [thread:$0]  (!%p7508_p3), %s7418_s7, 2048, %s322_s11, [#allocation13], %s7506_s8, %s7506_s8, %s7505_s6  }
  0x85   : > { %s4979_s14 = scalar_lea.vmem %s349_s25, 128  ;;  %p4987_p5 = scmp.lt.s32.totalorder %s349_s25, %s349_s25 }
  0x86   : > { %p4980_p10 = scmp.ne.s32.totalorder %s349_s25, %s4979_s14  ;;  %p4988_p9 = scmp.lt.s32.totalorder %s4979_s14, %s4979_s14 }
  0x88   : > { %p4982_p11 = pnand %p4980_p10, %p7507_p0  ;;  %p4989_p13 = por %p4988_p9, %p4987_p5 }
  0x8a   : > { %p4983_p4 = pneg %p4982_p11 }
  0x8c   : > { %p4990_p6 = pnand %p4989_p13, %p4983_p4 }
  0x8e   : > { %4993 = shalt.err (!%p4990_p6)
}
  0x8f   : > { %4690 = dma.hbm_to_vmem [thread:$0]  (!%p7508_p3), %s7420_s9, 128, %s349_s25, [#allocation16]  }
  0x90   : > { %s5378_s0 = scalar_lea.hbm %s7412_s1, %s5296_s21  ;;  %s363_s28 = scalar_lea.vmem [#allocation4], %s5293_s17 }
  0x91   : > { %s370_s13 = sshll.u32 %s363_s28, 4  ;;  %s5387_s14 = scalar_lea.hbm %s7414_s3, %s5296_s21  ;;  %s5381_s13 = int_to_ptr.vmem [resolvable:$true] %s370_s13 }
  0x92   : > { %s7510_s12 = sand.u32 1, %s5098_s19   ;;  %s4994_s25 = scalar_lea.hbm %s5378_s0, 256 }
  0x93   : > { %s360_s29 = scalar_lea.sflag [#allocation5], %s7510_s12  ;;  %p4995_p0 = scmp.ne.s32.totalorder %s5378_s0, %s4994_s25 }
  0x94   : > { %s4999_s2 = scalar_lea.hbm %s7412_s1, 1024  ;;  %p5000_p2 = scmp.lt.s32.totalorder %s5378_s0, %s7412_s1 }
  0x95   : > { %p4997_p3 = pnand %p4995_p0, %p5320_p12  ;;  %p5001_p8 = scmp.lt.s32.totalorder %s4999_s2, %s4994_s25 }
  0x97   : > { %p4998_p1 = pneg %p4997_p3  ;;  %p5002_p10 = por %p5001_p8, %p5000_p2 }
  0x99   : > { %p5003_p11 = pnand %p5002_p10, %p4998_p1 }
  0x9b   : > { %5006 = shalt.err (!%p5003_p11)
}
  0x9c   : > { %s5007_s21 = scalar_lea.vmem %s5381_s13, 256  ;;  %s5114_s27 = smov [#allocation4]  }
  0x9d   : > { %p5008_p4 = scmp.ne.s32.totalorder %s5381_s13, %s5007_s21  ;;  %s5012_s15 = sshll.u32 %s5114_s27, 4  ;;  %s5013_s15 = int_to_ptr.vmem [resolvable:$false] %s5012_s15 }
  0x9e   : > { %s5014_s12 = scalar_lea.vmem %s5013_s15, 512  ;;  %p5015_p13 = scmp.lt.s32.totalorder %s5381_s13, %s5013_s15 }
  0x9f   : > { %p5010_p5 = pnand %p5008_p4, %p5320_p12  ;;  %p5016_p6 = scmp.lt.s32.totalorder %s5014_s12, %s5007_s21 }
  0xa1   : > { %p5011_p9 = pneg %p5010_p5  ;;  %p5017_p0 = por %p5016_p6, %p5015_p13 }
  0xa3   : > { %p5018_p3 = pnand %p5017_p0, %p5011_p9 }
  0xa5   : > { %5021 = shalt.err (!%p5018_p3)
}
  0xa6   : > { %4694 = dma.hbm_to_vmem [thread:$0]  (!%p5298_p7), %s5378_s0, 256, %s5381_s13, %s360_s29, %s7506_s8, %s7506_s8, %s7505_s6  }
  0xa7   : > { %s405_s2 = scalar_lea.vmem [#allocation8], %s5293_s17  ;;  %s5022_s25 = scalar_lea.hbm %s5387_s14, 256 }
  0xa8   : > { %s412_s5 = sshll.u32 %s405_s2, 4  ;;  %p5023_p1 = scmp.ne.s32.totalorder %s5387_s14, %s5022_s25  ;;  %s413_s5 = int_to_ptr.vmem [resolvable:$true] %s412_s5 }
  0xa9   : > { %s5027_s28 = scalar_lea.hbm %s7414_s3, 1024  ;;  %p5028_p10 = scmp.lt.s32.totalorder %s5387_s14, %s7414_s3 }
  0xaa   : > { %p5025_p2 = pnand %p5023_p1, %p5320_p12  ;;  %p5029_p11 = scmp.lt.s32.totalorder %s5027_s28, %s5022_s25 }
  0xac   : > { %p5026_p8 = pneg %p5025_p2  ;;  %p5030_p4 = por %p5029_p11, %p5028_p10 }
  0xae   : > { %p5031_p5 = pnand %p5030_p4, %p5026_p8 }
  0xb0   : > { %5034 = shalt.err (!%p5031_p5)
}
  0xb1   : > { %s5035_s17 = scalar_lea.vmem %s413_s5, 256  ;;  %s5115_s0 = smov [#allocation8]  }
  0xb2   : > { %p5036_p9 = scmp.ne.s32.totalorder %s413_s5, %s5035_s17  ;;  %s5040_s13 = sshll.u32 %s5115_s0, 4  ;;  %s5041_s13 = int_to_ptr.vmem [resolvable:$false] %s5040_s13 }
  0xb3   : > { %s5042_s29 = scalar_lea.vmem %s5041_s13, 512  ;;  %p5043_p0 = scmp.lt.s32.totalorder %s413_s5, %s5041_s13 }
  0xb4   : > { %p5038_p13 = pnand %p5036_p9, %p5320_p12  ;;  %p5044_p3 = scmp.lt.s32.totalorder %s5042_s29, %s5035_s17 }
  0xb6   : > { %p5039_p6 = pneg %p5038_p13  ;;  %p5045_p1 = por %p5044_p3, %p5043_p0 }
  0xb8   : > { %p5046_p2 = pnand %p5045_p1, %p5039_p6 }
  0xba   : > { %5049 = shalt.err (!%p5046_p2)
}
  0xbb   : > { %4700 = dma.hbm_to_vmem [thread:$0]  (!%p5298_p7), %s5387_s14, 256, %s413_s5, %s5314_s4, %s7506_s8, %s7506_s8, %s7505_s6  }
  0xbc   : > { %p7511_p12 = scmp.ne.s32.totalorder %s7494_s24, 0 }
  0xbe   : > { %424 = sbr.rel (%p7511_p12) target bundleno = 3733 (0xe95), region = 56 }
  0xc3   : > { %s426_s20 = sand.u32 1, %s5094_s18   ;;  %p7512_p8 = scmp.ne.s32.totalorder %s7501_s16, 0 }
  0xc4   : > { %s5438_s15 = sshll.u32 %s426_s20, 4  ;;  %s427_s12 = scalar_lea.sflag [#allocation5], %s426_s20 }
  0xc5   : > { %s5441_s2 = scalar_lea.vmem [#allocation4], %s5438_s15 }
  0xc6   : > { %5069 = dma.done.wait (%p7512_p8), %s427_s12, 256  }
  0xc7   : > { %5071 = vsyncadd (%p7512_p8), %s427_s12, 4294967040  ;;  %s435_s4 = sand.u32 1, %s5202_s23   ;;  %s439_s22 = scalar_lea.vmem [#allocation6], %s5438_s15 }
  0xc8   : > { %s436_s24 = scalar_lea.sflag [#allocation7], %s435_s4 }
  0xc9   : > { %5073 = dma.done.wait (%p7512_p8), %s436_s24, 512  }
  0xca   : > { %5075 = vsyncadd (%p7512_p8), %s436_s24, 4294966784  ;;  %s448_s6 = scalar_lea.vmem [#allocation8], %s5438_s15  ;;  %p7513_p7 = scmp.eq.s32.totalorder %s5202_s23, 0 }
  0xcc   : > { %5077 = dma.done.wait (%p7513_p7), [#allocation10], 1280   ;;  %p7514_p10 = pmov %p7513_p7 }
  0xcd   : > { %p7515_p11 = pmov %p7513_p7 }
  0xce   : > { %5079 = vsyncadd (%p7514_p10), [#allocation10], 4294966016 }
  0xcf   : > { %5081 = dma.done.wait (%p7515_p11), [#allocation13], 3584   ;;  %p7516_p4 = pmov %p7513_p7 }
  0xd1   : > { %5083 = vsyncadd (%p7516_p4), [#allocation13], 4294963712  ;;  %p7517_p5 = pmov %p7516_p4 }
  0xd2   : > { %p7518_p9 = pmov %p7516_p4 }
  0xd3   : > { %5085 = dma.done.wait (%p7517_p5), [#allocation16], 2176  }
  0xd4   : > { %5087 = vsyncadd (%p7518_p9), [#allocation16], 4294965120  ;;  %v7434_v0 = vlaneseq  ;;  %vm542_vm0 = vcmask 261120   ;;  %v531_v4 = vld [vmem:[#allocation9 + $0x18] sm:$0xff]  ;;  %v530_v5 = vld [vmem:[#allocation9 + $0x10] sm:$0xff]  ;;  %s5116_s16 = smov 64  }
  0xd5   : > { %4501 = vmatprep.subr.mxu1 %v531_v4  ;;  %v520_v6 = vld [vmem:[%s5441_s2] sm:$0xff]  ;;  %v529_v7 = vld [vmem:[#allocation9 + $0x8] sm:$0xff]  ;;  %s5118_s8 = smov 32   ;;  %s5119_s14 = smov 96  }
  0xd6   : > { %v5467_v1 = vshrl.u32 %v7434_v0, 7  ;;  %4502 = vmatpush3.msra.mxu1 %v531_v4  ;;  %4509 = vmatprep.mubr.msk.f32.mxu1 %vm542_vm0, %v520_v6  ;;  %v524_v8 = vld [vmem:[%s448_s6] sm:$0xff]  ;;  %v521_v12 = vld [vmem:[%s5441_s2 + $0x8] sm:$0xff]  ;;  %s5120_s5 = smov 16   ;;  %s3900_s25 = sld [smem:[#allocation3 + %s5202_s23]] }
  0xd7   : > { %4503 = vmatprep.subr.mxu1 %v530_v5  ;;  %v528_v11 = vld [vmem:[#allocation9] sm:$0xff]  ;;  %v525_v15 = vld [vmem:[%s448_s6 + $0x8] sm:$0xff]  ;;  %p516_p13 = scmp.lt.s32.totalorder %s5202_s23, 3 }
  0xd8   : > { %7519 = vst [vmem:[#allocation25_spill] sm:$0xff] %v5467_v1  ;;  %v5470_v2 = vsub.s32 0, %v5467_v1  ;;  %v5473_v3 = vsub.s32 1, %v5467_v1  ;;  %4504 = vmatpush3.msra.mxu1 %v530_v5  ;;  %v5483_v13 = vsub.s32 2, %v5467_v1  ;;  %v877_v18 = vsub.s32 3, %v5467_v1  ;;  %v5497_v34 = vld [vmem:[#allocation11] sm:$0xff] }
  0xd9   : > { %4505 = vmatprep.subr.mxu1 %v529_v7  ;;  %v888_v21 = vsub.s32 4, %v5467_v1  ;;  %v899_v24 = vsub.s32 5, %v5467_v1  ;;  %v910_v27 = vsub.s32 6, %v5467_v1  ;;  %v921_v30 = vsub.s32 7, %v5467_v1  ;;  %s7631_s23 = smov (!%p516_p13, %s5202_s23), 3 }
  0xda   : > { %7520 = vst [vmem:[#allocation26_spill] sm:$0xff] %v5473_v3  ;;  %v845_v9 = vrot.slane %v524_v8, %v5470_v2  ;;  %v856_v10 = vrot.slane %v524_v8, %v5473_v3  ;;  %4506 = vmatpush3.msra.mxu1 %v529_v7  ;;  %7521 = vst [vmem:[#allocation27_spill] sm:$0xff] %v5483_v13  ;;  %v867_v14 = vrot.slane %v524_v8, %v5483_v13  ;;  %s4413_s11 = sshll.u32 %s7631_s23, 3 }
  0xdb   : > { %4507 = vmatprep.subr.mxu1 %v528_v11  ;;  %v933_v16 = vrot.slane %v525_v15, %v5470_v2  ;;  %v944_v17 = vrot.slane %v525_v15, %v5473_v3  ;;  %v878_v19 = vrot.slane %v524_v8, %v877_v18  ;;  %v955_v20 = vrot.slane %v525_v15, %v5483_v13  ;;  %s519_s21 = scalar_lea.vmem %s7421_s10, %s4413_s11 }
  0xdc   : > { %847 = vbcast.lane.b32.xlu0 %v845_v9, 256  ;;  %858 = vbcast.lane.b32.xlu1 %v856_v10, 256  ;;  %v889_v22 = vrot.slane %v524_v8, %v888_v21  ;;  %v966_v23 = vrot.slane %v525_v15, %v877_v18  ;;  %v900_v25 = vrot.slane %v524_v8, %v899_v24 }
  0xdd   : > { %4508 = vmatpush3.msra.mxu1 %v528_v11  ;;  %v977_v26 = vrot.slane %v525_v15, %v888_v21  ;;  %v911_v28 = vrot.slane %v524_v8, %v910_v27  ;;  %v988_v29 = vrot.slane %v525_v15, %v899_v24  ;;  %v922_v31 = vrot.slane %v524_v8, %v921_v30 }
  0xde   : > { %4510 = vmatmul.mubr.msk.f32.vlgmr.msra.gmra.mxu1 %vm542_vm0, %v521_v12  ;;  %v999_v32 = vrot.slane %v525_v15, %v910_v27  ;;  %v1010_v33 = vrot.slane %v525_v15, %v921_v30  ;;  %v5501_v35 = vrot.slane %v5497_v34, %v5473_v3 }
  0xe0   : > { %851 = vbcast.lane.b32.xlu0 %v845_v9, 264  ;;  %862 = vbcast.lane.b32.xlu1 %v856_v10, 264 }
  0xe4   : > { %869 = vbcast.lane.b32.xlu0 %v867_v14, 256  ;;  %873 = vbcast.lane.b32.xlu1 %v867_v14, 264 }
  0xe8   : > { %935 = vbcast.lane.b32.xlu0 %v933_v16, 256  ;;  %939 = vbcast.lane.b32.xlu1 %v933_v16, 264 }
  0xec   : > { %946 = vbcast.lane.b32.xlu0 %v944_v17, 256  ;;  %950 = vbcast.lane.b32.xlu1 %v944_v17, 264 }
  0xf0   : > { %880 = vbcast.lane.b32.xlu0 %v878_v19, 256  ;;  %884 = vbcast.lane.b32.xlu1 %v878_v19, 264 }
  0xf4   : > { %957 = vbcast.lane.b32.xlu0 %v955_v20, 256  ;;  %961 = vbcast.lane.b32.xlu1 %v955_v20, 264 }
  0xf8   : > { %891 = vbcast.lane.b32.xlu0 %v889_v22, 256  ;;  %895 = vbcast.lane.b32.xlu1 %v889_v22, 264 }
  0xfc   : > { %968 = vbcast.lane.b32.xlu0 %v966_v23, 256  ;;  %972 = vbcast.lane.b32.xlu1 %v966_v23, 264 }
 0x100   : > { %902 = vbcast.lane.b32.xlu0 %v900_v25, 256  ;;  %906 = vbcast.lane.b32.xlu1 %v900_v25, 264 }
 0x104   : > { %979 = vbcast.lane.b32.xlu0 %v977_v26, 256  ;;  %983 = vbcast.lane.b32.xlu1 %v977_v26, 264 }
 0x108   : > { %913 = vbcast.lane.b32.xlu0 %v911_v28, 256  ;;  %917 = vbcast.lane.b32.xlu1 %v911_v28, 264 }
 0x10c   : > { %990 = vbcast.lane.b32.xlu0 %v988_v29, 256  ;;  %994 = vbcast.lane.b32.xlu1 %v988_v29, 264 }
 0x110   : > { %924 = vbcast.lane.b32.xlu0 %v922_v31, 256  ;;  %928 = vbcast.lane.b32.xlu1 %v922_v31, 264 }
 0x114   : > { %1001 = vbcast.lane.b32.xlu0 %v999_v32, 256  ;;  %1005 = vbcast.lane.b32.xlu1 %v999_v32, 264 }
 0x118   : > { %1012 = vbcast.lane.b32.xlu0 %v1010_v33, 256  ;;  %1016 = vbcast.lane.b32.xlu1 %v1010_v33, 264 }
 0x14e   : > { %v5503_v36 = vpop.permute.xlu0 %847  ;;  %v5507_v38 = vpop.permute.xlu1 %858 }
 0x14f   : > { %7522 = vst [vmem:[#allocation28_spill] sm:$0xff] %v5503_v36  ;;  %v1022_v37 = vmul.f32 %v5501_v35, %v5503_v36  ;;  %7523 = vst [vmem:[#allocation29_spill] sm:$0xff] %v5507_v38  ;;  %v1024_v39 = vmul.f32 %v5501_v35, %v5507_v38 }
 0x151   : > { %1086 = vrot.lane.b32.xlu0 %v1022_v37, %s5116_s16 }
 0x152   : > { %v5512_v40 = vpop.permute.xlu0 %851  ;;  %v5516_v42 = vpop.permute.xlu1 %862 }
 0x153   : > { %7524 = vst [vmem:[#allocation30_spill] sm:$0xff] %v5512_v40  ;;  %v1023_v41 = vmul.f32 %v5501_v35, %v5512_v40  ;;  %7525 = vst [vmem:[#allocation31_spill] sm:$0xff] %v5516_v42  ;;  %v1025_v43 = vmul.f32 %v5501_v35, %v5516_v42 }
 0x155   : > { %1090 = vrot.lane.b32.xlu0 %v1024_v39, %s5116_s16  ;;  %1088 = vrot.lane.b32.xlu1 %v1023_v41, %s5116_s16 }
 0x156   : > { %v5522_v44 = vpop.permute.xlu0 %869  ;;  %v5524_v45 = vpop.permute.xlu1 %873 }
 0x157   : > { %7526 = vst [vmem:[#allocation32_spill] sm:$0xff] %v5522_v44  ;;  %7527 = vst [vmem:[#allocation33_spill] sm:$0xff] %v5524_v45  ;;  %v1026_v46 = vmul.f32 %v5501_v35, %v5522_v44  ;;  %v1027_v47 = vmul.f32 %v5501_v35, %v5524_v45 }
 0x159   : > { %1092 = vrot.lane.b32.xlu1 %v1025_v43, %s5116_s16  ;;  %1094 = vrot.lane.b32.xlu0 %v1026_v46, %s5116_s16 }
 0x15a   : > { %v5532_v48 = vpop.permute.xlu0 %935  ;;  %v5534_v49 = vpop.permute.xlu1 %939 }
 0x15b   : > { %7528 = vst [vmem:[#allocation34_spill] sm:$0xff] %v5532_v48  ;;  %7529 = vst [vmem:[#allocation35_spill] sm:$0xff] %v5534_v49  ;;  %v1038_v50 = vmul.f32 %v5501_v35, %v5532_v48  ;;  %v1039_v51 = vmul.f32 %v5501_v35, %v5534_v49 }
 0x15d   : > { %1096 = vrot.lane.b32.xlu1 %v1027_v47, %s5116_s16  ;;  %1118 = vrot.lane.b32.xlu0 %v1038_v50, %s5116_s16 }
 0x15e   : > { %v5542_v52 = vpop.permute.xlu0 %946  ;;  %v5544_v53 = vpop.permute.xlu1 %950 }
 0x15f   : > { %7530 = vst [vmem:[#allocation36_spill] sm:$0xff] %v5542_v52  ;;  %7531 = vst [vmem:[#allocation37_spill] sm:$0xff] %v5544_v53  ;;  %v1040_v54 = vmul.f32 %v5501_v35, %v5542_v52  ;;  %v1041_v55 = vmul.f32 %v5501_v35, %v5544_v53 }
 0x161   : > { %1120 = vrot.lane.b32.xlu1 %v1039_v51, %s5116_s16  ;;  %1122 = vrot.lane.b32.xlu0 %v1040_v54, %s5116_s16  ;;  %v541_v51 = vrot.slane %v5497_v34, %v5470_v2 }
 0x162   : > { %v5552_v56 = vpop.permute.xlu0 %880  ;;  %v5554_v57 = vpop.permute.xlu1 %884 }
 0x163   : > { %7532 = vst [vmem:[#allocation38_spill] sm:$0xff] %v5552_v56  ;;  %7533 = vst [vmem:[#allocation39_spill] sm:$0xff] %v5554_v57  ;;  %v1028_v58 = vmul.f32 %v5501_v35, %v5552_v56  ;;  %v1029_v59 = vmul.f32 %v5501_v35, %v5554_v57 }
 0x165   : > { %1124 = vrot.lane.b32.xlu1 %v1041_v55, %s5116_s16  ;;  %1098 = vrot.lane.b32.xlu0 %v1028_v58, %s5116_s16 }
 0x166   : > { %v5562_v60 = vpop.permute.xlu0 %957  ;;  %v5564_v61 = vpop.permute.xlu1 %961 }
 0x167   : > { %7534 = vst [vmem:[#allocation40_spill] sm:$0xff] %v5562_v60  ;;  %7535 = vst [vmem:[#allocation41_spill] sm:$0xff] %v5564_v61  ;;  %v1042_v62 = vmul.f32 %v5501_v35, %v5562_v60  ;;  %v1043_v63 = vmul.f32 %v5501_v35, %v5564_v61 }
 0x169   : > { %1100 = vrot.lane.b32.xlu1 %v1029_v59, %s5116_s16  ;;  %1126 = vrot.lane.b32.xlu0 %v1042_v62, %s5116_s16 }
 0x16a   : > { %v5572_v4 = vpop.permute.xlu0 %891  ;;  %v5574_v5 = vpop.permute.xlu1 %895 }
 0x16b   : > { %7536 = vst [vmem:[#allocation42_spill] sm:$0xff] %v5572_v4  ;;  %7537 = vst [vmem:[#allocation43_spill] sm:$0xff] %v5574_v5  ;;  %v1030_v6 = vmul.f32 %v5501_v35, %v5572_v4  ;;  %v1031_v7 = vmul.f32 %v5501_v35, %v5574_v5 }
 0x16d   : > { %1128 = vrot.lane.b32.xlu1 %v1043_v63, %s5116_s16  ;;  %1102 = vrot.lane.b32.xlu0 %v1030_v6, %s5116_s16 }
 0x16e   : > { %v5582_v8 = vpop.permute.xlu0 %968  ;;  %v5584_v9 = vpop.permute.xlu1 %972 }
 0x16f   : > { %7538 = vst [vmem:[#allocation44_spill] sm:$0xff] %v5582_v8  ;;  %7539 = vst [vmem:[#allocation45_spill] sm:$0xff] %v5584_v9  ;;  %v1044_v10 = vmul.f32 %v5501_v35, %v5582_v8  ;;  %v1045_v11 = vmul.f32 %v5501_v35, %v5584_v9 }
 0x171   : > { %1104 = vrot.lane.b32.xlu1 %v1031_v7, %s5116_s16  ;;  %1130 = vrot.lane.b32.xlu0 %v1044_v10, %s5116_s16 }
 0x172   : > { %v5592_v12 = vpop.permute.xlu0 %902  ;;  %v5594_v14 = vpop.permute.xlu1 %906 }
 0x173   : > { %7540 = vst [vmem:[#allocation46_spill] sm:$0xff] %v5592_v12  ;;  %7541 = vst [vmem:[#allocation47_spill] sm:$0xff] %v5594_v14  ;;  %v1032_v15 = vmul.f32 %v5501_v35, %v5592_v12  ;;  %v1033_v16 = vmul.f32 %v5501_v35, %v5594_v14 }
 0x175   : > { %1132 = vrot.lane.b32.xlu1 %v1045_v11, %s5116_s16  ;;  %1106 = vrot.lane.b32.xlu0 %v1032_v15, %s5116_s16 }
 0x176   : > { %v5602_v17 = vpop.permute.xlu0 %979  ;;  %v5604_v18 = vpop.permute.xlu1 %983 }
 0x177   : > { %7542 = vst [vmem:[#allocation48_spill] sm:$0xff] %v5602_v17  ;;  %7543 = vst [vmem:[#allocation49_spill] sm:$0xff] %v5604_v18  ;;  %v1046_v19 = vmul.f32 %v5501_v35, %v5602_v17  ;;  %v1047_v20 = vmul.f32 %v5501_v35, %v5604_v18 }
 0x179   : > { %1108 = vrot.lane.b32.xlu1 %v1033_v16, %s5116_s16  ;;  %1134 = vrot.lane.b32.xlu0 %v1046_v19, %s5116_s16 }
 0x17a   : > { %v5612_v21 = vpop.permute.xlu0 %913  ;;  %v5614_v22 = vpop.permute.xlu1 %917 }
 0x17b   : > { %7544 = vst [vmem:[#allocation50_spill] sm:$0xff] %v5612_v21  ;;  %7545 = vst [vmem:[#allocation51_spill] sm:$0xff] %v5614_v22  ;;  %v1034_v23 = vmul.f32 %v5501_v35, %v5612_v21  ;;  %v1035_v24 = vmul.f32 %v5501_v35, %v5614_v22 }
 0x17d   : > { %1136 = vrot.lane.b32.xlu1 %v1047_v20, %s5116_s16  ;;  %1110 = vrot.lane.b32.xlu0 %v1034_v23, %s5116_s16 }
 0x17e   : > { %v5622_v25 = vpop.permute.xlu0 %990  ;;  %v5624_v26 = vpop.permute.xlu1 %994 }
 0x17f   : > { %7546 = vst [vmem:[#allocation52_spill] sm:$0xff] %v5622_v25  ;;  %7547 = vst [vmem:[#allocation53_spill] sm:$0xff] %v5624_v26  ;;  %v1048_v27 = vmul.f32 %v5501_v35, %v5622_v25  ;;  %v1049_v28 = vmul.f32 %v5501_v35, %v5624_v26 }
 0x181   : > { %1112 = vrot.lane.b32.xlu1 %v1035_v24, %s5116_s16  ;;  %1138 = vrot.lane.b32.xlu0 %v1048_v27, %s5116_s16 }
 0x182   : > { %v5632_v29 = vpop.permute.xlu0 %924  ;;  %v5634_v30 = vpop.permute.xlu1 %928 }
 0x183   : > { %7548 = vst [vmem:[#allocation54_spill] sm:$0xff] %v5632_v29  ;;  %7549 = vst [vmem:[#allocation55_spill] sm:$0xff] %v5634_v30  ;;  %v1036_v31 = vmul.f32 %v5501_v35, %v5632_v29  ;;  %v1037_v32 = vmul.f32 %v5501_v35, %v5634_v30 }
 0x185   : > { %1140 = vrot.lane.b32.xlu1 %v1049_v28, %s5116_s16  ;;  %1114 = vrot.lane.b32.xlu0 %v1036_v31, %s5116_s16 }
 0x186   : > { %v5642_v33 = vpop.permute.xlu0 %1001  ;;  %v5644_v37 = vpop.permute.xlu1 %1005 }
 0x187   : > { %7550 = vst [vmem:[#allocation56_spill] sm:$0xff] %v5642_v33  ;;  %7551 = vst [vmem:[#allocation57_spill] sm:$0xff] %v5644_v37  ;;  %v1050_v39 = vmul.f32 %v5501_v35, %v5642_v33  ;;  %v1051_v41 = vmul.f32 %v5501_v35, %v5644_v37 }
 0x189   : > { %1116 = vrot.lane.b32.xlu1 %v1037_v32, %s5116_s16  ;;  %1142 = vrot.lane.b32.xlu0 %v1050_v39, %s5116_s16 }
 0x18a   : > { %v5652_v43 = vpop.permute.xlu0 %1012  ;;  %v5654_v46 = vpop.permute.xlu1 %1016 }
 0x18b   : > { %7552 = vst [vmem:[#allocation58_spill] sm:$0xff] %v5652_v43  ;;  %7553 = vst [vmem:[#allocation59_spill] sm:$0xff] %v5654_v46  ;;  %v1052_v47 = vmul.f32 %v5501_v35, %v5652_v43  ;;  %v1053_v50 = vmul.f32 %v5501_v35, %v5654_v46 }
 0x18d   : > { %1144 = vrot.lane.b32.xlu1 %v1051_v41, %s5116_s16  ;;  %1146 = vrot.lane.b32.xlu0 %v1052_v47, %s5116_s16 }
 0x191   : > { %1148 = vrot.lane.b32.xlu1 %v1053_v50, %s5116_s16 }
 0x19e   : > { %v4511_v54 = vpop.f32.mrf.mxu1 }
 0x19f   : > { %v5665_v55 = vadd.f32 %v4511_v54, %v541_v51 }
 0x1a0   : > { %v615_v58 = vpop.f32.mrf.mxu1 }
 0x1a1   : > { %v5667_v59 = vadd.f32 %v615_v58, %v541_v51  ;;  %806 = vrot.lane.b32.xlu1 %v5665_v55, %s5116_s16  ;;  %v5117_v58 = vmov 1966171168  }
 0x1a2   : > { %v628_v0 = vunpack.c.l.s4 %v5117_v58 }
 0x1a3   : > { %7554 = vst [vmem:[#allocation60_spill] sm:$0xff] %v5667_v59  ;;  %804 = vrot.lane.b32.xlu0 %v5667_v59, %s5116_s16  ;;  %v626_v14 = vcombine.high %v5667_v59, %v5667_v59 }
 0x1a4   : > { %v629_v37 = vunpack.c.0.s8 %v628_v0 }
 0x1a6   : > { %v5720_v26 = vsub.s32 %v629_v37, %v5467_v1 }
 0x1a8   : > { %v633_v18 = vrot.slane %v5667_v59, %v5720_v26  ;;  %v640_v0 = vrot.slane %v626_v14, %v5720_v26  ;;  %v682_v61 = vrot.slane %v5665_v55, %v5720_v26 }
 0x1aa   : > { %v641_v58 = vcombine.high %v633_v18, %v633_v18  ;;  %v649_v53 = vrot.slane %v633_v18, %v5720_v26  ;;  %v642_v49 = vcombine.high %v640_v0, %v640_v0  ;;  %v690_v45 = vcombine.high %v682_v61, %v682_v61 }
 0x1ab   : > { %v5742_v42 = vrot.slane %v640_v0, %v5720_v26  ;;  %v698_v40 = vrot.slane %v682_v61, %v5720_v26 }
 0x1ac   : > { %v663_v37 = vrot.slane %v641_v58, %v5720_v26  ;;  %v671_v29 = vcombine.high %v649_v53, %v649_v53  ;;  %v5745_v14 = vrot.slane %v642_v49, %v5720_v26  ;;  %v5751_v58 = vrot.slane %v690_v45, %v5720_v26 }
 0x1ad   : > { %v727_v18 = vrot.slane %v649_v53, %v5470_v2  ;;  %v5760_v0 = vrot.slane %v5742_v42, %v5470_v2  ;;  %v759_v45 = vrot.slane %v698_v40, %v5470_v2 }
 0x1ae   : > { %v673_v33 = vcombine.high %v663_v37, %v663_v37  ;;  %v731_v17 = vrot.slane %v663_v37, %v5470_v2  ;;  %v735_v61 = vrot.slane %v671_v29, %v5470_v2  ;;  %v5767_v12 = vrot.slane %v5745_v14, %v5470_v2 }
 0x1af   : > { %v5782_v56 = vrot.slane %v5751_v58, %v5470_v2 }
 0x1b0   : > { %v5755_v21 = vrot.slane %v673_v33, %v5470_v2 }
 0x1c3   : > { %v5673_v62 = vpop.permute.xlu0 %1086 }
 0x1c7   : > { %v5675_v63 = vpop.permute.xlu1 %1088  ;;  %v5677_v6 = vpop.permute.xlu0 %1090 }
 0x1cb   : > { %v5679_v7 = vpop.permute.xlu1 %1092  ;;  %v5681_v34 = vpop.permute.xlu0 %1094 }
 0x1cf   : > { %v5683_v10 = vpop.permute.xlu1 %1096  ;;  %v5685_v11 = vpop.permute.xlu0 %1118 }
 0x1d3   : > { %v5687_v15 = vpop.permute.xlu1 %1120  ;;  %v5689_v16 = vpop.permute.xlu0 %1122 }
 0x1d7   : > { %v5691_v19 = vpop.permute.xlu1 %1124  ;;  %v5693_v20 = vpop.permute.xlu0 %1098 }
 0x1db   : > { %v1101_v23 = vpop.permute.xlu1 %1100  ;;  %v5695_v24 = vpop.permute.xlu0 %1126 }
 0x1df   : > { %v5697_v27 = vpop.permute.xlu1 %1128  ;;  %v5699_v31 = vpop.permute.xlu0 %1102 }
 0x1e3   : > { %v1105_v28 = vpop.permute.xlu1 %1104  ;;  %v5703_v39 = vpop.permute.xlu0 %1130 }
 0x1e7   : > { %v5701_v32 = vpop.permute.xlu1 %1132  ;;  %v5705_v47 = vpop.permute.xlu0 %1106 }
 0x1eb   : > { %v1109_v41 = vpop.permute.xlu1 %1108  ;;  %v5709_v51 = vpop.permute.xlu0 %1134 }
 0x1ef   : > { %v5707_v50 = vpop.permute.xlu1 %1136  ;;  %v5713_v13 = vpop.permute.xlu0 %1110 }
 0x1f3   : > { %v5711_v54 = vpop.permute.xlu1 %1112  ;;  %v5717_v30 = vpop.permute.xlu0 %1138 }
 0x1f7   : > { %v5715_v46 = vpop.permute.xlu1 %1140  ;;  %v5728_v9 = vpop.permute.xlu0 %1114 }
 0x1f8   : > { %7555 = vst [vmem:[#allocation61_spill] sm:$0xff] %v5728_v9 }
 0x1fb   : > { %v5722_v22 = vpop.permute.xlu1 %1116  ;;  %v5736_v57 = vpop.permute.xlu0 %1142 }
 0x1fc   : > { %7556 = vst [vmem:[#allocation62_spill] sm:$0xff] %v5736_v57 }
 0x1ff   : > { %v5730_v5 = vpop.permute.xlu1 %1144  ;;  %v5748_v25 = vpop.permute.xlu0 %1146 }
 0x200   : > { %7558 = vst [vmem:[#allocation64_spill] sm:$0xff] %v5748_v25  ;;  %v720_v25 = vcombine.high %v698_v40, %v698_v40 }
 0x203   : > { %v5739_v43 = vpop.permute.xlu1 %1148 }
 0x204   : > { %7557 = vst [vmem:[#allocation63_spill] sm:$0xff] %v5739_v43 }
 0x213   : > { %v5762_v49 = vpop.permute.xlu1 %806 }
 0x214   : > { %v811_v53 = vadd.f32 %v5762_v49, %v727_v18  ;;  %v817_v33 = vadd.f32 %v5762_v49, %v5755_v21  ;;  %v813_v37 = vadd.f32 %v5762_v49, %v731_v17  ;;  %v819_v8 = vadd.f32 %v5762_v49, %v5760_v0 }
 0x215   : > { %v815_v4 = vadd.f32 %v5762_v49, %v735_v61  ;;  %v821_v29 = vadd.f32 %v5762_v49, %v5767_v12  ;;  %v827_v60 = vadd.f32 %v5762_v49, %v759_v45  ;;  %v5786_v36 = vpop.permute.xlu0 %804  ;;  %v829_v1 = vadd.f32 %v5762_v49, %v5782_v56 }
 0x216   : > { %v1183_v52 = vadd.f32 %v5675_v63, %v811_v53  ;;  %v1189_v48 = vadd.f32 %v1101_v23, %v817_v33  ;;  %v1185_v44 = vadd.f32 %v5679_v7, %v813_v37  ;;  %v1191_v38 = vadd.f32 %v1105_v28, %v819_v8 }
 0x217   : > { %v1187_v59 = vadd.f32 %v5683_v10, %v815_v4  ;;  %v1193_v3 = vadd.f32 %v1109_v41, %v821_v29  ;;  %v1199_v8 = vadd.f32 %v5687_v15, %v827_v60  ;;  %v810_v28 = vadd.f32 %v5786_v36, %v727_v18 }
 0x218   : > { %vm1215_vm1 = vcmp.gt.f32.partialorder %v1183_v52, 0.0  ;;  %v1247_v57 = vmul.f32 0.2, %v1183_v52  ;;  %vm1221_vm2 = vcmp.gt.f32.partialorder %v1189_v48, 0.0  ;;  %v1253_v9 = vmul.f32 0.2, %v1189_v48 }
 0x219   : > { %vm1217_vm3 = vcmp.gt.f32.partialorder %v1185_v44, 0.0  ;;  %v1249_v43 = vmul.f32 0.2, %v1185_v44  ;;  %vm1223_vm4 = vcmp.gt.f32.partialorder %v1191_v38, 0.0  ;;  %v1255_v63 = vmul.f32 0.2, %v1191_v38 }
 0x21a   : > { %v1279_v23 = vsel %vm1215_vm1, %v1183_v52, %v1247_v57  ;;  %v1285_v7 = vsel %vm1221_vm2, %v1189_v48, %v1253_v9  ;;  %v1251_v41 = vmul.f32 0.2, %v1187_v59  ;;  %vm1219_vm5 = vcmp.gt.f32.partialorder %v1187_v59, 0.0 }
 0x21b   : > { %v5794_v4 = vmul.f32 %v1279_v23, %v5501_v35  ;;  %v5797_v10 = vmul.f32 %v1285_v7, %v5501_v35  ;;  %v1281_v40 = vsel %vm1217_vm3, %v1185_v44, %v1249_v43  ;;  %v1287_v53 = vsel %vm1223_vm4, %v1191_v38, %v1255_v63 }
 0x21c   : > { %v5804_v48 = vmul.f32 %v1281_v40, %v5501_v35  ;;  %vm1225_vm6 = vcmp.gt.f32.partialorder %v1193_v3, 0.0  ;;  %v1257_v52 = vmul.f32 0.2, %v1193_v3  ;;  %v767_v57 = vrot.slane %v720_v25, %v5470_v2 }
 0x21d   : > { %1796 = vrot.lane.b32.xlu1 %v5794_v4, %s5118_s8  ;;  %1388 = vrot.lane.b32.xlu0 %v5797_v10, %s5116_s16  ;;  %v1263_v60 = vmul.f32 0.2, %v1199_v8  ;;  %v1182_v44 = vadd.f32 %v5673_v62, %v810_v28  ;;  %v1201_v38 = vadd.f32 %v5691_v19, %v829_v1  ;;  %v812_v9 = vadd.f32 %v5786_v36, %v731_v17 }
 0x21e   : > { %v5811_v43 = vmul.f32 %v1287_v53, %v5501_v35  ;;  %v1283_v15 = vsel %vm1219_vm5, %v1187_v59, %v1251_v41  ;;  %vm1231_vm7 = vcmp.gt.f32.partialorder %v1199_v8, 0.0  ;;  %v814_v18 = vadd.f32 %v5786_v36, %v735_v61 }
 0x21f   : > { %v1289_v33 = vsel %vm1225_vm6, %v1193_v3, %v1257_v52  ;;  %v1246_v37 = vmul.f32 0.2, %v1182_v44  ;;  %vm1214_vm8 = vcmp.gt.f32.partialorder %v1182_v44, 0.0  ;;  %v1184_v1 = vadd.f32 %v5677_v6, %v812_v9 }
 0x220   : > { %v831_v17 = vadd.f32 %v5762_v49, %v767_v57  ;;  %v5821_v25 = vmul.f32 %v1283_v15, %v5501_v35  ;;  %v1295_v59 = vsel %vm1231_vm7, %v1199_v8, %v1263_v60  ;;  %v1265_v62 = vmul.f32 0.2, %v1201_v38 }
 0x221   : > { %1800 = vrot.lane.b32.xlu1 %v5804_v48, %s5118_s8  ;;  %1392 = vrot.lane.b32.xlu0 %v5811_v43, %s5116_s16  ;;  %v826_v19 = vadd.f32 %v5786_v36, %v759_v45  ;;  %v5825_v3 = vmul.f32 %v1289_v33, %v5501_v35  ;;  %vm1233_vm9 = vcmp.gt.f32.partialorder %v1201_v38, 0.0  ;;  %v1248_v61 = vmul.f32 0.2, %v1184_v1 }
 0x222   : > { %v1186_v29 = vadd.f32 %v5681_v34, %v814_v18  ;;  %v675_v63 = vcombine.high %v5665_v55, %v5665_v55  ;;  %v1278_v6 = vsel %vm1214_vm8, %v1182_v44, %v1246_v37  ;;  %vm1216_vm10 = vcmp.gt.f32.partialorder %v1184_v1, 0.0 }
 0x223   : > { %v1203_v45 = vadd.f32 %v5697_v27, %v831_v17  ;;  %v722_v23 = vcombine.high %v5751_v58, %v5751_v58  ;;  %v5838_v7 = vmul.f32 %v1295_v59, %v5501_v35  ;;  %v1297_v34 = vsel %vm1233_vm9, %v1201_v38, %v1265_v62 }
 0x224   : > { %v1198_v8 = vadd.f32 %v5685_v11, %v826_v19  ;;  %v5842_v28 = vmul.f32 %v1278_v6, %v5501_v35  ;;  %v1280_v40 = vsel %vm1216_vm10, %v1184_v1, %v1248_v61  ;;  %v1250_v41 = vmul.f32 0.2, %v1186_v29 }
 0x225   : > { %1804 = vrot.lane.b32.xlu1 %v5821_v25, %s5118_s8  ;;  %1396 = vrot.lane.b32.xlu0 %v5825_v3, %s5116_s16  ;;  %v828_v53 = vadd.f32 %v5786_v36, %v5782_v56  ;;  %vm1218_vm11 = vcmp.gt.f32.partialorder %v1186_v29, 0.0  ;;  %v689_v27 = vrot.slane %v675_v63, %v5720_v26  ;;  %v5852_v58 = vmul.f32 %v1297_v34, %v5501_v35 }
 0x226   : > { %vm1235_vm12 = vcmp.gt.f32.partialorder %v1203_v45, 0.0  ;;  %v771_v11 = vrot.slane %v722_v23, %v5470_v2  ;;  %v5856_v52 = vmul.f32 %v1280_v40, %v5501_v35  ;;  %v1267_v60 = vmul.f32 0.2, %v1203_v45 }
 0x227   : > { %vm1230_vm13 = vcmp.gt.f32.partialorder %v1198_v8, 0.0  ;;  %v1262_v56 = vmul.f32 0.2, %v1198_v8  ;;  %v1282_v44 = vsel %vm1218_vm11, %v1186_v29, %v1250_v41  ;;  %v1200_v38 = vadd.f32 %v5689_v16, %v828_v53 }
 0x228   : > { %v833_v9 = vadd.f32 %v5762_v49, %v771_v11  ;;  %v816_v15 = vadd.f32 %v5786_v36, %v5755_v21  ;;  %v5863_v18 = vrot.slane %v689_v27, %v5720_v26  ;;  %v5870_v33 = vmul.f32 %v1282_v44, %v5501_v35 }
 0x229   : > { %1828 = vrot.lane.b32.xlu1 %v5838_v7, %s5118_s8  ;;  %1794 = vrot.lane.b32.xlu0 %v5842_v28, %s5118_s8  ;;  %v1299_v37 = vsel %vm1235_vm12, %v1203_v45, %v1267_v60  ;;  %v1294_v1 = vsel %vm1230_vm13, %v1198_v8, %v1262_v56  ;;  %v1264_v16 = vmul.f32 0.2, %v1200_v38  ;;  %v830_v21 = vadd.f32 %v5786_v36, %v767_v57 }
 0x22a   : > { %v1205_v17 = vadd.f32 %v5701_v32, %v833_v9  ;;  %v1188_v59 = vadd.f32 %v5693_v20, %v816_v15  ;;  %vm1232_vm14 = vcmp.gt.f32.partialorder %v1200_v38, 0.0  ;;  %v775_v62 = vrot.slane %v5863_v18, %v5470_v2 }
 0x22b   : > { %v672_v19 = vcombine.high %v5742_v42, %v5742_v42  ;;  %v691_v61 = vcombine.high %v689_v27, %v689_v27  ;;  %v5884_v32 = vmul.f32 %v1299_v37, %v5501_v35  ;;  %v5887_v20 = vmul.f32 %v1294_v1, %v5501_v35 }
 0x22c   : > { %v818_v57 = vadd.f32 %v5786_v36, %v5760_v0  ;;  %v835_v29 = vadd.f32 %v5762_v49, %v775_v62  ;;  %v1296_v63 = vsel %vm1232_vm14, %v1200_v38, %v1264_v16  ;;  %v1252_v6 = vmul.f32 0.2, %v1188_v59 }
 0x22d   : > { %1832 = vrot.lane.b32.xlu1 %v5852_v58, %s5118_s8  ;;  %1798 = vrot.lane.b32.xlu0 %v5856_v52, %s5118_s8  ;;  %v1202_v45 = vadd.f32 %v5695_v24, %v830_v21  ;;  %vm1237_vm15 = vcmp.gt.f32.partialorder %v1205_v17, 0.0  ;;  %vm1220_vm1 = vcmp.gt.f32.partialorder %v1188_v59, 0.0  ;;  %v832_v42 = vadd.f32 %v5786_v36, %v771_v11 }
 0x22e   : > { %v751_v23 = vrot.slane %v672_v19, %v5470_v2  ;;  %v719_v0 = vrot.slane %v691_v61, %v5720_v26  ;;  %v5901_v34 = vmul.f32 %v1296_v63, %v5501_v35  ;;  %v1190_v8 = vadd.f32 %v5699_v31, %v818_v57 }
 0x22f   : > { %v1207_v24 = vadd.f32 %v5707_v50, %v835_v29  ;;  %v1284_v41 = vsel %vm1220_vm1, %v1188_v59, %v1252_v6  ;;  %v1266_v53 = vmul.f32 0.2, %v1202_v45  ;;  %vm1234_vm2 = vcmp.gt.f32.partialorder %v1202_v45, 0.0 }
 0x230   : > { %v823_v27 = vadd.f32 %v5762_v49, %v751_v23  ;;  %v1204_v11 = vadd.f32 %v5703_v39, %v832_v42  ;;  %v779_v60 = vrot.slane %v719_v0, %v5470_v2  ;;  %v674_v31 = vcombine.high %v5745_v14, %v5745_v14 }
 0x231   : > { %1808 = vrot.lane.b32.xlu1 %v5797_v10, %s5118_s8  ;;  %1802 = vrot.lane.b32.xlu0 %v5870_v33, %s5118_s8  ;;  %v1269_v10 = vmul.f32 0.2, %v1205_v17  ;;  %v5918_v56 = vmul.f32 %v1284_v41, %v5501_v35  ;;  %vm1222_vm3 = vcmp.gt.f32.partialorder %v1190_v8, 0.0  ;;  %v1254_v44 = vmul.f32 0.2, %v1190_v8 }
 0x232   : > { %v1298_v38 = vsel %vm1234_vm2, %v1202_v45, %v1266_v53  ;;  %v1195_v9 = vadd.f32 %v5711_v54, %v823_v27  ;;  %v837_v15 = vadd.f32 %v5762_v49, %v779_v60  ;;  %vm1239_vm4 = vcmp.gt.f32.partialorder %v1207_v24, 0.0 }
 0x233   : > { %v1301_v40 = vsel %vm1237_vm15, %v1205_v17, %v1269_v10  ;;  %v820_v39 = vadd.f32 %v5786_v36, %v5767_v12  ;;  %v755_v14 = vrot.slane %v674_v31, %v5470_v2  ;;  %v721_v37 = vcombine.high %v5863_v18, %v5863_v18 }
 0x234   : > { %v5915_v50 = vmul.f32 %v1301_v40, %v5501_v35  ;;  %v5932_v1 = vmul.f32 %v1298_v38, %v5501_v35  ;;  %v1286_v54 = vsel %vm1222_vm3, %v1190_v8, %v1254_v44  ;;  %vm1236_vm5 = vcmp.gt.f32.partialorder %v1204_v11, 0.0 }
 0x235   : > { %1836 = vrot.lane.b32.xlu1 %v5884_v32, %s5118_s8  ;;  %1826 = vrot.lane.b32.xlu0 %v5887_v20, %s5118_s8  ;;  %v1268_v16 = vmul.f32 0.2, %v1204_v11  ;;  %v1259_v59 = vmul.f32 0.2, %v1195_v9  ;;  %v1209_v12 = vadd.f32 %v5715_v46, %v837_v15  ;;  %v834_v21 = vadd.f32 %v5786_v36, %v775_v62 }
 0x236   : > { %vm1227_vm6 = vcmp.gt.f32.partialorder %v1195_v9, 0.0  ;;  %v1192_v19 = vadd.f32 %v5705_v47, %v820_v39  ;;  %v825_v61 = vadd.f32 %v5762_v49, %v755_v14  ;;  %v783_v18 = vrot.slane %v721_v37, %v5470_v2 }
 0x237   : > { %v723_v57 = vcombine.high %v719_v0, %v719_v0  ;;  %v5944_v29 = vmul.f32 %v1286_v54, %v5501_v35  ;;  %v1300_v62 = vsel %vm1236_vm5, %v1204_v11, %v1268_v16  ;;  %v822_v47 = vadd.f32 %v5786_v36, %v751_v23 }
 0x238   : > { %v1291_v63 = vsel %vm1227_vm6, %v1195_v9, %v1259_v59  ;;  %v1273_v10 = vmul.f32 0.2, %v1209_v12  ;;  %v1206_v6 = vadd.f32 %v5709_v51, %v834_v21  ;;  %v839_v45 = vadd.f32 %v5762_v49, %v783_v18 }
 0x239   : > { %1812 = vrot.lane.b32.xlu1 %v5811_v43, %s5118_s8  ;;  %1830 = vrot.lane.b32.xlu0 %v5901_v34, %s5118_s8  ;;  %v1271_v43 = vmul.f32 0.2, %v1207_v24  ;;  %vm1241_vm7 = vcmp.gt.f32.partialorder %v1209_v12, 0.0  ;;  %v1197_v42 = vadd.f32 %v5722_v22, %v825_v61  ;;  %vm1224_vm8 = vcmp.gt.f32.partialorder %v1192_v19, 0.0 }
 0x23a   : > { %v5958_v0 = vmul.f32 %v1300_v62, %v5501_v35  ;;  %v5961_v23 = vmul.f32 %v1291_v63, %v5501_v35  ;;  %v1194_v51 = vadd.f32 %v5713_v13, %v822_v47  ;;  %v787_v8 = vrot.slane %v723_v57, %v5470_v2  ;;  %v7561_v63 = vld [vmem:[#allocation62_spill] sm:$0xff] }
 0x23b   : > { %v1303_v17 = vsel %vm1239_vm4, %v1207_v24, %v1271_v43  ;;  %v1305_v24 = vsel %vm1241_vm7, %v1209_v12, %v1273_v10  ;;  %v1270_v40 = vmul.f32 0.2, %v1206_v6  ;;  %v1211_v22 = vadd.f32 %v5730_v5, %v839_v45  ;;  %v7559_v43 = vld [vmem:[#allocation63_spill] sm:$0xff] }
 0x23c   : > { %v5947_v46 = vmul.f32 %v1303_v17, %v5501_v35  ;;  %v836_v41 = vadd.f32 %v5786_v36, %v779_v60  ;;  %vm1238_vm9 = vcmp.gt.f32.partialorder %v1206_v6, 0.0  ;;  %v1261_v27 = vmul.f32 0.2, %v1197_v42 }
 0x23d   : > { %1840 = vrot.lane.b32.xlu1 %v5915_v50, %s5118_s8  ;;  %1806 = vrot.lane.b32.xlu0 %v5918_v56, %s5118_s8  ;;  %v841_v11 = vadd.f32 %v5762_v49, %v787_v8  ;;  %vm1229_vm10 = vcmp.gt.f32.partialorder %v1197_v42, 0.0  ;;  %v5973_v13 = vmul.f32 %v1305_v24, %v5501_v35  ;;  %vm1226_vm11 = vcmp.gt.f32.partialorder %v1194_v51, 0.0 }
 0x23e   : > { %v1258_v31 = vmul.f32 0.2, %v1194_v51  ;;  %v1302_v60 = vsel %vm1238_vm9, %v1206_v6, %v1270_v40  ;;  %vm1243_vm12 = vcmp.gt.f32.partialorder %v1211_v22, 0.0  ;;  %v1275_v44 = vmul.f32 0.2, %v1211_v22 }
 0x23f   : > { %v1293_v38 = vsel %vm1229_vm10, %v1197_v42, %v1261_v27  ;;  %v1208_v49 = vadd.f32 %v5717_v30, %v836_v41  ;;  %v1213_v9 = vadd.f32 %v7559_v43, %v841_v11  ;;  %v824_v15 = vadd.f32 %v5786_v36, %v755_v14  ;;  %v7560_v30 = vld [vmem:[#allocation61_spill] sm:$0xff] }
 0x240   : > { %v1334_v39 = vmul.f32 %v1302_v60, %v5501_v35  ;;  %v5987_v37 = vmul.f32 %v1293_v38, %v5501_v35  ;;  %v1290_v54 = vsel %vm1226_vm11, %v1194_v51, %v1258_v31  ;;  %v1307_v16 = vsel %vm1243_vm12, %v1211_v22, %v1275_v44 }
 0x241   : > { %1834 = vrot.lane.b32.xlu0 %v5932_v1, %s5118_s8  ;;  %1816 = vrot.lane.b32.xlu1 %v5825_v3, %s5118_s8  ;;  %v1256_v3 = vmul.f32 0.2, %v1192_v19  ;;  %v1272_v17 = vmul.f32 0.2, %v1208_v49  ;;  %v1277_v59 = vmul.f32 0.2, %v1213_v9  ;;  %v1196_v12 = vadd.f32 %v7560_v30, %v824_v15 }
 0x242   : > { %v838_v21 = vadd.f32 %v5786_v36, %v783_v18  ;;  %vm1240_vm13 = vcmp.gt.f32.partialorder %v1208_v49, 0.0  ;;  %vm1245_vm14 = vcmp.gt.f32.partialorder %v1213_v9, 0.0  ;;  %v1322_v14 = vmul.f32 %v1290_v54, %v5501_v35 }
 0x243   : > { %v1288_v53 = vsel %vm1224_vm8, %v1192_v19, %v1256_v3  ;;  %v5996_v19 = vmul.f32 %v1307_v16, %v5501_v35  ;;  %v840_v61 = vadd.f32 %v5786_v36, %v787_v8  ;;  %v1304_v57 = vsel %vm1240_vm13, %v1208_v49, %v1272_v17  ;;  %v7562_v36 = vld [vmem:[#allocation64_spill] sm:$0xff] }
 0x244   : > { %v5976_v5 = vmul.f32 %v1288_v53, %v5501_v35  ;;  %v1309_v62 = vsel %vm1245_vm14, %v1213_v9, %v1277_v59  ;;  %v1260_v47 = vmul.f32 0.2, %v1196_v12  ;;  %v1210_v10 = vadd.f32 %v7561_v63, %v838_v21 }
 0x245   : > { %1810 = vrot.lane.b32.xlu0 %v5944_v29, %s5118_s8  ;;  %1844 = vrot.lane.b32.xlu1 %v5947_v46, %s5118_s8  ;;  %vm1228_vm15 = vcmp.gt.f32.partialorder %v1196_v12, 0.0  ;;  %v6004_v18 = vmul.f32 %v1304_v57, %v5501_v35  ;;  %v6007_v6 = vmul.f32 %v1309_v62, %v5501_v35  ;;  %v1212_v42 = vadd.f32 %v7562_v36, %v840_v61 }
 0x246   : > { %v1292_v45 = vsel %vm1228_vm15, %v1196_v12, %v1260_v47  ;;  %v1274_v3 = vmul.f32 0.2, %v1210_v10  ;;  %vm1242_vm1 = vcmp.gt.f32.partialorder %v1210_v10, 0.0  ;;  %vm1609_vm3 = vcmask 130112  }
 0x247   : > { %v6015_v51 = vmul.f32 %v1292_v45, %v5501_v35  ;;  %v1276_v24 = vmul.f32 0.2, %v1212_v42  ;;  %vm1244_vm2 = vcmp.gt.f32.partialorder %v1212_v42, 0.0  ;;  %vm1746_vm4 = vcmask 1041409  }
 0x248   : > { %v1306_v8 = vsel %vm1242_vm1, %v1210_v10, %v1274_v3  ;;  %vm1748_vm5 = vcmask 1042434   ;;  %vm1750_vm6 = vcmask 1043459   ;;  %vm1752_vm7 = vcmask 1044484  }
 0x249   : > { %1838 = vrot.lane.b32.xlu0 %v5958_v0, %s5118_s8  ;;  %1820 = vrot.lane.b32.xlu1 %v5961_v23, %s5118_s8  ;;  %v6022_v40 = vmul.f32 %v1306_v8, %v5501_v35  ;;  %v1308_v22 = vsel %vm1244_vm2, %v1212_v42, %v1276_v24  ;;  %vm1754_vm8 = vcmask 1045509   ;;  %vm1756_vm9 = vcmask 1046534  }
 0x24a   : > { %v6029_v41 = vmul.f32 %v1308_v22, %v5501_v35  ;;  %vm1758_vm10 = vcmask 1047559   ;;  %vm1771_vm12 = vcmask 130048  }
 0x24d   : > { %1848 = vrot.lane.b32.xlu1 %v5973_v13, %s5118_s8  ;;  %1814 = vrot.lane.b32.xlu0 %v5976_v5, %s5118_s8 }
 0x251   : > { %1842 = vrot.lane.b32.xlu0 %v1334_v39, %s5118_s8  ;;  %1824 = vrot.lane.b32.xlu1 %v5987_v37, %s5118_s8 }
 0x255   : > { %1818 = vrot.lane.b32.xlu0 %v1322_v14, %s5118_s8  ;;  %1852 = vrot.lane.b32.xlu1 %v5996_v19, %s5118_s8 }
 0x259   : > { %1846 = vrot.lane.b32.xlu0 %v6004_v18, %s5118_s8  ;;  %1856 = vrot.lane.b32.xlu1 %v6007_v6, %s5118_s8 }
 0x25d   : > { %1376 = vrot.lane.b32.xlu1 %v5794_v4, %s5116_s16  ;;  %1822 = vrot.lane.b32.xlu0 %v6015_v51, %s5118_s8 }
 0x261   : > { %1380 = vrot.lane.b32.xlu1 %v5804_v48, %s5116_s16  ;;  %1850 = vrot.lane.b32.xlu0 %v6022_v40, %s5118_s8 }
 0x265   : > { %1384 = vrot.lane.b32.xlu1 %v5821_v25, %s5116_s16  ;;  %1854 = vrot.lane.b32.xlu0 %v6029_v41, %s5118_s8 }
 0x269   : > { %1408 = vrot.lane.b32.xlu1 %v5838_v7, %s5116_s16  ;;  %1374 = vrot.lane.b32.xlu0 %v5842_v28, %s5116_s16 }
 0x26d   : > { %1412 = vrot.lane.b32.xlu1 %v5852_v58, %s5116_s16  ;;  %1378 = vrot.lane.b32.xlu0 %v5856_v52, %s5116_s16 }
 0x271   : > { %1416 = vrot.lane.b32.xlu1 %v5884_v32, %s5116_s16  ;;  %1382 = vrot.lane.b32.xlu0 %v5870_v33, %s5116_s16 }
 0x275   : > { %1420 = vrot.lane.b32.xlu1 %v5915_v50, %s5116_s16  ;;  %1406 = vrot.lane.b32.xlu0 %v5887_v20, %s5116_s16 }
 0x279   : > { %1424 = vrot.lane.b32.xlu1 %v5947_v46, %s5116_s16  ;;  %1410 = vrot.lane.b32.xlu0 %v5901_v34, %s5116_s16 }
 0x27d   : > { %1386 = vrot.lane.b32.xlu1 %v5918_v56, %s5116_s16 }
 0x281   : > { %1414 = vrot.lane.b32.xlu1 %v5932_v1, %s5116_s16 }
 0x285   : > { %1390 = vrot.lane.b32.xlu1 %v5944_v29, %s5116_s16 }
 0x289   : > { %1418 = vrot.lane.b32.xlu1 %v5958_v0, %s5116_s16 }
 0x28d   : > { %1394 = vrot.lane.b32.xlu1 %v5976_v5, %s5116_s16 }
 0x28f   : > { %v1797_v35 = vpop.permute.xlu1 %1796  ;;  %v6065_v4 = vpop.permute.xlu0 %1388 }
 0x290   : > { %v1893_v60 = vsel %vm542_vm0, %v1797_v35, 0.0 }
 0x291   : > { %1422 = vrot.lane.b32.xlu1 %v1334_v39, %s5116_s16 }
 0x293   : > { %v1801_v48 = vpop.permute.xlu1 %1800  ;;  %v6068_v25 = vpop.permute.xlu0 %1392 }
 0x294   : > { %v1899_v58 = vsel %vm542_vm0, %v1801_v48, 0.0 }
 0x295   : > { %1398 = vrot.lane.b32.xlu1 %v1322_v14, %s5116_s16 }
 0x297   : > { %v1805_v7 = vpop.permute.xlu1 %1804  ;;  %v6071_v28 = vpop.permute.xlu0 %1396 }
 0x298   : > { %1900 = vadd.xlane.f32.xlu0 %v1899_v58  ;;  %v1905_v49 = vsel %vm542_vm0, %v1805_v7, 0.0 }
 0x29b   : > { %v1829_v52 = vpop.permute.xlu1 %1828  ;;  %v1795_v32 = vpop.permute.xlu0 %1794 }
 0x29c   : > { %v1941_v33 = vsel %vm542_vm0, %v1829_v52, 0.0  ;;  %v1890_v31 = vsel %vm542_vm0, %v1795_v32, 0.0 }
 0x29d   : > { %1942 = vadd.xlane.f32.xlu0 %v1941_v33 }
 0x29f   : > { %v1833_v20 = vpop.permute.xlu1 %1832  ;;  %v1799_v50 = vpop.permute.xlu0 %1798 }
 0x2a0   : > { %v1947_v34 = vsel %vm542_vm0, %v1833_v20, 0.0  ;;  %v1896_v44 = vsel %vm542_vm0, %v1799_v50, 0.0 }
 0x2a1   : > { %1948 = vadd.xlane.f32.xlu0 %v1947_v34 }
 0x2a3   : > { %v1809_v56 = vpop.permute.xlu1 %1808  ;;  %v1803_v46 = vpop.permute.xlu0 %1802 }
 0x2a4   : > { %v1902_v43 = vsel %vm542_vm0, %v1803_v46, 0.0  ;;  %v1911_v9 = vsel %vm542_vm0, %v1809_v56, 0.0 }
 0x2a7   : > { %v1837_v1 = vpop.permute.xlu1 %1836  ;;  %v1827_v53 = vpop.permute.xlu0 %1826 }
 0x2a8   : > { %v1953_v29 = vsel %vm542_vm0, %v1837_v1, 0.0  ;;  %v1938_v15 = vsel %vm542_vm0, %v1827_v53, 0.0 }
 0x2a9   : > { %1954 = vadd.xlane.f32.xlu0 %v1953_v29 }
 0x2ab   : > { %v1813_v0 = vpop.permute.xlu1 %1812  ;;  %v1831_v5 = vpop.permute.xlu0 %1830 }
 0x2ac   : > { %v1917_v54 = vsel %vm542_vm0, %v1813_v0, 0.0  ;;  %v1944_v59 = vsel %vm542_vm0, %v1831_v5, 0.0 }
 0x2af   : > { %v1841_v27 = vpop.permute.xlu1 %1840  ;;  %v1807_v38 = vpop.permute.xlu0 %1806 }
 0x2b0   : > { %v1959_v11 = vsel %vm542_vm0, %v1841_v27, 0.0  ;;  %v1908_v16 = vsel %vm542_vm0, %v1807_v38, 0.0 }
 0x2b1   : > { %1960 = vadd.xlane.f32.xlu0 %v1959_v11 }
 0x2b3   : > { %v1835_v39 = vpop.permute.xlu0 %1834  ;;  %v1817_v61 = vpop.permute.xlu1 %1816 }
 0x2b4   : > { %v1950_v30 = vsel %vm542_vm0, %v1835_v39, 0.0  ;;  %v1923_v62 = vsel %vm542_vm0, %v1817_v61, 0.0 }
 0x2b5   : > { %1891 = vadd.xlane.f32.xlu0 %v1890_v31 }
 0x2b7   : > { %v1811_v17 = vpop.permute.xlu0 %1810  ;;  %v1845_v47 = vpop.permute.xlu1 %1844 }
 0x2b8   : > { %v1914_v12 = vsel %vm542_vm0, %v1811_v17, 0.0 }
 0x2b9   : > { %1894 = vadd.xlane.f32.xlu1 %v1893_v60  ;;  %1897 = vadd.xlane.f32.xlu0 %v1896_v44 }
 0x2bb   : > { %v1839_v21 = vpop.permute.xlu0 %1838  ;;  %v1821_v3 = vpop.permute.xlu1 %1820 }
 0x2bc   : > { %v1956_v14 = vsel %vm542_vm0, %v1839_v21, 0.0 }
 0x2bd   : > { %1906 = vadd.xlane.f32.xlu1 %v1905_v49  ;;  %1903 = vadd.xlane.f32.xlu0 %v1902_v43 }
 0x2bf   : > { %v1815_v57 = vpop.permute.xlu0 %1814 }
 0x2c0   : > { %v1920_v63 = vsel %vm542_vm0, %v1815_v57, 0.0 }
 0x2c1   : > { %1912 = vadd.xlane.f32.xlu1 %v1911_v9  ;;  %1939 = vadd.xlane.f32.xlu0 %v1938_v15 }
 0x2c3   : > { %v1843_v10 = vpop.permute.xlu0 %1842 }
 0x2c4   : > { %v1962_v45 = vsel %vm542_vm0, %v1843_v10, 0.0 }
 0x2c5   : > { %1918 = vadd.xlane.f32.xlu1 %v1917_v54  ;;  %1909 = vadd.xlane.f32.xlu0 %v1908_v16 }
 0x2c7   : > { %v1819_v42 = vpop.permute.xlu0 %1818 }
 0x2c8   : > { %v1926_v32 = vsel %vm542_vm0, %v1819_v42, 0.0 }
 0x2c9   : > { %1945 = vadd.xlane.f32.xlu1 %v1944_v59  ;;  %1951 = vadd.xlane.f32.xlu0 %v1950_v30 }
 0x2cb   : > { %v1847_v24 = vpop.permute.xlu0 %1846 }
 0x2cc   : > { %v1968_v34 = vsel %vm542_vm0, %v1847_v24, 0.0 }
 0x2cd   : > { %1915 = vadd.xlane.f32.xlu0 %v1914_v12 }
 0x2cf   : > { %v1823_v35 = vpop.permute.xlu0 %1822 }
 0x2d0   : > { %v1932_v43 = vsel %vm542_vm0, %v1823_v35, 0.0 }
 0x2d1   : > { %1957 = vadd.xlane.f32.xlu0 %v1956_v14 }
 0x2d3   : > { %v1851_v7 = vpop.permute.xlu0 %1850 }
 0x2d7   : > { %v1855_v58 = vpop.permute.xlu0 %1854 }
 0x2d8   : > { %v1980_v39 = vsel %vm542_vm0, %v1855_v58, 0.0 }
 0x2da   : > { %1426 = vrot.lane.b32.xlu1 %v6004_v18, %s5116_s16  ;;  %v1965_v18 = vsel %vm542_vm0, %v1845_v47, 0.0 }
 0x2de   : > { %1428 = vrot.lane.b32.xlu1 %v5973_v13, %s5116_s16  ;;  %v1849_v13 = vpop.permute.xlu1 %1848 }
 0x2df   : > { %v1971_v50 = vsel %vm542_vm0, %v1849_v13, 0.0 }
 0x2e7   : > { %1400 = vrot.lane.b32.xlu0 %v5961_v23, %s5116_s16  ;;  %v1825_v23 = vpop.permute.xlu1 %1824 }
 0x2e8   : > { %v1935_v17 = vsel %vm542_vm0, %v1825_v23, 0.0 }
 0x2eb   : > { %v1853_v36 = vpop.permute.xlu1 %1852 }
 0x2ec   : > { %v1977_v21 = vsel %vm542_vm0, %v1853_v36, 0.0 }
 0x2ef   : > { %v1857_v8 = vpop.permute.xlu1 %1856 }
 0x2f0   : > { %v1983_v57 = vsel %vm542_vm0, %v1857_v8, 0.0 }
 0x2f3   : > { %v1377_v22 = vpop.permute.xlu1 %1376 }
 0x2f7   : > { %v6109_v48 = vpop.permute.xlu1 %1380 }
 0x302   : > { %1924 = vadd.xlane.f32.xlu1 %v1923_v62 }
 0x306   : > { %1921 = vadd.xlane.f32.xlu0 %v1920_v63  ;;  %v1473_v63 = vsel %vm542_vm0, %v1377_v22, 0.0 }
 0x30a   : > { %1963 = vadd.xlane.f32.xlu0 %v1962_v45 }
 0x30e   : > { %1966 = vadd.xlane.f32.xlu0 %v1965_v18  ;;  %v1479_v18 = vsel %vm542_vm0, %v6109_v48, 0.0 }
 0x313   : > { %1402 = vrot.lane.b32.xlu1 %v6015_v51, %s5116_s16  ;;  %v6111_v51 = vpop.permute.xlu1 %1384 }
 0x314   : > { %v1485_v36 = vsel %vm542_vm0, %v6111_v51, 0.0 }
 0x317   : > { %1430 = vrot.lane.b32.xlu1 %v6022_v40, %s5116_s16  ;;  %v6113_v52 = vpop.permute.xlu1 %1408  ;;  %v1929_v40 = vsel %vm542_vm0, %v1821_v3, 0.0 }
 0x318   : > { %v1521_v24 = vsel %vm542_vm0, %v6113_v52, 0.0 }
 0x31b   : > { %1432 = vrot.lane.b32.xlu1 %v5996_v19, %s5116_s16  ;;  %v1375_v19 = vpop.permute.xlu0 %1374  ;;  %v6116_v33 = vpop.permute.xlu1 %1412 }
 0x31c   : > { %v1470_v59 = vsel %vm542_vm0, %v1375_v19, 0.0 }
 0x31f   : > { %v6119_v20 = vpop.permute.xlu1 %1416 }
 0x323   : > { %v6123_v1 = vpop.permute.xlu1 %1420 }
 0x324   : > { %1404 = vrot.lane.b32.xlu0 %v5987_v37, %s5116_s16  ;;  %v1379_v37 = vpop.permute.xlu0 %1378 }
 0x325   : > { %v1476_v14 = vsel %vm542_vm0, %v1379_v37, 0.0 }
 0x327   : > { %v6127_v46 = vpop.permute.xlu1 %1424 }
 0x328   : > { %v1383_v56 = vpop.permute.xlu0 %1382 }
 0x329   : > { %v1482_v62 = vsel %vm542_vm0, %v1383_v56, 0.0 }
 0x32b   : > { %v1387_v53 = vpop.permute.xlu1 %1386 }
 0x32c   : > { %v1407_v29 = vpop.permute.xlu0 %1406  ;;  %v1488_v42 = vsel %vm542_vm0, %v1387_v53, 0.0 }
 0x32d   : > { %v1518_v10 = vsel %vm542_vm0, %v1407_v29, 0.0 }
 0x32f   : > { %v1415_v11 = vpop.permute.xlu1 %1414 }
 0x330   : > { %v1411_v0 = vpop.permute.xlu0 %1410  ;;  %v1530_v22 = vsel %vm542_vm0, %v1415_v11, 0.0 }
 0x331   : > { %v1524_v13 = vsel %vm542_vm0, %v1411_v0, 0.0 }
 0x333   : > { %v1391_v5 = vpop.permute.xlu1 %1390 }
 0x334   : > { %v6129_v27 = vpop.xlane.xlu0 %1900  ;;  %v1494_v51 = vsel %vm542_vm0, %v1391_v5, 0.0 }
 0x337   : > { %v1419_v44 = vpop.permute.xlu1 %1418 }
 0x338   : > { %v6133_v31 = vpop.xlane.xlu0 %1942  ;;  %v1536_v52 = vsel %vm542_vm0, %v1419_v44, 0.0  ;;  %v1545_v44 = vsel %vm542_vm0, %v6127_v46, 0.0 }
 0x33c   : > { %v6135_v60 = vpop.xlane.xlu0 %1948 }
 0x33f   : > { %1930 = vadd.xlane.f32.xlu1 %v1929_v40  ;;  %v1491_v40 = vsel %vm542_vm0, %v6065_v4, 0.0 }
 0x340   : > { %v6137_v38 = vpop.xlane.xlu0 %1954 }
 0x343   : > { %1927 = vadd.xlane.f32.xlu0 %v1926_v32  ;;  %v1533_v32 = vsel %vm542_vm0, %v6119_v20, 0.0  ;;  %v1539_v20 = vsel %vm542_vm0, %v6123_v1, 0.0 }
 0x344   : > { %v6139_v49 = vpop.xlane.xlu0 %1960 }
 0x347   : > { %1969 = vadd.xlane.f32.xlu0 %v1968_v34 }
 0x348   : > { %v6144_v15 = vpop.xlane.xlu0 %1891 }
 0x34b   : > { %1972 = vadd.xlane.f32.xlu0 %v1971_v50  ;;  %v1497_v50 = vsel %vm542_vm0, %v6068_v25, 0.0  ;;  %v1503_v25 = vsel %vm542_vm0, %v6071_v28, 0.0 }
 0x34c   : > { %v6150_v16 = vpop.xlane.xlu0 %1897 }
 0x350   : > { %1434 = vrot.lane.b32.xlu1 %v6029_v41, %s5116_s16  ;;  %v1395_v41 = vpop.permute.xlu1 %1394  ;;  %v6156_v12 = vpop.xlane.xlu0 %1903 }
 0x351   : > { %v1500_v37 = vsel %vm542_vm0, %v1395_v41, 0.0 }
 0x354   : > { %v6142_v9 = vpop.permute.xlu1 %1422  ;;  %v6164_v47 = vpop.xlane.xlu0 %1939 }
 0x355   : > { %v1542_v4 = vsel %vm542_vm0, %v6142_v9, 0.0 }
 0x358   : > { %v6148_v54 = vpop.permute.xlu1 %1398  ;;  %v6170_v3 = vpop.xlane.xlu0 %1909 }
 0x359   : > { %v1506_v0 = vsel %vm542_vm0, %v6148_v54, 0.0 }
 0x35c   : > { %v6154_v30 = vpop.xlane.xlu1 %1894  ;;  %v6180_v8 = vpop.xlane.xlu0 %1951 }
 0x360   : > { %v6160_v61 = vpop.xlane.xlu1 %1906  ;;  %v6187_v48 = vpop.xlane.xlu0 %1915 }
 0x361   : > { %1436 = vrot.lane.b32.xlu0 %v6007_v6, %s5116_s16  ;;  %v1974_v6 = vsel %vm542_vm0, %v1851_v7, 0.0  ;;  %v1527_v7 = vsel %vm542_vm0, %v6116_v33, 0.0 }
 0x364   : > { %v6168_v45 = vpop.xlane.xlu1 %1912  ;;  %v6195_v19 = vpop.xlane.xlu0 %1957 }
 0x368   : > { %v6175_v23 = vpop.xlane.xlu1 %1918  ;;  %v1401_v34 = vpop.permute.xlu0 %1400 }
 0x369   : > { %v1509_v28 = vsel %vm542_vm0, %v1401_v34, 0.0 }
 0x36c   : > { %v6185_v35 = vpop.xlane.xlu1 %1945 }
 0x370   : > { %v1427_v58 = vpop.permute.xlu1 %1426 }
 0x371   : > { %v1548_v11 = vsel %vm542_vm0, %v1427_v58, 0.0 }
 0x374   : > { %1933 = vadd.xlane.f32.xlu1 %v1932_v43  ;;  %v1429_v33 = vpop.permute.xlu1 %1428 }
 0x378   : > { %1975 = vadd.xlane.f32.xlu1 %v1974_v6  ;;  %v1551_v6 = vsel %vm542_vm0, %v1429_v33, 0.0 }
 0x37c   : > { %1981 = vadd.xlane.f32.xlu1 %v1980_v39 }
 0x380   : > { %1936 = vadd.xlane.f32.xlu0 %v1935_v17  ;;  %1471 = vadd.xlane.f32.xlu1 %v1470_v59 }
 0x384   : > { %1978 = vadd.xlane.f32.xlu0 %v1977_v21  ;;  %1477 = vadd.xlane.f32.xlu1 %v1476_v14 }
 0x388   : > { %1984 = vadd.xlane.f32.xlu0 %v1983_v57  ;;  %1483 = vadd.xlane.f32.xlu1 %v1482_v62 }
 0x38b   : > { %v6204_v56 = vpop.xlane.xlu1 %1924 }
 0x38c   : > { %1474 = vadd.xlane.f32.xlu0 %v1473_v63  ;;  %1519 = vadd.xlane.f32.xlu1 %v1518_v10 }
 0x38f   : > { %v6206_v29 = vpop.xlane.xlu0 %1921  ;;  %v1403_v53 = vpop.permute.xlu1 %1402 }
 0x390   : > { %1480 = vadd.xlane.f32.xlu0 %v1479_v18  ;;  %1525 = vadd.xlane.f32.xlu1 %v1524_v13  ;;  %v1512_v1 = vsel %vm542_vm0, %v1403_v53, 0.0  ;;  %v7563_v13 = vlaneseq }
 0x393   : > { %v6215_v5 = vpop.xlane.xlu0 %1963  ;;  %v1431_v41 = vpop.permute.xlu1 %1430 }
 0x394   : > { %1486 = vadd.xlane.f32.xlu0 %v1485_v36  ;;  %1489 = vadd.xlane.f32.xlu1 %v1488_v42  ;;  %v1554_v9 = vsel %vm542_vm0, %v1431_v41, 0.0  ;;  %v1599_v36 = vand.u32 127, %v7563_v13 }
 0x396   : > { %v1604_v42 = vadd.s32 4294967288, %v1599_v36 }
 0x397   : > { %v6220_v43 = vpop.xlane.xlu0 %1966  ;;  %v1433_v46 = vpop.permute.xlu1 %1432 }
 0x398   : > { %1522 = vadd.xlane.f32.xlu0 %v1521_v24  ;;  %1531 = vadd.xlane.f32.xlu1 %v1530_v22  ;;  %v1557_v17 = vsel %vm542_vm0, %v1433_v46, 0.0  ;;  %v7564_v24 = vld [vmem:[#allocation25_spill] sm:$0xff] }
 0x399   : > { %v6235_v22 = vsub.s32 %v1599_v36, %v7564_v24 }
 0x39b   : > { %v1405_v39 = vpop.permute.xlu0 %1404  ;;  %7565 = vst [vmem:[#allocation63_spill] sm:$0xff] %v6235_v22  ;;  %v2021_v33 = vrot.slane %v6144_v15, %v6235_v22  ;;  %v2048_v34 = vrot.slane %v6170_v3, %v6235_v22 }
 0x39c   : > { %1528 = vadd.xlane.f32.xlu0 %v1527_v7  ;;  %1495 = vadd.xlane.f32.xlu1 %v1494_v51  ;;  %v1515_v54 = vsel %vm542_vm0, %v1405_v39, 0.0  ;;  %v6238_v7 = vsub.s32 %v1604_v42, %v7564_v24  ;;  %v2120_v39 = vrot.slane %v6195_v19, %v6235_v22 }
 0x39e   : > { %7566 = vst [vmem:[#allocation61_spill] sm:$0xff] %v6238_v7  ;;  %v2025_v58 = vrot.slane %v6154_v30, %v6238_v7  ;;  %v2097_v15 = vrot.slane %v6133_v31, %v6238_v7  ;;  %v2115_v53 = vrot.slane %v6137_v38, %v6238_v7  ;;  %v2111_v38 = vrot.slane %v6180_v8, %v6235_v22 }
 0x3a0   : > { %1492 = vadd.xlane.f32.xlu0 %v1491_v40  ;;  %1537 = vadd.xlane.f32.xlu1 %v1536_v52  ;;  %v2030_v40 = vrot.slane %v6150_v16, %v6235_v22  ;;  %v2043_v52 = vrot.slane %v6160_v61, %v6238_v7  ;;  %v2057_v16 = vrot.slane %v6187_v48, %v6235_v22 }
 0x3a1   : > { %v2026_v61 = vsel %vm1609_vm3, %v2025_v58, %v2021_v33  ;;  %v2106_v48 = vrot.slane %v6135_v60, %v6238_v7  ;;  %v2124_v60 = vrot.slane %v6139_v49, %v6238_v7 }
 0x3a3   : > { %v2125_v42 = vsel %vm1609_vm3, %v2124_v60, %v2120_v39 }
 0x3a4   : > { %1534 = vadd.xlane.f32.xlu0 %v1533_v32  ;;  %1501 = vadd.xlane.f32.xlu1 %v1500_v37  ;;  %v2039_v32 = vrot.slane %v6156_v12, %v6235_v22  ;;  %v2034_v37 = vrot.slane %v6129_v27, %v6238_v7  ;;  %v2052_v27 = vrot.slane %v6168_v45, %v6238_v7 }
 0x3a5   : > { %v2102_v45 = vrot.slane %v6185_v35, %v6235_v22  ;;  %v2093_v35 = vrot.slane %v6164_v47, %v6235_v22 }
 0x3a6   : > { %v2035_v12 = vsel %vm1609_vm3, %v2034_v37, %v2030_v40  ;;  %v2044_v3 = vsel %vm1609_vm3, %v2043_v52, %v2039_v32 }
 0x3a7   : > { %v2107_v49 = vsel %vm1609_vm3, %v2106_v48, %v2102_v45  ;;  %v2098_v46 = vsel %vm1609_vm3, %v2097_v15, %v2093_v35 }
 0x3a8   : > { %1498 = vadd.xlane.f32.xlu0 %v1497_v50  ;;  %1543 = vadd.xlane.f32.xlu1 %v1542_v4  ;;  %v2061_v50 = vrot.slane %v6175_v23, %v6238_v7  ;;  %v2066_v4 = vrot.slane %v6206_v29, %v6235_v22  ;;  %v2162_v23 = vsel %vm1746_vm4, %v2035_v12, %v2026_v61 }
 0x3a9   : > { %v2070_v29 = vrot.slane %v6204_v56, %v6238_v7 }
 0x3ab   : > { %v2071_v41 = vsel %vm1609_vm3, %v2070_v29, %v2066_v4 }
 0x3ac   : > { %1540 = vadd.xlane.f32.xlu0 %v1539_v20  ;;  %1507 = vadd.xlane.f32.xlu1 %v1506_v0  ;;  %v2053_v20 = vsel %vm1609_vm3, %v2052_v27, %v2048_v34 }
 0x3b0   : > { %1504 = vadd.xlane.f32.xlu0 %v1503_v25  ;;  %1549 = vadd.xlane.f32.xlu1 %v1548_v11  ;;  %v2062_v25 = vsel %vm1609_vm3, %v2061_v50, %v2057_v16  ;;  %v2163_v11 = vsel %vm1748_vm5, %v2044_v3, %v2162_v23 }
 0x3b4   : > { %1546 = vadd.xlane.f32.xlu0 %v1545_v44  ;;  %1513 = vadd.xlane.f32.xlu1 %v1512_v1  ;;  %v2164_v1 = vsel %vm1750_vm6, %v2053_v20, %v2163_v11 }
 0x3b5   : > { %v2165_v56 = vsel %vm1752_vm7, %v2062_v25, %v2164_v1 }
 0x3b8   : > { %1555 = vadd.xlane.f32.xlu1 %v1554_v9  ;;  %1510 = vadd.xlane.f32.xlu0 %v1509_v28  ;;  %v6293_v9 = vld [vmem:[%s439_s22] sm:$0xff] }
 0x3b9   : > { %7567 = vst [vmem:[#allocation62_spill] sm:$0xff] %v6293_v9  ;;  %vm526_vm11 = vcmp.gt.f32.partialorder %v6293_v9, 0.0 }
 0x3bc   : > { %1552 = vadd.xlane.f32.xlu0 %v1551_v6 }
 0x3c0   : > { %1516 = vadd.xlane.f32.xlu0 %v1515_v54 }
 0x3c4   : > { %1558 = vadd.xlane.f32.xlu0 %v1557_v17  ;;  %v2133_v17 = vrot.slane %v6220_v43, %v6238_v7  ;;  %v2129_v43 = vrot.slane %v6215_v5, %v6235_v22 }
 0x3c6   : > { %v2134_v58 = vsel %vm1609_vm3, %v2133_v17, %v2129_v43 }
 0x3c8   : > { %v1931_v59 = vpop.xlane.xlu1 %1930 }
 0x3c9   : > { %v2079_v44 = vrot.slane %v1931_v59, %v6238_v7  ;;  %v2166_v59 = vsel %vm1754_vm8, %v2071_v41, %v2165_v56 }
 0x3cc   : > { %v1435_v21 = vpop.permute.xlu1 %1434  ;;  %v1928_v14 = vpop.xlane.xlu0 %1927 }
 0x3cd   : > { %v1560_v57 = vsel %vm542_vm0, %v1435_v21, 0.0  ;;  %v2075_v0 = vrot.slane %v1928_v14, %v6235_v22 }
 0x3ce   : > { %1561 = vadd.xlane.f32.xlu1 %v1560_v57  ;;  %v2169_v57 = vsel %vm1746_vm4, %v2107_v49, %v2098_v46 }
 0x3cf   : > { %v2080_v28 = vsel %vm1609_vm3, %v2079_v44, %v2075_v0 }
 0x3d0   : > { %v6228_v62 = vpop.xlane.xlu0 %1969  ;;  %v2167_v14 = vsel %vm1756_vm9, %v2080_v28, %v2166_v59 }
 0x3d4   : > { %v6230_v63 = vpop.xlane.xlu0 %1972 }
 0x3d5   : > { %v2142_v21 = vrot.slane %v6230_v63, %v6238_v7  ;;  %v2138_v63 = vrot.slane %v6228_v62, %v6235_v22  ;;  %v6335_v62 = vld [vmem:[%s439_s22 + $0x8] sm:$0xff] }
 0x3d6   : > { %7568 = vst [vmem:[#allocation64_spill] sm:$0xff] %v6335_v62  ;;  %vm7488_vm13 = vcmp.gt.f32.partialorder %v6335_v62, 0.0 }
 0x3d7   : > { %v2143_v32 = vsel %vm1609_vm3, %v2142_v21, %v2138_v63 }
 0x3d8   : > { %v1437_v10 = vpop.permute.xlu0 %1436 }
 0x3d9   : > { %v1563_v18 = vsel %vm542_vm0, %v1437_v10, 0.0  ;;  %v2116_v10 = vsel %vm1609_vm3, %v2115_v53, %v2111_v38 }
 0x3da   : > { %1564 = vadd.xlane.f32.xlu0 %v1563_v18  ;;  %v2170_v52 = vsel %vm1748_vm5, %v2116_v10, %v2169_v57 }
 0x3db   : > { %v2171_v37 = vsel %vm1750_vm6, %v2125_v42, %v2170_v52 }
 0x3dc   : > { %v2172_v61 = vsel %vm1752_vm7, %v2134_v58, %v2171_v37 }
 0x3dd   : > { %v2173_v27 = vsel %vm1754_vm8, %v2143_v32, %v2172_v61 }
 0x3fd   : > { %v1934_v51 = vpop.xlane.xlu1 %1933 }
 0x3fe   : > { %v2084_v8 = vrot.slane %v1934_v51, %v6235_v22 }
 0x401   : > { %v6254_v30 = vpop.xlane.xlu1 %1975 }
 0x402   : > { %v2147_v5 = vrot.slane %v6254_v30, %v6235_v22 }
 0x405   : > { %v1982_v31 = vpop.xlane.xlu1 %1981 }
 0x406   : > { %v2156_v30 = vrot.slane %v1982_v31, %v6235_v22 }
 0x409   : > { %v6298_v47 = vpop.xlane.xlu1 %1471  ;;  %v1937_v6 = vpop.xlane.xlu0 %1936 }
 0x40a   : > { %v2088_v54 = vrot.slane %v1937_v6, %v6238_v7  ;;  %v1603_v10 = vrot.slane %v6298_v47, %v6235_v22 }
 0x40c   : > { %v2089_v19 = vsel %vm1609_vm3, %v2088_v54, %v2084_v8 }
 0x40d   : > { %v1478_v18 = vpop.xlane.xlu1 %1477  ;;  %v1979_v13 = vpop.xlane.xlu0 %1978  ;;  %v2168_v36 = vsel %vm1758_vm10, %v2089_v19, %v2167_v14 }
 0x40e   : > { %v2151_v24 = vrot.slane %v1979_v13, %v6238_v7  ;;  %v6324_v51 = vsel %vm526_vm11, %v2168_v36, -1e+30  ;;  %v1614_v59 = vrot.slane %v1478_v18, %v6235_v22 }
 0x40f   : > { %v2180_v40 = vsel %vm1771_vm12, %v6324_v51, -inf }
 0x410   : > { %2181 = vmax.xlane.f32.xlu1 %v2180_v40  ;;  %v2152_v33 = vsel %vm1609_vm3, %v2151_v24, %v2147_v5 }
 0x411   : > { %v1484_v34 = vpop.xlane.xlu1 %1483  ;;  %v1985_v16 = vpop.xlane.xlu0 %1984  ;;  %v2174_v3 = vsel %vm1756_vm9, %v2152_v33, %v2173_v27 }
 0x412   : > { %v2160_v12 = vrot.slane %v1985_v16, %v6238_v7  ;;  %v1623_v14 = vrot.slane %v1484_v34, %v6235_v22 }
 0x414   : > { %v2161_v15 = vsel %vm1609_vm3, %v2160_v12, %v2156_v30 }
 0x415   : > { %v6346_v50 = vpop.xlane.xlu1 %1519  ;;  %v1475_v4 = vpop.xlane.xlu0 %1474  ;;  %v2175_v48 = vsel %vm1758_vm10, %v2161_v15, %v2174_v3 }
 0x416   : > { %v6351_v20 = vsel %vm7488_vm13, %v2175_v48, -1e+30  ;;  %v1608_v21 = vrot.slane %v1475_v4, %v6238_v7 }
 0x417   : > { %v2183_v45 = vsel %vm1771_vm12, %v6351_v20, -inf }
 0x418   : > { %2184 = vmax.xlane.f32.xlu0 %v2183_v45  ;;  %v1610_v58 = vsel %vm1609_vm3, %v1608_v21, %v1603_v10 }
 0x419   : > { %v6355_v0 = vpop.xlane.xlu1 %1525  ;;  %v1481_v31 = vpop.xlane.xlu0 %1480 }
 0x41a   : > { %v1618_v8 = vrot.slane %v1481_v31, %v6238_v7 }
 0x41c   : > { %v1619_v43 = vsel %vm1609_vm3, %v1618_v8, %v1614_v59 }
 0x41d   : > { %v1490_v53 = vpop.xlane.xlu1 %1489  ;;  %v1487_v23 = vpop.xlane.xlu0 %1486  ;;  %v1747_v47 = vsel %vm1746_vm4, %v1619_v43, %v1610_v58 }
 0x41e   : > { %v1627_v54 = vrot.slane %v1487_v23, %v6238_v7  ;;  %v1632_v13 = vrot.slane %v1490_v53, %v6235_v22 }
 0x420   : > { %v1628_v42 = vsel %vm1609_vm3, %v1627_v54, %v1623_v14 }
 0x421   : > { %v6357_v25 = vpop.xlane.xlu1 %1531  ;;  %v6359_v29 = vpop.xlane.xlu0 %1522  ;;  %v1749_v33 = vsel %vm1748_vm5, %v1628_v42, %v1747_v47 }
 0x425   : > { %v1496_v60 = vpop.xlane.xlu1 %1495  ;;  %v1529_v11 = vpop.xlane.xlu0 %1528 }
 0x426   : > { %v1641_v18 = vrot.slane %v1496_v60, %v6235_v22  ;;  %v1690_v23 = vrot.slane %v1529_v11, %v6238_v7  ;;  %v1677_v11 = vrot.slane %v6346_v50, %v6235_v22 }
 0x429   : > { %v6361_v35 = vpop.xlane.xlu1 %1537  ;;  %v1493_v44 = vpop.xlane.xlu0 %1492 }
 0x42a   : > { %v1636_v19 = vrot.slane %v1493_v44, %v6238_v7  ;;  %v1686_v44 = vrot.slane %v6355_v0, %v6235_v22  ;;  %v1704_v0 = vrot.slane %v6361_v35, %v6235_v22 }
 0x42c   : > { %v1637_v5 = vsel %vm1609_vm3, %v1636_v19, %v1632_v13 }
 0x42d   : > { %v1535_v1 = vpop.xlane.xlu0 %1534  ;;  %v1502_v38 = vpop.xlane.xlu1 %1501  ;;  %v1751_v16 = vsel %vm1750_vm6, %v1637_v5, %v1749_v33 }
 0x42e   : > { %v1650_v40 = vrot.slane %v1502_v38, %v6235_v22  ;;  %v1699_v60 = vrot.slane %v1535_v1, %v6238_v7  ;;  %v1681_v38 = vrot.slane %v6359_v29, %v6238_v7  ;;  %v1691_v1 = vsel %vm1609_vm3, %v1690_v23, %v1686_v44 }
 0x431   : > { %v1499_v41 = vpop.xlane.xlu0 %1498  ;;  %v6363_v49 = vpop.xlane.xlu1 %1543 }
 0x432   : > { %v1645_v57 = vrot.slane %v1499_v41, %v6238_v7 }
 0x434   : > { %v1646_v52 = vsel %vm1609_vm3, %v1645_v57, %v1641_v18 }
 0x435   : > { %v1541_v56 = vpop.xlane.xlu0 %1540  ;;  %v1508_v6 = vpop.xlane.xlu1 %1507  ;;  %v1753_v12 = vsel %vm1752_vm7, %v1646_v52, %v1751_v16 }
 0x436   : > { %v1659_v32 = vrot.slane %v1508_v6, %v6235_v22  ;;  %v1708_v41 = vrot.slane %v1541_v56, %v6238_v7  ;;  %v1695_v6 = vrot.slane %v6357_v25, %v6235_v22  ;;  %v1713_v56 = vrot.slane %v6363_v49, %v6235_v22 }
 0x438   : > { %v1700_v29 = vsel %vm1609_vm3, %v1699_v60, %v1695_v6  ;;  %v1709_v59 = vsel %vm1609_vm3, %v1708_v41, %v1704_v0  ;;  %v6457_v60 = vld [vmem:[#allocation11 + $0x8] sm:$0xff]  ;;  %v7571_v41 = vld [vmem:[#allocation28_spill] sm:$0xff]  ;;  %v7572_v6 = vld [vmem:[#allocation29_spill] sm:$0xff] }
 0x439   : > { %v1505_v28 = vpop.xlane.xlu0 %1504  ;;  %v6367_v46 = vpop.xlane.xlu1 %1549 }
 0x43a   : > { %v1654_v36 = vrot.slane %v1505_v28, %v6238_v7  ;;  %v1722_v50 = vrot.slane %v6367_v46, %v6235_v22 }
 0x43c   : > { %v1655_v34 = vsel %vm1609_vm3, %v1654_v36, %v1650_v40 }
 0x43d   : > { %v1547_v39 = vpop.xlane.xlu0 %1546  ;;  %v1514_v37 = vpop.xlane.xlu1 %1513  ;;  %v1755_v3 = vsel %vm1754_vm8, %v1655_v34, %v1753_v12 }
 0x43e   : > { %v1668_v27 = vrot.slane %v1514_v37, %v6235_v22  ;;  %v1717_v8 = vrot.slane %v1547_v39, %v6238_v7  ;;  %v1682_v39 = vsel %vm1609_vm3, %v1681_v38, %v1677_v11  ;;  %v7570_v38 = vld [vmem:[#allocation60_spill] sm:$0xff] }
 0x43f   : > { %v1760_v21 = vsel %vm1746_vm4, %v1691_v1, %v1682_v39  ;;  %v7574_v1 = vld [vmem:[#allocation34_spill] sm:$0xff] }
 0x440   : > { %v1718_v35 = vsel %vm1609_vm3, %v1717_v8, %v1713_v56  ;;  %v1761_v57 = vsel %vm1748_vm5, %v1700_v29, %v1760_v21  ;;  %v7576_v56 = vld [vmem:[#allocation38_spill] sm:$0xff] }
 0x441   : > { %v1511_v17 = vpop.xlane.xlu0 %1510  ;;  %v1556_v54 = vpop.xlane.xlu1 %1555  ;;  %v1762_v10 = vsel %vm1750_vm6, %v1709_v59, %v1761_v57  ;;  %v7577_v59 = vld [vmem:[#allocation40_spill] sm:$0xff] }
 0x442   : > { %v1663_v63 = vrot.slane %v1511_v17, %v6238_v7  ;;  %v1731_v19 = vrot.slane %v1556_v54, %v6235_v22  ;;  %v1763_v36 = vsel %vm1752_vm7, %v1718_v35, %v1762_v10  ;;  %v7573_v54 = vld [vmem:[#allocation32_spill] sm:$0xff]  ;;  %v7578_v35 = vld [vmem:[#allocation42_spill] sm:$0xff] }
 0x443   : > { %v7579_v57 = vld [vmem:[#allocation44_spill] sm:$0xff]  ;;  %v7580_v10 = vld [vmem:[#allocation46_spill] sm:$0xff] }
 0x444   : > { %v1664_v61 = vsel %vm1609_vm3, %v1663_v63, %v1659_v32 }
 0x445   : > { %v1553_v24 = vpop.xlane.xlu0 %1552  ;;  %v1757_v48 = vsel %vm1756_vm9, %v1664_v61, %v1755_v3 }
 0x446   : > { %v1726_v17 = vrot.slane %v1553_v24, %v6238_v7 }
 0x448   : > { %v1727_v49 = vsel %vm1609_vm3, %v1726_v17, %v1722_v50  ;;  %v7575_v17 = vld [vmem:[#allocation36_spill] sm:$0xff] }
 0x449   : > { %v1517_v30 = vpop.xlane.xlu0 %1516  ;;  %v1764_v18 = vsel %vm1754_vm8, %v1727_v49, %v1763_v36 }
 0x44a   : > { %v1672_v15 = vrot.slane %v1517_v30, %v6238_v7 }
 0x44c   : > { %v1673_v4 = vsel %vm1609_vm3, %v1672_v15, %v1668_v27 }
 0x44d   : > { %v1759_v45 = vsel %vm1758_vm10, %v1673_v4, %v1757_v48  ;;  %v1559_v28 = vpop.xlane.xlu0 %1558 }
 0x44e   : > { %v1769_v31 = vsel %vm526_vm11, %v1759_v45, -1e+30  ;;  %v1735_v25 = vrot.slane %v1559_v28, %v6238_v7 }
 0x44f   : > { %v1772_v53 = vsel %vm1771_vm12, %v1769_v31, -inf }
 0x450   : > { %1773 = vmax.xlane.f32.xlu1 %v1772_v53  ;;  %v1736_v43 = vsel %vm1609_vm3, %v1735_v25, %v1731_v19 }
 0x451   : > { %v1765_v24 = vsel %vm1756_vm9, %v1736_v43, %v1764_v18  ;;  %v7582_v18 = vld [vmem:[#allocation50_spill] sm:$0xff] }
 0x457   : > { %v1562_v14 = vpop.xlane.xlu1 %1561 }
 0x458   : > { %v1740_v46 = vrot.slane %v1562_v14, %v6235_v22 }
 0x463   : > { %v1565_v13 = vpop.xlane.xlu0 %1564 }
 0x464   : > { %v1744_v42 = vrot.slane %v1565_v13, %v6238_v7 }
 0x466   : > { %v1745_v63 = vsel %vm1609_vm3, %v1744_v42, %v1740_v46  ;;  %v7581_v46 = vld [vmem:[#allocation48_spill] sm:$0xff] }
 0x467   : > { %v1766_v58 = vsel %vm1758_vm10, %v1745_v63, %v1765_v24 }
 0x468   : > { %v1770_v5 = vsel %vm7488_vm13, %v1766_v58, -1e+30 }
 0x469   : > { %v1775_v40 = vsel %vm1771_vm12, %v1770_v5, -inf }
 0x46a   : > { %1776 = vmax.xlane.f32.xlu0 %v1775_v40 }
 0x499   : > { %v2182_v47 = vpop.xlane.xlu1 %2181 }
 0x49a   : > { %v2186_v52 = vsub.f32 %v6324_v51, %v2182_v47  ;;  %v7584_v47 = vld [vmem:[#allocation30_spill] sm:$0xff] }
 0x49c   : > { %v2188_v32 = vmul.f32 1.442695, %v2186_v52 }
 0x49e   : > { %4762 = vpow2.f32 %v2188_v32  ;;  %v7585_v32 = vld [vmem:[#allocation54_spill] sm:$0xff] }
 0x4a1   : > { %v2185_v37 = vpop.xlane.xlu0 %2184 }
 0x4a2   : > { %v2187_v33 = vsub.f32 %v6351_v20, %v2185_v37 }
 0x4a4   : > { %v2190_v34 = vmul.f32 1.442695, %v2187_v33  ;;  %v7586_v33 = vld [vmem:[#allocation31_spill] sm:$0xff] }
 0x4a6   : > { %4764 = vpow2.f32 %v2190_v34 }
 0x4ab   : > { %v4763_v16 = vpop.eup %4762 }
 0x4ac   : > { %v2192_v61 = vsel %vm1771_vm12, %v4763_v16, 0.0 }
 0x4ad   : > { %2193 = vadd.xlane.f32.xlu1 %v2192_v61 }
 0x4b3   : > { %v4765_v30 = vpop.eup %4764 }
 0x4b4   : > { %v2195_v12 = vsel %vm1771_vm12, %v4765_v30, 0.0 }
 0x4b5   : > { %2196 = vadd.xlane.f32.xlu0 %v2195_v12 }
 0x4be   : > { %2214 = vrot.lane.b32.xlu1 %v5665_v55, %s5119_s14 }
 0x4d9   : > { %v1774_v51 = vpop.xlane.xlu1 %1773 }
 0x4da   : > { %v1778_v27 = vsub.f32 %v1769_v31, %v1774_v51  ;;  %v7569_v31 = vld [vmem:[#allocation26_spill] sm:$0xff] }
 0x4db   : > { %v6461_v44 = vrot.slane %v6457_v60, %v7569_v31  ;;  %v7589_v51 = vld [vmem:[#allocation58_spill] sm:$0xff]  ;;  %v7593_v31 = vld [vmem:[#allocation41_spill] sm:$0xff] }
 0x4dc   : > { %v1780_v15 = vmul.f32 1.442695, %v1778_v27 }
 0x4dd   : > { %v2620_v28 = vmul.f32 %v6461_v44, %v7571_v41  ;;  %v2622_v8 = vmul.f32 %v6461_v44, %v7572_v6  ;;  %v2624_v11 = vmul.f32 %v6461_v44, %v7573_v54  ;;  %v2636_v0 = vmul.f32 %v6461_v44, %v7574_v1 }
 0x4de   : > { %4766 = vpow2.f32 %v1780_v15  ;;  %v2638_v29 = vmul.f32 %v6461_v44, %v7575_v17  ;;  %v2626_v25 = vmul.f32 %v6461_v44, %v7576_v56  ;;  %v2640_v50 = vmul.f32 %v6461_v44, %v7577_v59  ;;  %v7590_v15 = vld [vmem:[#allocation35_spill] sm:$0xff] }
 0x4df   : > { %v2628_v19 = vmul.f32 %v6461_v44, %v7578_v35  ;;  %v2642_v49 = vmul.f32 %v6461_v44, %v7579_v57  ;;  %v2630_v43 = vmul.f32 %v6461_v44, %v7580_v10  ;;  %v2644_v42 = vmul.f32 %v6461_v44, %v7581_v46  ;;  %v7600_v59 = vld [vmem:[#allocation55_spill] sm:$0xff] }
 0x4e0   : > { %v2632_v63 = vmul.f32 %v6461_v44, %v7582_v18  ;;  %v2621_v52 = vmul.f32 %v6461_v44, %v7584_v47  ;;  %v2634_v37 = vmul.f32 %v6461_v44, %v7585_v32  ;;  %v2623_v34 = vmul.f32 %v6461_v44, %v7586_v33 }
 0x4e1   : > { %v2650_v27 = vmul.f32 %v6461_v44, %v7589_v51  ;;  %v2641_v41 = vmul.f32 %v6461_v44, %v7593_v31  ;;  %v2316_v51 = vrot.slane %v6457_v60, %v5470_v2 }
 0x4eb   : > { %v6449_v3 = vpop.eup %4766 }
 0x4ec   : > { %v1784_v20 = vsel %vm1771_vm12, %v6449_v3, 0.0 }
 0x4ed   : > { %1785 = vadd.xlane.f32.xlu1 %v1784_v20  ;;  %v2637_v20 = vmul.f32 %v6461_v44, %v7590_v15 }
 0x4f3   : > { %v1777_v4 = vpop.xlane.xlu0 %1776 }
 0x4f4   : > { %v1779_v48 = vsub.f32 %v1770_v5, %v1777_v4  ;;  %v7583_v5 = vld [vmem:[#allocation52_spill] sm:$0xff]  ;;  %v7591_v4 = vld [vmem:[#allocation37_spill] sm:$0xff] }
 0x4f5   : > { %v2646_v40 = vmul.f32 %v6461_v44, %v7583_v5  ;;  %v4794_v5 = vld [vmem:[#allocation11] sm:$0xff] }
 0x4f6   : > { %v1782_v45 = vmul.f32 1.442695, %v1779_v48  ;;  %v2639_v48 = vmul.f32 %v6461_v44, %v7591_v4 }
 0x4f8   : > { %4768 = vpow2.f32 %v1782_v45  ;;  %v7592_v45 = vld [vmem:[#allocation39_spill] sm:$0xff] }
 0x505   : > { %v6453_v53 = vpop.eup %4768 }
 0x506   : > { %v1787_v23 = vsel %vm1771_vm12, %v6453_v53, 0.0 }
 0x507   : > { %1788 = vadd.xlane.f32.xlu0 %v1787_v23  ;;  %v2627_v23 = vmul.f32 %v6461_v44, %v7592_v45 }
 0x51d   : > { %2212 = vrot.lane.b32.xlu0 %v7570_v38, %s5119_s14 }
 0x521   : > { %2684 = vrot.lane.b32.xlu0 %v2620_v28, %s5116_s16  ;;  %v7594_v28 = vld [vmem:[#allocation43_spill] sm:$0xff] }
 0x522   : > { %v2629_v6 = vmul.f32 %v6461_v44, %v7594_v28 }
 0x525   : > { %2688 = vrot.lane.b32.xlu0 %v2622_v8, %s5116_s16  ;;  %v7595_v8 = vld [vmem:[#allocation45_spill] sm:$0xff] }
 0x526   : > { %v2643_v54 = vmul.f32 %v6461_v44, %v7595_v8 }
 0x529   : > { %2692 = vrot.lane.b32.xlu0 %v2624_v11, %s5116_s16  ;;  %v7596_v11 = vld [vmem:[#allocation47_spill] sm:$0xff] }
 0x52a   : > { %v2631_v1 = vmul.f32 %v6461_v44, %v7596_v11 }
 0x52d   : > { %2716 = vrot.lane.b32.xlu0 %v2636_v0, %s5116_s16  ;;  %v7597_v0 = vld [vmem:[#allocation49_spill] sm:$0xff] }
 0x52e   : > { %v2645_v17 = vmul.f32 %v6461_v44, %v7597_v0 }
 0x531   : > { %2720 = vrot.lane.b32.xlu0 %v2638_v29, %s5116_s16  ;;  %v7598_v29 = vld [vmem:[#allocation51_spill] sm:$0xff] }
 0x532   : > { %v2633_v56 = vmul.f32 %v6461_v44, %v7598_v29 }
 0x535   : > { %2696 = vrot.lane.b32.xlu0 %v2626_v25, %s5116_s16  ;;  %v7599_v25 = vld [vmem:[#allocation53_spill] sm:$0xff] }
 0x536   : > { %v2194_v39 = vpop.xlane.xlu1 %2193 }
 0x537   : > { %4770 = vrcp.f32 %v2194_v39  ;;  %v2647_v39 = vmul.f32 %v6461_v44, %v7599_v25 }
 0x539   : > { %2724 = vrot.lane.b32.xlu0 %v2640_v50, %s5116_s16  ;;  %v2635_v50 = vmul.f32 %v6461_v44, %v7600_v59 }
 0x53a   : > { %v2215_v21 = vpop.permute.xlu1 %2214 }
 0x53b   : > { %4512 = vmatprep.subr.mxu1 %v2215_v21 }
 0x53c   : > { %4513 = vmatpush3.msra.mxu1 %v2215_v21  ;;  %v7601_v21 = vld [vmem:[#allocation57_spill] sm:$0xff] }
 0x53d   : > { %2700 = vrot.lane.b32.xlu0 %v2628_v19, %s5116_s16  ;;  %v2649_v35 = vmul.f32 %v6461_v44, %v7601_v21  ;;  %v7602_v19 = vld [vmem:[#allocation59_spill] sm:$0xff] }
 0x53e   : > { %v2197_v14 = vpop.xlane.xlu0 %2196 }
 0x53f   : > { %4772 = vrcp.f32 %v2197_v14  ;;  %v2651_v14 = vmul.f32 %v6461_v44, %v7602_v19 }
 0x541   : > { %2728 = vrot.lane.b32.xlu0 %v2642_v49, %s5116_s16 }
 0x544   : > { %v4771_v13 = vpop.eup %4770 }
 0x545   : > { %2704 = vrot.lane.b32.xlu0 %v2630_v43, %s5116_s16  ;;  %v2199_v36 = vmul.f32 %v4771_v13, %v4763_v16  ;;  %v7587_v16 = vld [vmem:[#allocation56_spill] sm:$0xff] }
 0x546   : > { %v2648_v61 = vmul.f32 %v6461_v44, %v7587_v16 }
 0x547   : > { %2204 = vrot.lane.b32.xlu1 %v2199_v36, %s5120_s5 }
 0x549   : > { %2732 = vrot.lane.b32.xlu0 %v2644_v42, %s5116_s16 }
 0x54c   : > { %v4773_v24 = vpop.eup %4772 }
 0x54d   : > { %2708 = vrot.lane.b32.xlu0 %v2632_v63, %s5116_s16  ;;  %v2201_v58 = vmul.f32 %v4773_v24, %v4765_v30  ;;  %v7588_v30 = vld [vmem:[#allocation33_spill] sm:$0xff]  ;;  %v534_v24 = vld [vmem:[#allocation9 + $0x30] sm:$0xff] }
 0x54e   : > { %v2625_v12 = vmul.f32 %v6461_v44, %v7588_v30 }
 0x54f   : > { %2206 = vrot.lane.b32.xlu1 %v2201_v58, %s5120_s5  ;;  %v533_v58 = vld [vmem:[#allocation9 + $0x28] sm:$0xff] }
 0x551   : > { %2736 = vrot.lane.b32.xlu0 %v2646_v40, %s5116_s16  ;;  %v7603_v40 = vld [vmem:[#allocation27_spill] sm:$0xff] }
 0x553   : > { %2686 = vrot.lane.b32.xlu1 %v2621_v52, %s5116_s16 }
 0x555   : > { %2712 = vrot.lane.b32.xlu0 %v2634_v37, %s5116_s16 }
 0x557   : > { %2690 = vrot.lane.b32.xlu1 %v2623_v34, %s5116_s16 }
 0x559   : > { %2740 = vrot.lane.b32.xlu0 %v2648_v61, %s5116_s16 }
 0x55b   : > { %2694 = vrot.lane.b32.xlu1 %v2625_v12, %s5116_s16 }
 0x55d   : > { %2744 = vrot.lane.b32.xlu0 %v2650_v27, %s5116_s16 }
 0x55f   : > { %2718 = vrot.lane.b32.xlu1 %v2637_v20, %s5116_s16 }
 0x563   : > { %2722 = vrot.lane.b32.xlu1 %v2639_v48, %s5116_s16 }
 0x567   : > { %2698 = vrot.lane.b32.xlu1 %v2627_v23, %s5116_s16 }
 0x56b   : > { %2726 = vrot.lane.b32.xlu1 %v2641_v41, %s5116_s16 }
 0x56f   : > { %2702 = vrot.lane.b32.xlu1 %v2629_v6, %s5116_s16 }
 0x573   : > { %2730 = vrot.lane.b32.xlu1 %v2643_v54, %s5116_s16 }
 0x576   : > { %v1786_v10 = vpop.xlane.xlu1 %1785 }
 0x577   : > { %2706 = vrot.lane.b32.xlu1 %v2631_v1, %s5116_s16  ;;  %4774 = vrcp.f32 %v1786_v10 }
 0x57b   : > { %2734 = vrot.lane.b32.xlu1 %v2645_v17, %s5116_s16 }
 0x57f   : > { %2710 = vrot.lane.b32.xlu1 %v2633_v56, %s5116_s16 }
 0x583   : > { %2738 = vrot.lane.b32.xlu1 %v2647_v39, %s5116_s16 }
 0x584   : > { %v4775_v43 = vpop.eup %4774 }
 0x585   : > { %v1791_v13 = vmul.f32 %v4775_v43, %v6449_v3  ;;  %v532_v3 = vld [vmem:[#allocation9 + $0x20] sm:$0xff] }
 0x587   : > { %2714 = vrot.lane.b32.xlu1 %v2635_v50, %s5116_s16 }
 0x58b   : > { %2742 = vrot.lane.b32.xlu1 %v2649_v35, %s5116_s16 }
 0x58f   : > { %2746 = vrot.lane.b32.xlu1 %v2651_v14, %s5116_s16 }
 0x590   : > { %v1789_v57 = vpop.xlane.xlu0 %1788 }
 0x591   : > { %4776 = vrcp.f32 %v1789_v57 }
 0x594   : > { %v2213_v49 = vpop.permute.xlu0 %2212 }
 0x595   : > { %4514 = vmatprep.subr.mxu1 %v2213_v49 }
 0x596   : > { %4515 = vmatpush3.msra.mxu1 %v2213_v49 }
 0x597   : > { %4516 = vmatprep.subr.mxu1 %v5665_v55 }
 0x598   : > { %4517 = vmatpush3.msra.mxu1 %v5665_v55  ;;  %v6598_v31 = vpop.permute.xlu0 %2684 }
 0x599   : > { %4518 = vmatprep.subr.mxu1 %v7570_v38 }
 0x59a   : > { %4519 = vmatpush3.msra.mxu1 %v7570_v38  ;;  %v535_v38 = vld [vmem:[#allocation9 + $0x38] sm:$0xff] }
 0x59b   : > { %4523 = vmatprep.subr.mxu0 %v535_v38 }
 0x59c   : > { %4524 = vmatpush3.msra.mxu0 %v535_v38  ;;  %v6602_v41 = vpop.permute.xlu0 %2688 }
 0x59d   : > { %4525 = vmatprep.subr.mxu0 %v534_v24 }
 0x59e   : > { %v4777_v42 = vpop.eup %4776  ;;  %4526 = vmatpush3.msra.mxu0 %v534_v24 }
 0x59f   : > { %v1793_v18 = vmul.f32 %v4777_v42, %v6453_v53  ;;  %4527 = vmatprep.subr.mxu0 %v533_v58  ;;  %v2304_v53 = vrot.slane %v4794_v5, %v7603_v40 }
 0x5a0   : > { %4528 = vmatpush3.msra.mxu0 %v533_v58  ;;  %v6606_v6 = vpop.permute.xlu0 %2692 }
 0x5a1   : > { %4529 = vmatprep.subr.mxu0 %v532_v3 }
 0x5a2   : > { %4530 = vmatpush3.msra.mxu0 %v532_v3 }
 0x5a4   : > { %v6608_v54 = vpop.permute.xlu0 %2716 }
 0x5a8   : > { %v6612_v1 = vpop.permute.xlu0 %2720 }
 0x5ac   : > { %v6614_v17 = vpop.permute.xlu0 %2696 }
 0x5b0   : > { %v6618_v56 = vpop.permute.xlu0 %2724 }
 0x5b4   : > { %v6620_v39 = vpop.permute.xlu0 %2700 }
 0x5b8   : > { %v6624_v50 = vpop.permute.xlu0 %2728 }
 0x5b9   : > { %v2205_v36 = vpop.permute.xlu1 %2204 }
 0x5ba   : > { %v2210_v46 = vsel %vm1771_vm12, %v1791_v13, %v2205_v36 }
 0x5bb   : > { %4520 = vmatprep.mubr.msk.f32.mxu1 %vm542_vm0, %v2210_v46 }
 0x5bc   : > { %v6628_v35 = vpop.permute.xlu0 %2704 }
 0x5c0   : > { %v6632_v14 = vpop.permute.xlu0 %2732 }
 0x5c1   : > { %v2207_v63 = vpop.permute.xlu1 %2206 }
 0x5c2   : > { %v2211_v55 = vsel %vm1771_vm12, %v1793_v18, %v2207_v63 }
 0x5c3   : > { %4521 = vmatmul.mubr.msk.f32.vlgmr.msra.gmra.mxu1 %vm542_vm0, %v2211_v55 }
 0x5c4   : > { %v6642_v13 = vpop.permute.xlu0 %2708 }
 0x5c5   : > { %v6592_v48 = vpop.permute.xlu1 %2686  ;;  %7608 = vst [vmem:[#allocation29_spill] sm:$0xff] %v6642_v13 }
 0x5c8   : > { %v6653_v38 = vpop.permute.xlu0 %2736 }
 0x5c9   : > { %v6594_v45 = vpop.permute.xlu1 %2690  ;;  %7609 = vst [vmem:[#allocation32_spill] sm:$0xff] %v6653_v38 }
 0x5cd   : > { %v6596_v23 = vpop.permute.xlu1 %2694 }
 0x5d1   : > { %v6600_v60 = vpop.permute.xlu1 %2718 }
 0x5d5   : > { %v6604_v28 = vpop.permute.xlu1 %2722 }
 0x5d9   : > { %v2699_v8 = vpop.permute.xlu1 %2698 }
 0x5dd   : > { %v6610_v11 = vpop.permute.xlu1 %2726 }
 0x5e1   : > { %v2703_v0 = vpop.permute.xlu1 %2702 }
 0x5e5   : > { %v6616_v29 = vpop.permute.xlu1 %2730 }
 0x5e9   : > { %v2707_v25 = vpop.permute.xlu1 %2706 }
 0x5ed   : > { %v6622_v59 = vpop.permute.xlu1 %2734 }
 0x5f1   : > { %v6626_v21 = vpop.permute.xlu1 %2710 }
 0x5f5   : > { %v6630_v19 = vpop.permute.xlu1 %2738 }
 0x5f9   : > { %v6636_v49 = vpop.permute.xlu1 %2714 }
 0x5fd   : > { %v6648_v18 = vpop.permute.xlu1 %2742 }
 0x683   : > { %v4522_v47 = vpop.f32.mrf.mxu1 }
 0x684   : > { %v2300_v52 = vmul.f32 0.5, %v4522_v47 }
 0x685   : > { %v2290_v32 = vpop.f32.mrf.mxu1 }
 0x686   : > { %v2306_v37 = vadd.f32 %v2304_v53, %v2300_v52  ;;  %v2299_v33 = vmul.f32 0.5, %v2290_v32  ;;  %v6662_v32 = vpop.permute.xlu1 %2746 }
 0x688   : > { %v2305_v34 = vadd.f32 %v2304_v53, %v2299_v33  ;;  %v2310_v16 = vmul.f32 0.01, %v2306_v37  ;;  %vm2308_vm15 = vcmp.gt.f32.partialorder %v2306_v37, 0.0 }
 0x68a   : > { %vm2307_vm14 = vcmp.gt.f32.partialorder %v2305_v34, 0.0  ;;  %v2309_v61 = vmul.f32 0.01, %v2305_v34  ;;  %v6578_v12 = vsel %vm2308_vm15, %v2306_v37, %v2310_v16  ;;  %v6668_v16 = vpop.permute.xlu0 %2712 }
 0x68b   : > { %7605 = vst [vmem:[#allocation26_spill] sm:$0xff] %v6578_v12  ;;  %7610 = vst [vmem:[#allocation34_spill] sm:$0xff] %v6668_v16 }
 0x68c   : > { %v6574_v30 = vsel %vm2307_vm14, %v2305_v34, %v2309_v61 }
 0x68d   : > { %7604 = vst [vmem:[#allocation25_spill] sm:$0xff] %v6574_v30  ;;  %4531 = vmatprep.mubr.msk.f32.mxu0 %vm542_vm0, %v6574_v30 }
 0x68e   : > { %4532 = vmatmul.mubr.msk.f32.vlgmr.msra.gmra.mxu0 %vm542_vm0, %v6578_v12  ;;  %v6720_v62 = vpop.permute.xlu0 %2740 }
 0x74e   : > { %v4533_v27 = vpop.f32.mrf.mxu0 }
 0x74f   : > { %v6584_v15 = vadd.f32 %v4533_v27, %v2316_v51 }
 0x750   : > { %v2389_v20 = vpop.f32.mrf.mxu0 }
 0x751   : > { %7606 = vst [vmem:[#allocation60_spill] sm:$0xff] %v6584_v15  ;;  %v6586_v4 = vadd.f32 %v2389_v20, %v2316_v51  ;;  %2580 = vrot.lane.b32.xlu1 %v6584_v15, %s5116_s16  ;;  %v2449_v10 = vcombine.high %v6584_v15, %v6584_v15  ;;  %v2456_v63 = vrot.slane %v6584_v15, %v5720_v26 }
 0x753   : > { %7607 = vst [vmem:[#allocation28_spill] sm:$0xff] %v6586_v4  ;;  %2578 = vrot.lane.b32.xlu0 %v6586_v4, %s5116_s16  ;;  %v2407_v57 = vrot.slane %v6586_v4, %v5720_v26  ;;  %v2400_v43 = vcombine.high %v6586_v4, %v6586_v4  ;;  %v6645_v46 = vrot.slane %v2449_v10, %v5720_v26 }
 0x754   : > { %v2464_v5 = vcombine.high %v2456_v63, %v2456_v63  ;;  %v6660_v47 = vrot.slane %v2456_v63, %v5720_v26 }
 0x755   : > { %v2415_v36 = vcombine.high %v2407_v57, %v2407_v57  ;;  %v2414_v42 = vrot.slane %v2400_v43, %v5720_v26  ;;  %v2465_v24 = vcombine.high %v6645_v46, %v6645_v46  ;;  %v2423_v58 = vrot.slane %v2407_v57, %v5720_v26 }
 0x756   : > { %v6672_v61 = vrot.slane %v6660_v47, %v5470_v2  ;;  %v6675_v27 = vrot.slane %v2464_v5, %v5720_v26 }
 0x757   : > { %v2437_v55 = vrot.slane %v2415_v36, %v5720_v26  ;;  %v2416_v3 = vcombine.high %v2414_v42, %v2414_v42  ;;  %v2430_v53 = vrot.slane %v2414_v42, %v5720_v26  ;;  %v2445_v37 = vcombine.high %v2423_v58, %v2423_v58 }
 0x758   : > { %v6666_v34 = vrot.slane %v2465_v24, %v5720_v26  ;;  %v6678_v20 = vrot.slane %v2423_v58, %v5470_v2  ;;  %v2494_v58 = vcombine.high %v6660_v47, %v6660_v47 }
 0x759   : > { %v2447_v52 = vcombine.high %v2437_v55, %v2437_v55  ;;  %v2444_v33 = vrot.slane %v2416_v3, %v5720_v26  ;;  %v2446_v51 = vcombine.high %v2430_v53, %v2430_v53  ;;  %v6684_v10 = vrot.slane %v2437_v55, %v5470_v2 }
 0x75a   : > { %v6687_v43 = vrot.slane %v2430_v53, %v5470_v2  ;;  %v6692_v42 = vrot.slane %v2445_v37, %v5470_v2  ;;  %v2497_v24 = vcombine.high %v6666_v34, %v6666_v34 }
 0x75b   : > { %v6681_v57 = vrot.slane %v2447_v52, %v5470_v2  ;;  %v6695_v63 = vrot.slane %v2444_v33, %v5470_v2  ;;  %v6716_v40 = vrot.slane %v2446_v51, %v5470_v2  ;;  %v2448_v16 = vcombine.high %v2444_v33, %v2444_v33 }
 0x7c3   : > { %v6689_v36 = vpop.permute.xlu1 %2580 }
 0x7c4   : > { %v2585_v55 = vadd.f32 %v6689_v36, %v6678_v20  ;;  %v2591_v3 = vadd.f32 %v6689_v36, %v6681_v57  ;;  %v2587_v5 = vadd.f32 %v6689_v36, %v6684_v10  ;;  %v2593_v53 = vadd.f32 %v6689_v36, %v6687_v43 }
 0x7c5   : > { %v2589_v52 = vadd.f32 %v6689_v36, %v6692_v42  ;;  %v2595_v37 = vadd.f32 %v6689_v36, %v6695_v63  ;;  %v2601_v47 = vadd.f32 %v6689_v36, %v6672_v61  ;;  %v2597_v22 = vadd.f32 %v6689_v36, %v6716_v40 }
 0x7c6   : > { %v2781_v12 = vadd.f32 %v6592_v48, %v2585_v55  ;;  %v2787_v30 = vadd.f32 %v2699_v8, %v2591_v3  ;;  %v2783_v4 = vadd.f32 %v6594_v45, %v2587_v5  ;;  %v2789_v15 = vadd.f32 %v2703_v0, %v2593_v53 }
 0x7c7   : > { %v2785_v9 = vadd.f32 %v6596_v23, %v2589_v52  ;;  %v2791_v7 = vadd.f32 %v2707_v25, %v2595_v37  ;;  %v2797_v0 = vadd.f32 %v6600_v60, %v2601_v47  ;;  %v6728_v23 = vrot.slane %v6675_v27, %v5470_v2 }
 0x7c8   : > { %vm2813_vm1 = vcmp.gt.f32.partialorder %v2781_v12, 0.0  ;;  %v2845_v38 = vmul.f32 0.2, %v2781_v12  ;;  %vm2819_vm2 = vcmp.gt.f32.partialorder %v2787_v30, 0.0  ;;  %v2851_v51 = vmul.f32 0.2, %v2787_v30 }
 0x7c9   : > { %vm2815_vm14 = vcmp.gt.f32.partialorder %v2783_v4, 0.0  ;;  %v2847_v13 = vmul.f32 0.2, %v2783_v4  ;;  %vm2821_vm15 = vcmp.gt.f32.partialorder %v2789_v15, 0.0  ;;  %v2853_v48 = vmul.f32 0.2, %v2789_v15 }
 0x7ca   : > { %v2877_v8 = vsel %vm2813_vm1, %v2781_v12, %v2845_v38  ;;  %v2883_v45 = vsel %vm2819_vm2, %v2787_v30, %v2851_v51  ;;  %v2849_v3 = vmul.f32 0.2, %v2785_v9  ;;  %vm2817_vm13 = vcmp.gt.f32.partialorder %v2785_v9, 0.0  ;;  %v6740_v12 = vpop.permute.xlu0 %2744 }
 0x7cb   : > { %v6731_v25 = vmul.f32 %v2877_v8, %v6461_v44  ;;  %v6734_v33 = vmul.f32 %v2883_v45, %v6461_v44  ;;  %v2879_v55 = vsel %vm2815_vm14, %v2783_v4, %v2847_v13  ;;  %v2885_v5 = vsel %vm2821_vm15, %v2789_v15, %v2853_v48 }
 0x7cc   : > { %v2793_v53 = vadd.f32 %v6626_v21, %v2597_v22  ;;  %v6738_v30 = vrot.slane %v2448_v16, %v5470_v2  ;;  %vm2823_vm1 = vcmp.gt.f32.partialorder %v2791_v7, 0.0  ;;  %v2855_v60 = vmul.f32 0.2, %v2791_v7 }
 0x7cd   : > { %3382 = vrot.lane.b32.xlu1 %v6731_v25, %s5118_s8  ;;  %2986 = vrot.lane.b32.xlu0 %v6734_v33, %s5116_s16  ;;  %v6747_v4 = vrot.slane %v2497_v24, %v5470_v2  ;;  %v6750_v15 = vmul.f32 %v2879_v55, %v6461_v44  ;;  %v2603_v22 = vadd.f32 %v6689_v36, %v6728_v23  ;;  %v2861_v52 = vmul.f32 0.2, %v2797_v0 }
 0x7ce   : > { %v2599_v21 = vadd.f32 %v6689_v36, %v6738_v30  ;;  %v6757_v13 = vrot.slane %v2494_v58, %v5470_v2  ;;  %v6760_v38 = vmul.f32 %v2885_v5, %v6461_v44  ;;  %v2881_v16 = vsel %vm2817_vm13, %v2785_v9, %v2849_v3  ;;  %v6765_v48 = vpop.permute.xlu0 %2578 }
 0x7cf   : > { %v2615_v24 = vadd.f32 %v6689_v36, %v6747_v4  ;;  %v2887_v37 = vsel %vm2823_vm1, %v2791_v7, %v2855_v60  ;;  %vm2829_vm2 = vcmp.gt.f32.partialorder %v2797_v0, 0.0  ;;  %v2857_v47 = vmul.f32 0.2, %v2793_v53 }
 0x7d0   : > { %v2799_v51 = vadd.f32 %v6604_v28, %v2603_v22  ;;  %vm2825_vm14 = vcmp.gt.f32.partialorder %v2793_v53, 0.0  ;;  %v2795_v9 = vadd.f32 %v6636_v49, %v2599_v21  ;;  %v2605_v58 = vadd.f32 %v6689_v36, %v6757_v13 }
 0x7d1   : > { %3386 = vrot.lane.b32.xlu1 %v6750_v15, %s5118_s8  ;;  %2990 = vrot.lane.b32.xlu0 %v6760_v38, %s5116_s16  ;;  %v6775_v7 = vmul.f32 %v2881_v16, %v6461_v44  ;;  %v6778_v8 = vmul.f32 %v2887_v37, %v6461_v44  ;;  %v2893_v28 = vsel %vm2829_vm2, %v2797_v0, %v2861_v52 }
 0x7d2   : > { %v2811_v45 = vadd.f32 %v6662_v32, %v2615_v24  ;;  %v2889_v55 = vsel %vm2825_vm14, %v2793_v53, %v2857_v47  ;;  %v2863_v3 = vmul.f32 0.2, %v2799_v51  ;;  %v2859_v5 = vmul.f32 0.2, %v2795_v9 }
 0x7d3   : > { %v2584_v60 = vadd.f32 %v6765_v48, %v6678_v20  ;;  %vm2831_vm13 = vcmp.gt.f32.partialorder %v2799_v51, 0.0  ;;  %vm2827_vm15 = vcmp.gt.f32.partialorder %v2795_v9, 0.0  ;;  %v2801_v49 = vadd.f32 %v6610_v11, %v2605_v58 }
 0x7d4   : > { %v2496_v0 = vcombine.high %v6675_v27, %v6675_v27  ;;  %v6791_v32 = vmul.f32 %v2893_v28, %v6461_v44  ;;  %v6794_v53 = vmul.f32 %v2889_v55, %v6461_v44  ;;  %vm2843_vm1 = vcmp.gt.f32.partialorder %v2811_v45, 0.0 }
 0x7d5   : > { %3390 = vrot.lane.b32.xlu1 %v6775_v7, %s5118_s8  ;;  %2994 = vrot.lane.b32.xlu0 %v6778_v8, %s5116_s16  ;;  %v2875_v20 = vmul.f32 0.2, %v2811_v45  ;;  %v2895_v22 = vsel %vm2831_vm13, %v2799_v51, %v2863_v3  ;;  %v2891_v21 = vsel %vm2827_vm15, %v2795_v9, %v2859_v5  ;;  %v2780_v16 = vadd.f32 %v6598_v31, %v2584_v60 }
 0x7d6   : > { %v2586_v52 = vadd.f32 %v6765_v48, %v6684_v10  ;;  %vm2833_vm2 = vcmp.gt.f32.partialorder %v2801_v49, 0.0  ;;  %v6804_v11 = vrot.slane %v2496_v0, %v5470_v2  ;;  %v6808_v27 = vrot.slane %v6645_v46, %v5720_v26 }
 0x7d7   : > { %v6811_v24 = vmul.f32 %v2895_v22, %v6461_v44  ;;  %v6814_v31 = vmul.f32 %v2891_v21, %v6461_v44  ;;  %v2907_v10 = vsel %vm2843_vm1, %v2811_v45, %v2875_v20  ;;  %v2865_v37 = vmul.f32 0.2, %v2801_v49 }
 0x7d8   : > { %v2844_v47 = vmul.f32 0.2, %v2780_v16  ;;  %v2782_v51 = vadd.f32 %v6602_v41, %v2586_v52  ;;  %v2607_v9 = vadd.f32 %v6689_v36, %v6804_v11  ;;  %v2588_v58 = vadd.f32 %v6765_v48, %v6692_v42 }
 0x7d9   : > { %3414 = vrot.lane.b32.xlu1 %v6791_v32, %s5118_s8  ;;  %2998 = vrot.lane.b32.xlu0 %v6794_v53, %s5116_s16  ;;  %vm2812_vm14 = vcmp.gt.f32.partialorder %v2780_v16, 0.0  ;;  %v6826_v26 = vmul.f32 %v2907_v10, %v6461_v44  ;;  %v2897_v46 = vsel %vm2833_vm2, %v2801_v49, %v2865_v37  ;;  %v2600_v41 = vadd.f32 %v6765_v48, %v6672_v61 }
 0x7da   : > { %v6832_v28 = vrot.slane %v6808_v27, %v5470_v2  ;;  %v2876_v45 = vsel %vm2812_vm14, %v2780_v16, %v2844_v47  ;;  %v2846_v42 = vmul.f32 0.2, %v2782_v51  ;;  %v2803_v55 = vadd.f32 %v6616_v29, %v2607_v9 }
 0x7db   : > { %v2784_v3 = vadd.f32 %v6606_v6, %v2588_v58  ;;  %vm2814_vm13 = vcmp.gt.f32.partialorder %v2782_v51, 0.0  ;;  %v6843_v5 = vmul.f32 %v2897_v46, %v6461_v44  ;;  %v6846_v60 = vmul.f32 %v2876_v45, %v6461_v44 }
 0x7dc   : > { %v2609_v61 = vadd.f32 %v6689_v36, %v6832_v28  ;;  %v2796_v29 = vadd.f32 %v6608_v54, %v2600_v41  ;;  %v2878_v49 = vsel %vm2814_vm13, %v2782_v51, %v2846_v42  ;;  %v2867_v6 = vmul.f32 0.2, %v2803_v55 }
 0x7dd   : > { %3418 = vrot.lane.b32.xlu1 %v6811_v24, %s5118_s8  ;;  %3002 = vrot.lane.b32.xlu0 %v6814_v31, %s5116_s16  ;;  %v2848_v0 = vmul.f32 0.2, %v2784_v3  ;;  %vm2835_vm15 = vcmp.gt.f32.partialorder %v2803_v55, 0.0  ;;  %vm2816_vm1 = vcmp.gt.f32.partialorder %v2784_v3, 0.0  ;;  %v6857_v22 = vmul.f32 %v2878_v49, %v6461_v44 }
 0x7de   : > { %v2805_v20 = vadd.f32 %v6622_v59, %v2609_v61  ;;  %vm2828_vm2 = vcmp.gt.f32.partialorder %v2796_v29, 0.0  ;;  %v2860_v54 = vmul.f32 0.2, %v2796_v29  ;;  %v2899_v21 = vsel %vm2835_vm15, %v2803_v55, %v2867_v6 }
 0x7df   : > { %v2880_v16 = vsel %vm2816_vm1, %v2784_v3, %v2848_v0  ;;  %v6868_v59 = vrot.slane %v6666_v34, %v5470_v2  ;;  %v6871_v10 = vmul.f32 %v2899_v21, %v6461_v44  ;;  %v2604_v9 = vadd.f32 %v6765_v48, %v6757_v13 }
 0x7e0   : > { %vm2837_vm14 = vcmp.gt.f32.partialorder %v2805_v20, 0.0  ;;  %v6874_v37 = vmul.f32 %v2880_v16, %v6461_v44  ;;  %v2869_v47 = vmul.f32 0.2, %v2805_v20  ;;  %v2495_v34 = vcombine.high %v6808_v27, %v6808_v27 }
 0x7e1   : > { %3394 = vrot.lane.b32.xlu1 %v6734_v33, %s5118_s8  ;;  %3034 = vrot.lane.b32.xlu0 %v6826_v26, %s5116_s16  ;;  %v2602_v33 = vadd.f32 %v6765_v48, %v6728_v23  ;;  %v2590_v23 = vadd.f32 %v6765_v48, %v6681_v57  ;;  %v2592_v46 = vadd.f32 %v6765_v48, %v6687_v43 }
 0x7e2   : > { %v2800_v42 = vadd.f32 %v6618_v56, %v2604_v9  ;;  %v6899_v27 = vrot.slane %v2495_v34, %v5470_v2  ;;  %v2606_v56 = vadd.f32 %v6765_v48, %v6804_v11  ;;  %v2594_v11 = vadd.f32 %v6765_v48, %v6695_v63  ;;  %v7611_v9 = vld [vmem:[#allocation29_spill] sm:$0xff] }
 0x7e3   : > { %v2798_v52 = vadd.f32 %v6612_v1, %v2602_v33  ;;  %v2892_v1 = vsel %vm2828_vm2, %v2796_v29, %v2860_v54  ;;  %v2786_v51 = vadd.f32 %v6614_v17, %v2590_v23  ;;  %v2901_v17 = vsel %vm2837_vm14, %v2805_v20, %v2869_v47 }
 0x7e4   : > { %v6888_v58 = vmul.f32 %v2892_v1, %v6461_v44  ;;  %v6902_v55 = vmul.f32 %v2901_v17, %v6461_v44  ;;  %v2864_v61 = vmul.f32 0.2, %v2800_v42  ;;  %v2788_v29 = vadd.f32 %v6620_v39, %v2592_v46  ;;  %v7612_v46 = vld [vmem:[#allocation32_spill] sm:$0xff] }
 0x7e5   : > { %3422 = vrot.lane.b32.xlu1 %v6843_v5, %s5118_s8  ;;  %3380 = vrot.lane.b32.xlu0 %v6846_v60, %s5118_s8  ;;  %v2862_v57 = vmul.f32 0.2, %v2798_v52  ;;  %vm2830_vm13 = vcmp.gt.f32.partialorder %v2798_v52, 0.0  ;;  %v2850_v45 = vmul.f32 0.2, %v2786_v51  ;;  %vm2818_vm15 = vcmp.gt.f32.partialorder %v2786_v51, 0.0 }
 0x7e6   : > { %vm2832_vm2 = vcmp.gt.f32.partialorder %v2800_v42, 0.0  ;;  %v2852_v33 = vmul.f32 0.2, %v2788_v29  ;;  %v2802_v39 = vadd.f32 %v6624_v50, %v2606_v56  ;;  %vm2820_vm14 = vcmp.gt.f32.partialorder %v2788_v29, 0.0 }
 0x7e7   : > { %v2894_v41 = vsel %vm2830_vm13, %v2798_v52, %v2862_v57  ;;  %v2896_v0 = vsel %vm2832_vm2, %v2800_v42, %v2864_v61  ;;  %v2790_v16 = vadd.f32 %v6628_v35, %v2594_v11  ;;  %v2608_v50 = vadd.f32 %v6765_v48, %v6832_v28 }
 0x7e8   : > { %v6905_v43 = vmul.f32 %v2894_v41, %v6461_v44  ;;  %v2884_v54 = vsel %vm2820_vm14, %v2788_v29, %v2852_v33  ;;  %v2866_v21 = vmul.f32 0.2, %v2802_v39  ;;  %v2596_v35 = vadd.f32 %v6765_v48, %v6716_v40 }
 0x7e9   : > { %3398 = vrot.lane.b32.xlu1 %v6760_v38, %s5118_s8  ;;  %3384 = vrot.lane.b32.xlu0 %v6857_v22, %s5118_s8  ;;  %v2611_v38 = vadd.f32 %v6689_v36, %v6868_v59  ;;  %v2854_v1 = vmul.f32 0.2, %v2790_v16  ;;  %v2804_v47 = vadd.f32 %v6632_v14, %v2608_v50  ;;  %v2610_v14 = vadd.f32 %v6765_v48, %v6868_v59 }
 0x7ea   : > { %v2792_v34 = vadd.f32 %v7611_v9, %v2596_v35  ;;  %v2614_v29 = vadd.f32 %v6765_v48, %v6747_v4 }
 0x7eb   : > { %v2807_v13 = vadd.f32 %v6630_v19, %v2611_v38  ;;  %v2613_v19 = vadd.f32 %v6689_v36, %v6899_v27  ;;  %v2868_v38 = vmul.f32 0.2, %v2804_v47  ;;  %vm2836_vm2 = vcmp.gt.f32.partialorder %v2804_v47, 0.0 }
 0x7ec   : > { %v2856_v17 = vmul.f32 0.2, %v2792_v34  ;;  %v2806_v41 = vadd.f32 %v7612_v46, %v2610_v14  ;;  %vm2824_vm14 = vcmp.gt.f32.partialorder %v2792_v34, 0.0  ;;  %v2810_v11 = vadd.f32 %v6740_v12, %v2614_v29 }
 0x7ed   : > { %3426 = vrot.lane.b32.xlu1 %v6871_v10, %s5118_s8  ;;  %3388 = vrot.lane.b32.xlu0 %v6874_v37, %s5118_s8  ;;  %v2871_v3 = vmul.f32 0.2, %v2807_v13  ;;  %vm2839_vm1 = vcmp.gt.f32.partialorder %v2807_v13, 0.0  ;;  %v2809_v36 = vadd.f32 %v6648_v18, %v2613_v19  ;;  %v6931_v18 = vmul.f32 %v2896_v0, %v6461_v44  ;;  %v7613_v19 = vld [vmem:[#allocation34_spill] sm:$0xff] }
 0x7ee   : > { %v2870_v42 = vmul.f32 0.2, %v2806_v41 }
 0x7ef   : > { %v2903_v6 = vsel %vm2839_vm1, %v2807_v13, %v2871_v3  ;;  %vm2841_vm13 = vcmp.gt.f32.partialorder %v2809_v36, 0.0  ;;  %v2873_v63 = vmul.f32 0.2, %v2809_v36  ;;  %vm2822_vm1 = vcmp.gt.f32.partialorder %v2790_v16, 0.0 }
 0x7f0   : > { %v6928_v20 = vmul.f32 %v2903_v6, %v6461_v44  ;;  %v2888_v13 = vsel %vm2824_vm14, %v2792_v34, %v2856_v17 }
 0x7f1   : > { %3402 = vrot.lane.b32.xlu1 %v6778_v8, %s5118_s8  ;;  %3412 = vrot.lane.b32.xlu0 %v6888_v58, %s5118_s8  ;;  %v2882_v8 = vsel %vm2818_vm15, %v2786_v51, %v2850_v45  ;;  %vm2834_vm15 = vcmp.gt.f32.partialorder %v2802_v39, 0.0  ;;  %v2905_v52 = vsel %vm2841_vm13, %v2809_v36, %v2873_v63  ;;  %v2886_v51 = vsel %vm2822_vm1, %v2790_v16, %v2854_v1 }
 0x7f2   : > { %v6917_v49 = vmul.f32 %v2882_v8, %v6461_v44  ;;  %v2898_v23 = vsel %vm2834_vm15, %v2802_v39, %v2866_v21  ;;  %v2937_v28 = vmul.f32 %v2905_v52, %v6461_v44  ;;  %v2918_v40 = vmul.f32 %v2886_v51, %v6461_v44 }
 0x7f3   : > { %v6952_v57 = vmul.f32 %v2898_v23, %v6461_v44  ;;  %v2598_v45 = vadd.f32 %v6765_v48, %v6738_v30  ;;  %v2612_v8 = vadd.f32 %v6765_v48, %v6899_v27  ;;  %vm2838_vm13 = vcmp.gt.f32.partialorder %v2806_v41, 0.0 }
 0x7f4   : > { %v2920_v30 = vmul.f32 %v2888_v13, %v6461_v44  ;;  %v2874_v48 = vmul.f32 0.2, %v2810_v11 }
 0x7f5   : > { %3430 = vrot.lane.b32.xlu1 %v6902_v55, %s5118_s8  ;;  %3416 = vrot.lane.b32.xlu0 %v6905_v43, %s5118_s8  ;;  %v2794_v56 = vadd.f32 %v7613_v19, %v2598_v45  ;;  %v2808_v61 = vadd.f32 %v6720_v62, %v2612_v8 }
 0x7f7   : > { %v2858_v3 = vmul.f32 0.2, %v2794_v56  ;;  %vm2826_vm15 = vcmp.gt.f32.partialorder %v2794_v56, 0.0  ;;  %v2872_v36 = vmul.f32 0.2, %v2808_v61  ;;  %vm2840_vm1 = vcmp.gt.f32.partialorder %v2808_v61, 0.0 }
 0x7f9   : > { %3406 = vrot.lane.b32.xlu1 %v6794_v53, %s5118_s8  ;;  %3392 = vrot.lane.b32.xlu0 %v6917_v49, %s5118_s8  ;;  %v6941_v53 = vmul.f32 %v2884_v54, %v6461_v44  ;;  %v2890_v27 = vsel %vm2826_vm15, %v2794_v56, %v2858_v3  ;;  %v2904_v4 = vsel %vm2840_vm1, %v2808_v61, %v2872_v36 }
 0x7fa   : > { %v2922_v62 = vmul.f32 %v2890_v27, %v6461_v44 }
 0x7fd   : > { %3434 = vrot.lane.b32.xlu1 %v6928_v20, %s5118_s8  ;;  %3420 = vrot.lane.b32.xlu0 %v6931_v18, %s5118_s8 }
 0x801   : > { %3410 = vrot.lane.b32.xlu1 %v6814_v31, %s5118_s8  ;;  %3396 = vrot.lane.b32.xlu0 %v6941_v53, %s5118_s8  ;;  %v2900_v31 = vsel %vm2836_vm2, %v2804_v47, %v2868_v38  ;;  %vm2842_vm2 = vcmp.gt.f32.partialorder %v2810_v11, 0.0 }
 0x802   : > { %v2932_v59 = vmul.f32 %v2900_v31, %v6461_v44  ;;  %v2906_v6 = vsel %vm2842_vm2, %v2810_v11, %v2874_v48 }
 0x803   : > { %v2938_v12 = vmul.f32 %v2906_v6, %v6461_v44 }
 0x805   : > { %3438 = vrot.lane.b32.xlu1 %v2937_v28, %s5118_s8  ;;  %3424 = vrot.lane.b32.xlu0 %v6952_v57, %s5118_s8 }
 0x809   : > { %3442 = vrot.lane.b32.xlu1 %v6826_v26, %s5118_s8  ;;  %3400 = vrot.lane.b32.xlu0 %v2918_v40, %s5118_s8  ;;  %v2902_v26 = vsel %vm2838_vm13, %v2806_v41, %v2870_v42 }
 0x80d   : > { %2974 = vrot.lane.b32.xlu1 %v6731_v25, %s5116_s16  ;;  %3428 = vrot.lane.b32.xlu0 %v2932_v59, %s5118_s8  ;;  %v2934_v25 = vmul.f32 %v2902_v26, %v6461_v44 }
 0x811   : > { %2978 = vrot.lane.b32.xlu1 %v6750_v15, %s5116_s16  ;;  %3404 = vrot.lane.b32.xlu0 %v2920_v30, %s5118_s8  ;;  %v2936_v15 = vmul.f32 %v2904_v4, %v6461_v44 }
 0x815   : > { %2982 = vrot.lane.b32.xlu1 %v6775_v7, %s5116_s16  ;;  %3432 = vrot.lane.b32.xlu0 %v2934_v25, %s5118_s8 }
 0x819   : > { %3006 = vrot.lane.b32.xlu1 %v6791_v32, %s5116_s16  ;;  %3408 = vrot.lane.b32.xlu0 %v2922_v62, %s5118_s8 }
 0x81d   : > { %3010 = vrot.lane.b32.xlu1 %v6811_v24, %s5116_s16  ;;  %3436 = vrot.lane.b32.xlu0 %v2936_v15, %s5118_s8 }
 0x821   : > { %3014 = vrot.lane.b32.xlu1 %v6843_v5, %s5116_s16  ;;  %3440 = vrot.lane.b32.xlu0 %v2938_v12, %s5118_s8 }
 0x825   : > { %3018 = vrot.lane.b32.xlu1 %v6871_v10, %s5116_s16  ;;  %2972 = vrot.lane.b32.xlu0 %v6846_v60, %s5116_s16 }
 0x829   : > { %3022 = vrot.lane.b32.xlu1 %v6902_v55, %s5116_s16  ;;  %2976 = vrot.lane.b32.xlu0 %v6857_v22, %s5116_s16 }
 0x82d   : > { %3026 = vrot.lane.b32.xlu1 %v6928_v20, %s5116_s16  ;;  %2980 = vrot.lane.b32.xlu0 %v6874_v37, %s5116_s16 }
 0x831   : > { %3030 = vrot.lane.b32.xlu1 %v2937_v28, %s5116_s16  ;;  %3004 = vrot.lane.b32.xlu0 %v6888_v58, %s5116_s16 }
 0x835   : > { %2984 = vrot.lane.b32.xlu1 %v6917_v49, %s5116_s16  ;;  %3008 = vrot.lane.b32.xlu0 %v6905_v43, %s5116_s16 }
 0x839   : > { %3012 = vrot.lane.b32.xlu1 %v6931_v18, %s5116_s16 }
 0x83d   : > { %2988 = vrot.lane.b32.xlu1 %v6941_v53, %s5116_s16 }
 0x83f   : > { %v3383_v44 = vpop.permute.xlu1 %3382  ;;  %v7021_v7 = vpop.permute.xlu0 %2986 }
 0x840   : > { %v3479_v42 = vsel %vm542_vm0, %v3383_v44, 0.0 }
 0x841   : > { %3016 = vrot.lane.b32.xlu1 %v6952_v57, %s5116_s16 }
 0x843   : > { %v3387_v32 = vpop.permute.xlu1 %3386  ;;  %v7025_v24 = vpop.permute.xlu0 %2990 }
 0x844   : > { %v3485_v49 = vsel %vm542_vm0, %v3387_v32, 0.0 }
 0x845   : > { %2992 = vrot.lane.b32.xlu1 %v2918_v40, %s5116_s16 }
 0x847   : > { %v3391_v5 = vpop.permute.xlu1 %3390  ;;  %v7028_v60 = vpop.permute.xlu0 %2994 }
 0x849   : > { %3020 = vrot.lane.b32.xlu1 %v2932_v59, %s5116_s16 }
 0x84b   : > { %v3415_v22 = vpop.permute.xlu1 %3414  ;;  %v7031_v10 = vpop.permute.xlu0 %2998 }
 0x84c   : > { %v3527_v39 = vsel %vm542_vm0, %v3415_v22, 0.0 }
 0x84d   : > { %2996 = vrot.lane.b32.xlu1 %v2920_v30, %s5116_s16  ;;  %v3491_v30 = vsel %vm542_vm0, %v3391_v5, 0.0 }
 0x84f   : > { %v3419_v37 = vpop.permute.xlu1 %3418  ;;  %v7034_v58 = vpop.permute.xlu0 %3002 }
 0x850   : > { %v3533_v63 = vsel %vm542_vm0, %v3419_v37, 0.0 }
 0x851   : > { %3024 = vrot.lane.b32.xlu1 %v2934_v25, %s5116_s16 }
 0x853   : > { %v3395_v55 = vpop.permute.xlu1 %3394  ;;  %v7037_v43 = vpop.permute.xlu0 %3034 }
 0x854   : > { %3486 = vadd.xlane.f32.xlu0 %v3485_v49  ;;  %v3497_v29 = vsel %vm542_vm0, %v3395_v55, 0.0 }
 0x855   : > { %3000 = vrot.lane.b32.xlu1 %v2922_v62, %s5116_s16 }
 0x857   : > { %v3423_v0 = vpop.permute.xlu1 %3422  ;;  %v3381_v33 = vpop.permute.xlu0 %3380 }
 0x858   : > { %3528 = vadd.xlane.f32.xlu0 %v3527_v39  ;;  %v3539_v16 = vsel %vm542_vm0, %v3423_v0, 0.0  ;;  %v3476_v26 = vsel %vm542_vm0, %v3381_v33, 0.0 }
 0x859   : > { %3028 = vrot.lane.b32.xlu1 %v2936_v15, %s5116_s16 }
 0x85b   : > { %v3399_v20 = vpop.permute.xlu1 %3398  ;;  %v3385_v18 = vpop.permute.xlu0 %3384 }
 0x85c   : > { %3534 = vadd.xlane.f32.xlu0 %v3533_v63  ;;  %v3482_v25 = vsel %vm542_vm0, %v3385_v18, 0.0  ;;  %v3503_v11 = vsel %vm542_vm0, %v3399_v20, 0.0 }
 0x85d   : > { %3032 = vrot.lane.b32.xlu1 %v2938_v12, %s5116_s16 }
 0x85f   : > { %v3427_v54 = vpop.permute.xlu1 %3426  ;;  %v3389_v21 = vpop.permute.xlu0 %3388 }
 0x860   : > { %3540 = vadd.xlane.f32.xlu0 %v3539_v16  ;;  %v3545_v52 = vsel %vm542_vm0, %v3427_v54, 0.0  ;;  %v3488_v62 = vsel %vm542_vm0, %v3389_v21, 0.0 }
 0x863   : > { %v3403_v50 = vpop.permute.xlu1 %3402  ;;  %v3413_v53 = vpop.permute.xlu0 %3412 }
 0x864   : > { %3546 = vadd.xlane.f32.xlu0 %v3545_v52  ;;  %v3509_v48 = vsel %vm542_vm0, %v3403_v50, 0.0  ;;  %v3524_v15 = vsel %vm542_vm0, %v3413_v53, 0.0 }
 0x867   : > { %v3431_v23 = vpop.permute.xlu1 %3430  ;;  %v3417_v1 = vpop.permute.xlu0 %3416 }
 0x868   : > { %v3551_v47 = vsel %vm542_vm0, %v3431_v23, 0.0  ;;  %v3530_v37 = vsel %vm542_vm0, %v3417_v1, 0.0 }
 0x869   : > { %3552 = vadd.xlane.f32.xlu0 %v3551_v47 }
 0x86b   : > { %v3407_v35 = vpop.permute.xlu1 %3406  ;;  %v3393_v28 = vpop.permute.xlu0 %3392 }
 0x86c   : > { %v3515_v44 = vsel %vm542_vm0, %v3407_v35, 0.0  ;;  %v3494_v32 = vsel %vm542_vm0, %v3393_v28, 0.0 }
 0x86f   : > { %v3435_v57 = vpop.permute.xlu1 %3434  ;;  %v3421_v51 = vpop.permute.xlu0 %3420 }
 0x870   : > { %v3557_v38 = vsel %vm542_vm0, %v3435_v57, 0.0  ;;  %v3536_v55 = vsel %vm542_vm0, %v3421_v51, 0.0 }
 0x871   : > { %3558 = vadd.xlane.f32.xlu0 %v3557_v38 }
 0x873   : > { %v3411_v9 = vpop.permute.xlu1 %3410  ;;  %v3397_v34 = vpop.permute.xlu0 %3396 }
 0x874   : > { %v3521_v14 = vsel %vm542_vm0, %v3411_v9, 0.0  ;;  %v3500_v0 = vsel %vm542_vm0, %v3397_v34, 0.0 }
 0x875   : > { %3522 = vadd.xlane.f32.xlu0 %v3521_v14 }
 0x877   : > { %v3439_v40 = vpop.permute.xlu1 %3438  ;;  %v3425_v31 = vpop.permute.xlu0 %3424 }
 0x878   : > { %v3563_v17 = vsel %vm542_vm0, %v3439_v40, 0.0  ;;  %v3542_v18 = vsel %vm542_vm0, %v3425_v31, 0.0 }
 0x879   : > { %3564 = vadd.xlane.f32.xlu0 %v3563_v17 }
 0x87b   : > { %v3443_v46 = vpop.permute.xlu1 %3442  ;;  %v3401_v41 = vpop.permute.xlu0 %3400 }
 0x87c   : > { %v3569_v45 = vsel %vm542_vm0, %v3443_v46, 0.0  ;;  %v3506_v16 = vsel %vm542_vm0, %v3401_v41, 0.0 }
 0x87d   : > { %3570 = vadd.xlane.f32.xlu0 %v3569_v45 }
 0x87f   : > { %v2975_v59 = vpop.permute.xlu1 %2974  ;;  %v3429_v13 = vpop.permute.xlu0 %3428 }
 0x880   : > { %v3071_v19 = vsel %vm542_vm0, %v2975_v59, 0.0  ;;  %v3548_v52 = vsel %vm542_vm0, %v3429_v13, 0.0 }
 0x881   : > { %3480 = vadd.xlane.f32.xlu1 %v3479_v42  ;;  %3072 = vadd.xlane.f32.xlu0 %v3071_v19 }
 0x883   : > { %v7054_v56 = vpop.permute.xlu1 %2978  ;;  %v3405_v8 = vpop.permute.xlu0 %3404 }
 0x884   : > { %v3512_v28 = vsel %vm542_vm0, %v3405_v8, 0.0  ;;  %v3077_v14 = vsel %vm542_vm0, %v7054_v56, 0.0  ;;  %v3089_v8 = vsel %vm542_vm0, %v7021_v7, 0.0 }
 0x885   : > { %3492 = vadd.xlane.f32.xlu1 %v3491_v30  ;;  %3477 = vadd.xlane.f32.xlu0 %v3476_v26 }
 0x887   : > { %v7058_v3 = vpop.permute.xlu1 %2982  ;;  %v3433_v61 = vpop.permute.xlu0 %3432 }
 0x888   : > { %v3554_v38 = vsel %vm542_vm0, %v3433_v61, 0.0  ;;  %v3083_v46 = vsel %vm542_vm0, %v7058_v3, 0.0 }
 0x889   : > { %3498 = vadd.xlane.f32.xlu1 %v3497_v29  ;;  %3483 = vadd.xlane.f32.xlu0 %v3482_v25  ;;  %v3095_v29 = vsel %vm542_vm0, %v7025_v24, 0.0 }
 0x88b   : > { %v7062_v27 = vpop.permute.xlu1 %3006  ;;  %v3409_v36 = vpop.permute.xlu0 %3408 }
 0x88c   : > { %v3518_v33 = vsel %vm542_vm0, %v3409_v36, 0.0  ;;  %v3119_v45 = vsel %vm542_vm0, %v7062_v27, 0.0 }
 0x88d   : > { %3504 = vadd.xlane.f32.xlu1 %v3503_v11  ;;  %3489 = vadd.xlane.f32.xlu0 %v3488_v62  ;;  %v3101_v11 = vsel %vm542_vm0, %v7028_v60, 0.0 }
 0x88f   : > { %v7066_v4 = vpop.permute.xlu1 %3010  ;;  %v3437_v6 = vpop.permute.xlu0 %3436 }
 0x890   : > { %v3560_v63 = vsel %vm542_vm0, %v3437_v6, 0.0  ;;  %v3125_v42 = vsel %vm542_vm0, %v7066_v4, 0.0  ;;  %v3107_v6 = vsel %vm542_vm0, %v7031_v10, 0.0 }
 0x891   : > { %3510 = vadd.xlane.f32.xlu1 %v3509_v48  ;;  %3525 = vadd.xlane.f32.xlu0 %v3524_v15 }
 0x893   : > { %v7070_v12 = vpop.permute.xlu1 %3014  ;;  %v3441_v5 = vpop.permute.xlu0 %3440 }
 0x894   : > { %v3566_v50 = vsel %vm542_vm0, %v3441_v5, 0.0  ;;  %v3131_v26 = vsel %vm542_vm0, %v7070_v12, 0.0 }
 0x895   : > { %3516 = vadd.xlane.f32.xlu1 %v3515_v44  ;;  %3495 = vadd.xlane.f32.xlu0 %v3494_v32 }
 0x897   : > { %v7074_v22 = vpop.permute.xlu1 %3018  ;;  %v2973_v39 = vpop.permute.xlu0 %2972 }
 0x898   : > { %v3068_v23 = vsel %vm542_vm0, %v2973_v39, 0.0  ;;  %v3137_v27 = vsel %vm542_vm0, %v7074_v22, 0.0 }
 0x899   : > { %3531 = vadd.xlane.f32.xlu1 %v3530_v37  ;;  %3537 = vadd.xlane.f32.xlu0 %v3536_v55  ;;  %v3113_v37 = vsel %vm542_vm0, %v7034_v58, 0.0 }
 0x89b   : > { %v7078_v49 = vpop.permute.xlu1 %3022  ;;  %v2977_v54 = vpop.permute.xlu0 %2976 }
 0x89c   : > { %v3074_v35 = vsel %vm542_vm0, %v2977_v54, 0.0  ;;  %v3143_v24 = vsel %vm542_vm0, %v7078_v49, 0.0 }
 0x89d   : > { %3501 = vadd.xlane.f32.xlu0 %v3500_v0  ;;  %3519 = vadd.xlane.f32.xlu1 %v3518_v33  ;;  %v3161_v0 = vsel %vm542_vm0, %v7037_v43, 0.0 }
 0x89f   : > { %v7082_v20 = vpop.permute.xlu1 %3026  ;;  %v2981_v1 = vpop.permute.xlu0 %2980 }
 0x8a0   : > { %v3080_v51 = vsel %vm542_vm0, %v2981_v1, 0.0  ;;  %v3149_v60 = vsel %vm542_vm0, %v7082_v20, 0.0 }
 0x8a1   : > { %3543 = vadd.xlane.f32.xlu0 %v3542_v18  ;;  %3561 = vadd.xlane.f32.xlu1 %v3560_v63 }
 0x8a3   : > { %v7086_v21 = vpop.permute.xlu1 %3030  ;;  %v3005_v57 = vpop.permute.xlu0 %3004 }
 0x8a4   : > { %v3116_v34 = vsel %vm542_vm0, %v3005_v57, 0.0  ;;  %v3155_v55 = vsel %vm542_vm0, %v7086_v21, 0.0  ;;  %v7614_v57 = vld [vmem:[#allocation63_spill] sm:$0xff] }
 0x8a5   : > { %3507 = vadd.xlane.f32.xlu0 %v3506_v16  ;;  %3567 = vadd.xlane.f32.xlu1 %v3566_v50 }
 0x8a7   : > { %v2985_v53 = vpop.permute.xlu1 %2984  ;;  %v3009_v40 = vpop.permute.xlu0 %3008 }
 0x8a8   : > { %v3122_v17 = vsel %vm542_vm0, %v3009_v40, 0.0  ;;  %v3086_v41 = vsel %vm542_vm0, %v2985_v53, 0.0 }
 0x8a9   : > { %3549 = vadd.xlane.f32.xlu0 %v3548_v52  ;;  %3069 = vadd.xlane.f32.xlu1 %v3068_v23 }
 0x8ab   : > { %v3013_v47 = vpop.permute.xlu1 %3012 }
 0x8ac   : > { %v3128_v13 = vsel %vm542_vm0, %v3013_v47, 0.0 }
 0x8ad   : > { %3513 = vadd.xlane.f32.xlu0 %v3512_v28  ;;  %3075 = vadd.xlane.f32.xlu1 %v3074_v35 }
 0x8af   : > { %v2989_v9 = vpop.permute.xlu1 %2988 }
 0x8b0   : > { %v3092_v56 = vsel %vm542_vm0, %v2989_v9, 0.0 }
 0x8b1   : > { %3555 = vadd.xlane.f32.xlu0 %v3554_v38  ;;  %3081 = vadd.xlane.f32.xlu1 %v3080_v51  ;;  %v7615_v38 = vld [vmem:[#allocation61_spill] sm:$0xff] }
 0x8b3   : > { %v3017_v31 = vpop.permute.xlu1 %3016 }
 0x8b4   : > { %v3134_v30 = vsel %vm542_vm0, %v3017_v31, 0.0 }
 0x8b5   : > { %3078 = vadd.xlane.f32.xlu0 %v3077_v14  ;;  %3117 = vadd.xlane.f32.xlu1 %v3116_v34 }
 0x8b7   : > { %v2993_v59 = vpop.permute.xlu1 %2992 }
 0x8b8   : > { %v3098_v61 = vsel %vm542_vm0, %v2993_v59, 0.0 }
 0x8b9   : > { %3084 = vadd.xlane.f32.xlu0 %v3083_v46  ;;  %3123 = vadd.xlane.f32.xlu1 %v3122_v17 }
 0x8bb   : > { %v3021_v19 = vpop.permute.xlu1 %3020 }
 0x8bc   : > { %v3140_v7 = vsel %vm542_vm0, %v3021_v19, 0.0 }
 0x8bd   : > { %3120 = vadd.xlane.f32.xlu0 %v3119_v45  ;;  %3087 = vadd.xlane.f32.xlu1 %v3086_v41 }
 0x8bf   : > { %v2997_v3 = vpop.permute.xlu1 %2996 }
 0x8c0   : > { %v3104_v36 = vsel %vm542_vm0, %v2997_v3, 0.0 }
 0x8c1   : > { %3126 = vadd.xlane.f32.xlu0 %v3125_v42  ;;  %3129 = vadd.xlane.f32.xlu1 %v3128_v13 }
 0x8c3   : > { %v3025_v25 = vpop.permute.xlu1 %3024 }
 0x8c4   : > { %v3146_v4 = vsel %vm542_vm0, %v3025_v25, 0.0 }
 0x8c5   : > { %3090 = vadd.xlane.f32.xlu0 %v3089_v8  ;;  %3093 = vadd.xlane.f32.xlu1 %v3092_v56 }
 0x8c7   : > { %v3001_v62 = vpop.permute.xlu1 %3000 }
 0x8c8   : > { %v3110_v15 = vsel %vm542_vm0, %v3001_v62, 0.0 }
 0x8c9   : > { %3132 = vadd.xlane.f32.xlu0 %v3131_v26  ;;  %3135 = vadd.xlane.f32.xlu1 %v3134_v30 }
 0x8cb   : > { %v3029_v48 = vpop.permute.xlu1 %3028 }
 0x8cc   : > { %v3152_v44 = vsel %vm542_vm0, %v3029_v48, 0.0 }
 0x8cd   : > { %3096 = vadd.xlane.f32.xlu0 %v3095_v29  ;;  %3099 = vadd.xlane.f32.xlu1 %v3098_v61 }
 0x8cf   : > { %v3033_v32 = vpop.permute.xlu1 %3032 }
 0x8d0   : > { %v3158_v22 = vsel %vm542_vm0, %v3033_v32, 0.0 }
 0x8d1   : > { %3138 = vadd.xlane.f32.xlu0 %v3137_v27  ;;  %3141 = vadd.xlane.f32.xlu1 %v3140_v7 }
 0x8d5   : > { %3102 = vadd.xlane.f32.xlu0 %v3101_v11  ;;  %3105 = vadd.xlane.f32.xlu1 %v3104_v36 }
 0x8d9   : > { %3144 = vadd.xlane.f32.xlu0 %v3143_v24  ;;  %3147 = vadd.xlane.f32.xlu1 %v3146_v4 }
 0x8dd   : > { %3108 = vadd.xlane.f32.xlu0 %v3107_v6  ;;  %3111 = vadd.xlane.f32.xlu1 %v3110_v15  ;;  %v7129_v12 = vpop.xlane.xlu0 %3486 }
 0x8de   : > { %v3620_v11 = vrot.slane %v7129_v12, %v7615_v38 }
 0x8e1   : > { %3150 = vadd.xlane.f32.xlu0 %v3149_v60  ;;  %3153 = vadd.xlane.f32.xlu1 %v3152_v44  ;;  %v3529_v5 = vpop.xlane.xlu0 %3528 }
 0x8e2   : > { %v3683_v9 = vrot.slane %v3529_v5, %v7615_v38 }
 0x8e5   : > { %3114 = vadd.xlane.f32.xlu0 %v3113_v37  ;;  %3159 = vadd.xlane.f32.xlu1 %v3158_v22  ;;  %v3535_v10 = vpop.xlane.xlu0 %3534 }
 0x8e6   : > { %v3692_v40 = vrot.slane %v3535_v10, %v7615_v38 }
 0x8e9   : > { %3156 = vadd.xlane.f32.xlu0 %v3155_v55  ;;  %v3541_v49 = vpop.xlane.xlu0 %3540 }
 0x8ea   : > { %v3701_v31 = vrot.slane %v3541_v49, %v7615_v38 }
 0x8ed   : > { %3162 = vadd.xlane.f32.xlu0 %v3161_v0  ;;  %v3547_v33 = vpop.xlane.xlu0 %3546 }
 0x8ee   : > { %v3710_v26 = vrot.slane %v3547_v33, %v7615_v38 }
 0x8f2   : > { %v7141_v39 = vpop.xlane.xlu0 %3552 }
 0x8f3   : > { %v3719_v12 = vrot.slane %v7141_v39, %v7615_v38 }
 0x8fa   : > { %v7143_v20 = vpop.xlane.xlu0 %3558 }
 0x8fe   : > { %v7145_v18 = vpop.xlane.xlu0 %3522 }
 0x902   : > { %v7147_v58 = vpop.xlane.xlu0 %3564 }
 0x906   : > { %v7149_v63 = vpop.xlane.xlu0 %3570 }
 0x90a   : > { %v3481_v54 = vpop.xlane.xlu1 %3480  ;;  %v7151_v16 = vpop.xlane.xlu0 %3072 }
 0x90b   : > { %v3611_v15 = vrot.slane %v3481_v54, %v7615_v38 }
 0x90e   : > { %v3493_v21 = vpop.xlane.xlu1 %3492  ;;  %v3478_v50 = vpop.xlane.xlu0 %3477 }
 0x90f   : > { %v3607_v62 = vrot.slane %v3478_v50, %v7614_v57  ;;  %v3629_v4 = vrot.slane %v3493_v21, %v7615_v38 }
 0x911   : > { %v3612_v55 = vsel %vm1609_vm3, %v3611_v15, %v3607_v62 }
 0x912   : > { %v3499_v53 = vpop.xlane.xlu1 %3498  ;;  %v3484_v52 = vpop.xlane.xlu0 %3483 }
 0x913   : > { %v3616_v29 = vrot.slane %v3484_v52, %v7614_v57  ;;  %v3638_v6 = vrot.slane %v3499_v53, %v7615_v38 }
 0x915   : > { %v3621_v60 = vsel %vm1609_vm3, %v3620_v11, %v3616_v29 }
 0x916   : > { %v3505_v43 = vpop.xlane.xlu1 %3504  ;;  %v3490_v23 = vpop.xlane.xlu0 %3489  ;;  %v3748_v33 = vsel %vm1746_vm4, %v3621_v60, %v3612_v55 }
 0x917   : > { %v3625_v36 = vrot.slane %v3490_v23, %v7614_v57  ;;  %v3647_v22 = vrot.slane %v3505_v43, %v7615_v38 }
 0x919   : > { %v3630_v37 = vsel %vm1609_vm3, %v3629_v4, %v3625_v36 }
 0x91a   : > { %v3511_v1 = vpop.xlane.xlu1 %3510  ;;  %v3526_v47 = vpop.xlane.xlu0 %3525  ;;  %v3749_v39 = vsel %vm1748_vm5, %v3630_v37, %v3748_v33 }
 0x91b   : > { %v3679_v51 = vrot.slane %v3526_v47, %v7614_v57  ;;  %v3656_v49 = vrot.slane %v3511_v1, %v7615_v38 }
 0x91d   : > { %v3684_v41 = vsel %vm1609_vm3, %v3683_v9, %v3679_v51  ;;  %v3674_v51 = vrot.slane %v7145_v18, %v7615_v38 }
 0x91e   : > { %v3517_v35 = vpop.xlane.xlu1 %3516  ;;  %v3496_v28 = vpop.xlane.xlu0 %3495 }
 0x91f   : > { %v3634_v24 = vrot.slane %v3496_v28, %v7614_v57  ;;  %v3665_v1 = vrot.slane %v3517_v35, %v7615_v38 }
 0x921   : > { %v3639_v0 = vsel %vm1609_vm3, %v3638_v6, %v3634_v24 }
 0x922   : > { %v3532_v34 = vpop.xlane.xlu1 %3531  ;;  %v3538_v14 = vpop.xlane.xlu0 %3537  ;;  %v3750_v47 = vsel %vm1750_vm6, %v3639_v0, %v3749_v39 }
 0x923   : > { %v3688_v17 = vrot.slane %v3532_v34, %v7614_v57  ;;  %v3697_v46 = vrot.slane %v3538_v14, %v7614_v57 }
 0x925   : > { %v3693_v45 = vsel %vm1609_vm3, %v3692_v40, %v3688_v17  ;;  %v3702_v59 = vsel %vm1609_vm3, %v3701_v31, %v3697_v46 }
 0x926   : > { %v3755_v13 = vsel %vm1746_vm4, %v3693_v45, %v3684_v41  ;;  %v3520_v42 = vpop.xlane.xlu1 %3519  ;;  %v3502_v19 = vpop.xlane.xlu0 %3501  ;;  %v3728_v41 = vrot.slane %v7143_v20, %v7615_v38 }
 0x927   : > { %v3756_v56 = vsel %vm1748_vm5, %v3702_v59, %v3755_v13  ;;  %v3643_v48 = vrot.slane %v3502_v19, %v7614_v57  ;;  %v3670_v50 = vrot.slane %v3520_v42, %v7614_v57  ;;  %v3737_v13 = vrot.slane %v7147_v58, %v7615_v38 }
 0x929   : > { %v3648_v54 = vsel %vm1609_vm3, %v3647_v22, %v3643_v48  ;;  %v3675_v40 = vsel %vm1609_vm3, %v3674_v51, %v3670_v50 }
 0x92a   : > { %v3562_v8 = vpop.xlane.xlu1 %3561  ;;  %v3544_v30 = vpop.xlane.xlu0 %3543  ;;  %v3751_v9 = vsel %vm1752_vm7, %v3648_v54, %v3750_v47  ;;  %v3203_v47 = vrot.slane %v7151_v16, %v7615_v38 }
 0x92b   : > { %v3706_v3 = vrot.slane %v3544_v30, %v7614_v57  ;;  %v3733_v31 = vrot.slane %v3562_v8, %v7614_v57 }
 0x92d   : > { %v3711_v61 = vsel %vm1609_vm3, %v3710_v26, %v3706_v3  ;;  %v3738_v30 = vsel %vm1609_vm3, %v3737_v13, %v3733_v31 }
 0x92e   : > { %v3757_v25 = vsel %vm1750_vm6, %v3711_v61, %v3756_v56  ;;  %v3568_v7 = vpop.xlane.xlu1 %3567  ;;  %v3508_v27 = vpop.xlane.xlu0 %3507  ;;  %v3746_v56 = vrot.slane %v7149_v63, %v7615_v38  ;;  %v7617_v63 = vld [vmem:[#allocation64_spill] sm:$0xff] }
 0x92f   : > { %v3652_v44 = vrot.slane %v3508_v27, %v7614_v57  ;;  %v3742_v45 = vrot.slane %v3568_v7, %v7614_v57  ;;  %vm7618_vm14 = vcmp.gt.f32.partialorder %v7617_v63, 0.0 }
 0x931   : > { %v3657_v53 = vsel %vm1609_vm3, %v3656_v49, %v3652_v44  ;;  %v3747_v61 = vsel %vm1609_vm3, %v3746_v56, %v3742_v45 }
 0x932   : > { %v7180_v32 = vpop.xlane.xlu1 %3069  ;;  %v3550_v5 = vpop.xlane.xlu0 %3549  ;;  %v3752_v34 = vsel %vm1754_vm8, %v3657_v53, %v3751_v9 }
 0x933   : > { %v3715_v10 = vrot.slane %v3550_v5, %v7614_v57  ;;  %v3199_v39 = vrot.slane %v7180_v32, %v7614_v57 }
 0x935   : > { %v3720_v21 = vsel %vm1609_vm3, %v3719_v12, %v3715_v10 }
 0x936   : > { %v3758_v52 = vsel %vm1752_vm7, %v3720_v21, %v3757_v25  ;;  %v7197_v43 = vpop.xlane.xlu1 %3075  ;;  %v3514_v23 = vpop.xlane.xlu0 %3513 }
 0x937   : > { %v3661_v28 = vrot.slane %v3514_v23, %v7614_v57  ;;  %v3208_v50 = vrot.slane %v7197_v43, %v7614_v57 }
 0x939   : > { %v3666_v14 = vsel %vm1609_vm3, %v3665_v1, %v3661_v28 }
 0x93a   : > { %v3082_v17 = vpop.xlane.xlu1 %3081  ;;  %v3556_v46 = vpop.xlane.xlu0 %3555  ;;  %v3753_v35 = vsel %vm1756_vm9, %v3666_v14, %v3752_v34 }
 0x93b   : > { %v3724_v18 = vrot.slane %v3556_v46, %v7614_v57  ;;  %v3754_v59 = vsel %vm1758_vm10, %v3675_v40, %v3753_v35  ;;  %v3204_v40 = vsel %vm1609_vm3, %v3203_v47, %v3199_v39 }
 0x93c   : > { %v7219_v19 = vsel %vm526_vm11, %v3754_v59, -1e+30 }
 0x93d   : > { %v3729_v8 = vsel %vm1609_vm3, %v3728_v41, %v3724_v18  ;;  %v3766_v20 = vsel %vm1771_vm12, %v7219_v19, -inf }
 0x93e   : > { %v3759_v26 = vsel %vm1754_vm8, %v3729_v8, %v3758_v52  ;;  %v7228_v3 = vpop.xlane.xlu1 %3117  ;;  %3767 = vmax.xlane.f32.xlu1 %v3766_v20  ;;  %v3079_v58 = vpop.xlane.xlu0 %3078  ;;  %v3217_v52 = vrot.slane %v3082_v17, %v7614_v57 }
 0x93f   : > { %v3760_v29 = vsel %vm1756_vm9, %v3738_v30, %v3759_v26  ;;  %v3212_v33 = vrot.slane %v3079_v58, %v7615_v38  ;;  %v3271_v45 = vrot.slane %v7228_v3, %v7614_v57 }
 0x940   : > { %v3761_v25 = vsel %vm1758_vm10, %v3747_v61, %v3760_v29 }
 0x941   : > { %v7235_v7 = vsel %vm7618_vm14, %v3761_v25, -1e+30  ;;  %v3213_v28 = vsel %vm1609_vm3, %v3212_v33, %v3208_v50 }
 0x942   : > { %v3124_v27 = vpop.xlane.xlu1 %3123  ;;  %v3085_v36 = vpop.xlane.xlu0 %3084  ;;  %v3769_v11 = vsel %vm1771_vm12, %v7235_v7, -inf  ;;  %v3340_v16 = vsel %vm1746_vm4, %v3213_v28, %v3204_v40 }
 0x943   : > { %3770 = vmax.xlane.f32.xlu0 %v3769_v11  ;;  %v3221_v54 = vrot.slane %v3085_v36, %v7615_v38  ;;  %v3280_v18 = vrot.slane %v3124_v27, %v7614_v57 }
 0x945   : > { %v3222_v32 = vsel %vm1609_vm3, %v3221_v54, %v3217_v52 }
 0x946   : > { %v3088_v62 = vpop.xlane.xlu1 %3087  ;;  %v7239_v24 = vpop.xlane.xlu0 %3120  ;;  %v3341_v59 = vsel %vm1748_vm5, %v3222_v32, %v3340_v16 }
 0x947   : > { %v3226_v51 = vrot.slane %v3088_v62, %v7614_v57  ;;  %v3275_v56 = vrot.slane %v7239_v24, %v7615_v38 }
 0x94a   : > { %v7241_v4 = vpop.xlane.xlu1 %3129  ;;  %v3127_v48 = vpop.xlane.xlu0 %3126 }
 0x94b   : > { %v3284_v46 = vrot.slane %v3127_v48, %v7615_v38  ;;  %v3289_v27 = vrot.slane %v7241_v4, %v7614_v57 }
 0x94d   : > { %v3285_v36 = vsel %vm1609_vm3, %v3284_v46, %v3280_v18 }
 0x94e   : > { %v3094_v15 = vpop.xlane.xlu1 %3093  ;;  %v3091_v6 = vpop.xlane.xlu0 %3090 }
 0x94f   : > { %v3230_v53 = vrot.slane %v3091_v6, %v7615_v38  ;;  %v3235_v43 = vrot.slane %v3094_v15, %v7614_v57 }
 0x951   : > { %v3231_v31 = vsel %vm1609_vm3, %v3230_v53, %v3226_v51 }
 0x952   : > { %v7243_v60 = vpop.xlane.xlu1 %3135  ;;  %v3133_v44 = vpop.xlane.xlu0 %3132  ;;  %v3342_v8 = vsel %vm1750_vm6, %v3231_v31, %v3341_v59 }
 0x953   : > { %v3293_v20 = vrot.slane %v3133_v44, %v7615_v38  ;;  %v3298_v24 = vrot.slane %v7243_v60, %v7614_v57  ;;  %v3276_v44 = vsel %vm1609_vm3, %v3275_v56, %v3271_v45 }
 0x954   : > { %v3347_v33 = vsel %vm1746_vm4, %v3285_v36, %v3276_v44  ;;  %vm7619_vm4 = vmmov %vm7618_vm14 }
 0x956   : > { %v3100_v5 = vpop.xlane.xlu1 %3099  ;;  %v3097_v12 = vpop.xlane.xlu0 %3096 }
 0x957   : > { %v3239_v23 = vrot.slane %v3097_v12, %v7615_v38  ;;  %v3244_v17 = vrot.slane %v3100_v5, %v7614_v57  ;;  %v3294_v5 = vsel %vm1609_vm3, %v3293_v20, %v3289_v27 }
 0x958   : > { %v3348_v50 = vsel %vm1748_vm5, %v3294_v5, %v3347_v33  ;;  %v3929_v33 = vld [vmem:[#allocation12 + $0x48] sm:$0xff] }
 0x959   : > { %v3240_v35 = vsel %vm1609_vm3, %v3239_v23, %v3235_v43 }
 0x95a   : > { %v7245_v22 = vpop.xlane.xlu1 %3141  ;;  %v3139_v37 = vpop.xlane.xlu0 %3138  ;;  %v3343_v61 = vsel %vm1752_vm7, %v3240_v35, %v3342_v8 }
 0x95b   : > { %v3302_v3 = vrot.slane %v3139_v37, %v7615_v38  ;;  %v3307_v4 = vrot.slane %v7245_v22, %v7614_v57 }
 0x95e   : > { %v3106_v10 = vpop.xlane.xlu1 %3105  ;;  %v3103_v55 = vpop.xlane.xlu0 %3102 }
 0x95f   : > { %v3248_v9 = vrot.slane %v3103_v55, %v7615_v38  ;;  %v3253_v41 = vrot.slane %v3106_v10, %v7614_v57  ;;  %v3303_v10 = vsel %vm1609_vm3, %v3302_v3, %v3298_v24 }
 0x961   : > { %v3249_v13 = vsel %vm1609_vm3, %v3248_v9, %v3244_v17 }
 0x962   : > { %v7247_v49 = vpop.xlane.xlu1 %3147  ;;  %v3145_v0 = vpop.xlane.xlu0 %3144  ;;  %v3344_v11 = vsel %vm1754_vm8, %v3249_v13, %v3343_v61 }
 0x963   : > { %v3311_v62 = vrot.slane %v3145_v0, %v7615_v38  ;;  %v3316_v60 = vrot.slane %v7247_v49, %v7614_v57  ;;  %v3349_v49 = vsel %vm1750_vm6, %v3303_v10, %v3348_v50  ;;  %v3924_v50 = vld [vmem:[#allocation12 + $0x20] sm:$0xff]  ;;  %vm3917_vm6 = vcmask 523264  }
 0x965   : > { %v3312_v54 = vsel %vm1609_vm3, %v3311_v62, %v3307_v4  ;;  %v7623_v62 = vld [vmem:[#allocation26_spill] sm:$0xff] }
 0x966   : > { %v3109_v21 = vpop.xlane.xlu0 %3108  ;;  %v3112_v1 = vpop.xlane.xlu1 %3111  ;;  %v3350_v23 = vsel %vm1752_vm7, %v3312_v54, %v3349_v49  ;;  %v3928_v54 = vld [vmem:[#allocation12 + $0x40] sm:$0xff]  ;;  %v3922_v49 = vld [vmem:[#allocation12 + $0x10] sm:$0xff]  ;;  %vm3932_vm7 = vcmask 785408  }
 0x967   : > { %v3257_v34 = vrot.slane %v3109_v21, %v7615_v38  ;;  %v3262_v29 = vrot.slane %v3112_v1, %v7614_v57 }
 0x969   : > { %v3258_v30 = vsel %vm1609_vm3, %v3257_v34, %v3253_v41  ;;  %v7620_v41 = vld [vmem:[#allocation60_spill] sm:$0xff] }
 0x96a   : > { %v3151_v14 = vpop.xlane.xlu0 %3150  ;;  %v3154_v26 = vpop.xlane.xlu1 %3153  ;;  %v3345_v6 = vsel %vm1756_vm9, %v3258_v30, %v3344_v11 }
 0x96b   : > { %v3320_v48 = vrot.slane %v3151_v14, %v7615_v38  ;;  %v3325_v21 = vrot.slane %v3154_v26, %v7614_v57  ;;  %v7621_v26 = vld [vmem:[#allocation28_spill] sm:$0xff] }
 0x96d   : > { %v3321_v53 = vsel %vm1609_vm3, %v3320_v48, %v3316_v60 }
 0x96e   : > { %v3115_v58 = vpop.xlane.xlu0 %3114  ;;  %v3160_v22 = vpop.xlane.xlu1 %3159  ;;  %v3351_v28 = vsel %vm1754_vm8, %v3321_v53, %v3350_v23  ;;  %v3923_v53 = vld [vmem:[#allocation12 + $0x18] sm:$0xff]  ;;  %vm5122_vm8 = vmmov 0  }
 0x96f   : > { %v3266_v25 = vrot.slane %v3115_v58, %v7615_v38  ;;  %v3334_v1 = vrot.slane %v3160_v22, %v7614_v57  ;;  %v7622_v58 = vld [vmem:[#allocation25_spill] sm:$0xff]  ;;  %v3926_v22 = vld [vmem:[#allocation12 + $0x30] sm:$0xff]  ;;  %v4795_v23 = vld [vmem:[#allocation11 + $0x8] sm:$0xff] }
 0x971   : > { %v3267_v15 = vsel %vm1609_vm3, %v3266_v25, %v3262_v29 }
 0x972   : > { %v3157_v12 = vpop.xlane.xlu0 %3156  ;;  %v3346_v37 = vsel %vm1758_vm10, %v3267_v15, %v3345_v6 }
 0x973   : > { %v3329_v55 = vrot.slane %v3157_v12, %v7615_v38  ;;  %v3356_v0 = vsel %vm526_vm11, %v3346_v37, -1e+30 }
 0x974   : > { %v3358_v39 = vsel %vm1771_vm12, %v3356_v0, -inf }
 0x975   : > { %3359 = vmax.xlane.f32.xlu1 %v3358_v39  ;;  %v3330_v52 = vsel %vm1609_vm3, %v3329_v55, %v3325_v21  ;;  %v3931_v55 = vld [vmem:[#allocation12 + $0x58] sm:$0xff]  ;;  %v3925_v39 = vld [vmem:[#allocation12 + $0x28] sm:$0xff] }
 0x976   : > { %v3163_v42 = vpop.xlane.xlu0 %3162  ;;  %v3352_v9 = vsel %vm1756_vm9, %v3330_v52, %v3351_v28  ;;  %4545 = vmatprep.subr.mxu0 %v3931_v55  ;;  %v3927_v21 = vld [vmem:[#allocation12 + $0x38] sm:$0xff]  ;;  %v3921_v52 = vld [vmem:[#allocation12 + $0x8] sm:$0xff] }
 0x977   : > { %v3338_v47 = vrot.slane %v3163_v42, %v7615_v38  ;;  %4546 = vmatpush3.msra.mxu0 %v3931_v55  ;;  %v3920_v42 = vld [vmem:[#allocation12] sm:$0xff]  ;;  %v4048_v28 = vld [vmem:[#allocation14 + $0x78] sm:$0xff] }
 0x978   : > { %v4131_v55 = vld [vmem:[#allocation15 + $0x20] sm:$0xff] }
 0x979   : > { %v3339_v51 = vsel %vm1609_vm3, %v3338_v47, %v3334_v1  ;;  %v7624_v1 = vld [vmem:[#allocation27_spill] sm:$0xff] }
 0x97a   : > { %v3353_v32 = vsel %vm1758_vm10, %v3339_v51, %v3352_v9  ;;  %v3890_v47 = vrot.slane %v4795_v23, %v7624_v1  ;;  %v5121_v9 = vmov 0.0  }
 0x97b   : > { %v3357_v43 = vsel %vm7619_vm4, %v3353_v32, -1e+30  ;;  %v4047_v32 = vld [vmem:[#allocation14 + $0x70] sm:$0xff] }
 0x97c   : > { %v3361_v34 = vsel %vm1771_vm12, %v3357_v43, -inf }
 0x97d   : > { %3362 = vmax.xlane.f32.xlu0 %v3361_v34 }
 0x9c7   : > { %v3768_v14 = vpop.xlane.xlu1 %3767 }
 0x9c8   : > { %v3772_v40 = vsub.f32 %v7219_v19, %v3768_v14 }
 0x9ca   : > { %v3774_v57 = vmul.f32 1.442695, %v3772_v40 }
 0x9cc   : > { %4778 = vpow2.f32 %v3774_v57  ;;  %v3771_v38 = vpop.xlane.xlu0 %3770 }
 0x9cd   : > { %v3773_v31 = vsub.f32 %v7235_v7, %v3771_v38 }
 0x9cf   : > { %v3776_v17 = vmul.f32 1.442695, %v3773_v31 }
 0x9d1   : > { %4780 = vpow2.f32 %v3776_v17 }
 0x9d9   : > { %v4779_v16 = vpop.eup %4778 }
 0x9da   : > { %v3778_v46 = vsel %vm1771_vm12, %v4779_v16, 0.0 }
 0x9db   : > { %3779 = vadd.xlane.f32.xlu1 %v3778_v46 }
 0x9de   : > { %v4781_v35 = vpop.eup %4780 }
 0x9df   : > { %v3781_v63 = vsel %vm1771_vm12, %v4781_v35, 0.0 }
 0x9e0   : > { %3782 = vadd.xlane.f32.xlu0 %v3781_v63 }
 0x9ec   : > { %3800 = vrot.lane.b32.xlu1 %v7620_v41, %s5119_s14 }
 0x9fe   : > { %v3360_v45 = vpop.xlane.xlu1 %3359 }
 0x9ff   : > { %v3364_v19 = vsub.f32 %v3356_v0, %v3360_v45  ;;  %v3930_v0 = vld [vmem:[#allocation12 + $0x50] sm:$0xff] }
 0xa00   : > { %4547 = vmatprep.subr.mxu0 %v3930_v0 }
 0xa01   : > { %v3366_v18 = vmul.f32 1.442695, %v3364_v19  ;;  %4548 = vmatpush3.msra.mxu0 %v3930_v0  ;;  %v4130_v0 = vld [vmem:[#allocation15 + $0x18] sm:$0xff] }
 0xa02   : > { %4549 = vmatprep.subr.mxu0 %v3929_v33 }
 0xa03   : > { %4782 = vpow2.f32 %v3366_v18  ;;  %4550 = vmatpush3.msra.mxu0 %v3929_v33  ;;  %v4797_v18 = vld [vmem:[%s5441_s2 + $0x8] sm:$0xff] }
 0xa04   : > { %4551 = vmatprep.subr.mxu0 %v3928_v54 }
 0xa05   : > { %4552 = vmatpush3.msra.mxu0 %v3928_v54 }
 0xa06   : > { %v3363_v59 = vpop.xlane.xlu0 %3362  ;;  %4553 = vmatprep.subr.mxu0 %v3927_v21 }
 0xa07   : > { %v3365_v13 = vsub.f32 %v3357_v43, %v3363_v59  ;;  %4554 = vmatpush3.msra.mxu0 %v3927_v21 }
 0xa08   : > { %4555 = vmatprep.subr.mxu0 %v3926_v22 }
 0xa09   : > { %v3368_v7 = vmul.f32 1.442695, %v3365_v13  ;;  %4556 = vmatpush3.msra.mxu0 %v3926_v22 }
 0xa0a   : > { %4557 = vmatprep.subr.mxu0 %v3925_v39 }
 0xa0b   : > { %4784 = vpow2.f32 %v3368_v7  ;;  %4558 = vmatpush3.msra.mxu0 %v3925_v39 }
 0xa0c   : > { %4559 = vmatprep.subr.mxu0 %v3924_v50 }
 0xa0d   : > { %4560 = vmatpush3.msra.mxu0 %v3924_v50 }
 0xa0e   : > { %4561 = vmatprep.subr.mxu0 %v3923_v53 }
 0xa0f   : > { %4562 = vmatpush3.msra.mxu0 %v3923_v53 }
 0xa10   : > { %v4783_v56 = vpop.eup %4782  ;;  %4563 = vmatprep.subr.mxu0 %v3922_v49 }
 0xa11   : > { %v3370_v8 = vsel %vm1771_vm12, %v4783_v56, 0.0  ;;  %4564 = vmatpush3.msra.mxu0 %v3922_v49  ;;  %v3899_v49 = vld [vmem:[#allocation17] sm:$0xff] }
 0xa12   : > { %3371 = vadd.xlane.f32.xlu1 %v3370_v8  ;;  %4565 = vmatprep.subr.mxu0 %v3921_v52  ;;  %v4045_v8 = vld [vmem:[#allocation14 + $0x60] sm:$0xff] }
 0xa13   : > { %4566 = vmatpush3.msra.mxu0 %v3921_v52  ;;  %v4023_v52 = vstv %s3900_s25 }
 0xa14   : > { %4567 = vmatprep.subr.mxu0 %v3920_v42  ;;  %v4024_v1 = vmul.f32 %v4023_v52, %v3899_v49 }
 0xa15   : > { %4568 = vmatpush3.msra.mxu0 %v3920_v42 }
 0xa16   : > { %4607 = vmatprep.subr.mxu0 %v5121_v9 }
 0xa18   : > { %v4785_v20 = vpop.eup %4784 }
 0xa19   : > { %v3373_v30 = vsel %vm1771_vm12, %v4785_v20, 0.0 }
 0xa1a   : > { %3374 = vadd.xlane.f32.xlu0 %v3373_v30  ;;  %v4043_v30 = vld [vmem:[#allocation14 + $0x50] sm:$0xff] }
 0xa30   : > { %3798 = vrot.lane.b32.xlu0 %v7621_v26, %s5119_s14 }
 0xa34   : > { %3901 = vrot.lane.b32.xlu0 %v7622_v58, %s5118_s8  ;;  %v4041_v58 = vld [vmem:[#allocation14 + $0x40] sm:$0xff] }
 0xa64   : > { %v3780_v61 = vpop.xlane.xlu1 %3779 }
 0xa65   : > { %4786 = vrcp.f32 %v3780_v61  ;;  %v4142_v61 = vld [vmem:[#allocation15 + $0x78] sm:$0xff] }
 0xa68   : > { %v3801_v3 = vpop.permute.xlu1 %3800 }
 0xa69   : > { %4534 = vmatprep.subr.mxu1 %v3801_v3  ;;  %v3783_v29 = vpop.xlane.xlu0 %3782 }
 0xa6a   : > { %4788 = vrcp.f32 %v3783_v29  ;;  %4535 = vmatpush3.msra.mxu1 %v3801_v3  ;;  %v4141_v3 = vld [vmem:[#allocation15 + $0x70] sm:$0xff]  ;;  %v4040_v29 = vld [vmem:[#allocation14 + $0x38] sm:$0xff] }
 0xa72   : > { %v4787_v25 = vpop.eup %4786 }
 0xa73   : > { %v3785_v27 = vmul.f32 %v4787_v25, %v4779_v16  ;;  %v4140_v25 = vld [vmem:[#allocation15 + $0x68] sm:$0xff] }
 0xa75   : > { %3790 = vrot.lane.b32.xlu1 %v3785_v27, %s5120_s5  ;;  %v4039_v27 = vld [vmem:[#allocation14 + $0x30] sm:$0xff] }
 0xa77   : > { %v4789_v36 = vpop.eup %4788 }
 0xa78   : > { %v3787_v11 = vmul.f32 %v4789_v36, %v4781_v35  ;;  %v4139_v36 = vld [vmem:[#allocation15 + $0x60] sm:$0xff] }
 0xa7a   : > { %3792 = vrot.lane.b32.xlu1 %v3787_v11, %s5120_s5  ;;  %v4038_v11 = vld [vmem:[#allocation14 + $0x28] sm:$0xff] }
 0xa7e   : > { %3903 = vrot.lane.b32.xlu1 %v7623_v62, %s5118_s8  ;;  %v4138_v62 = vld [vmem:[#allocation15 + $0x58] sm:$0xff] }
 0xa9b   : > { %v3372_v15 = vpop.xlane.xlu1 %3371 }
 0xa9c   : > { %4790 = vrcp.f32 %v3372_v15  ;;  %v4036_v15 = vld [vmem:[#allocation14 + $0x18] sm:$0xff] }
 0xaa3   : > { %v3375_v24 = vpop.xlane.xlu0 %3374 }
 0xaa4   : > { %4792 = vrcp.f32 %v3375_v24  ;;  %v4037_v24 = vld [vmem:[#allocation14 + $0x20] sm:$0xff] }
 0xaa7   : > { %v3799_v48 = vpop.permute.xlu0 %3798 }
 0xaa8   : > { %4536 = vmatprep.subr.mxu1 %v3799_v48 }
 0xaa9   : > { %4537 = vmatpush3.msra.mxu1 %v3799_v48  ;;  %v4791_v6 = vpop.eup %4790  ;;  %v4137_v48 = vld [vmem:[#allocation15 + $0x50] sm:$0xff] }
 0xaaa   : > { %4538 = vmatprep.subr.mxu1 %v7620_v41  ;;  %v3377_v44 = vmul.f32 %v4791_v6, %v4783_v56  ;;  %v4046_v56 = vld [vmem:[#allocation14 + $0x68] sm:$0xff] }
 0xaab   : > { %4539 = vmatpush3.msra.mxu1 %v7620_v41  ;;  %v3902_v35 = vpop.permute.xlu0 %3901  ;;  %v4796_v41 = vld [vmem:[%s5441_s2] sm:$0xff]  ;;  %v4136_v6 = vld [vmem:[#allocation15 + $0x48] sm:$0xff] }
 0xaac   : > { %4540 = vmatprep.subr.mxu1 %v7621_v26  ;;  %v3915_v45 = vsel %vm542_vm0, %v4796_v41, %v3902_v35  ;;  %v4143_v41 = vrot.slane %v3899_v49, 2 }
 0xaad   : > { %4541 = vmatpush3.msra.mxu1 %v7621_v26  ;;  %v4042_v26 = vld [vmem:[#allocation14 + $0x48] sm:$0xff] }
 0xaae   : > { %4572 = vmatprep.subr.mxu1 %v5121_v9 }
 0xab1   : > { %v4793_v4 = vpop.eup %4792 }
 0xab2   : > { %v3379_v37 = vmul.f32 %v4793_v4, %v4785_v20  ;;  %v4044_v20 = vld [vmem:[#allocation14 + $0x58] sm:$0xff]  ;;  %v4034_v4 = vld [vmem:[#allocation14 + $0x8] sm:$0xff] }
 0xae7   : > { %v3791_v5 = vpop.permute.xlu1 %3790 }
 0xae8   : > { %v3796_v12 = vsel %vm1771_vm12, %v3377_v44, %v3791_v5  ;;  %v4035_v44 = vld [vmem:[#allocation14 + $0x10] sm:$0xff]  ;;  %v4135_v5 = vld [vmem:[#allocation15 + $0x40] sm:$0xff] }
 0xae9   : > { %4542 = vmatprep.mubr.msk.f32.mxu1 %vm542_vm0, %v3796_v12  ;;  %v4134_v12 = vld [vmem:[#allocation15 + $0x38] sm:$0xff] }
 0xaec   : > { %v3793_v10 = vpop.permute.xlu1 %3792 }
 0xaed   : > { %v3797_v60 = vsel %vm1771_vm12, %v3379_v37, %v3793_v10  ;;  %v4033_v37 = vld [vmem:[#allocation14] sm:$0xff]  ;;  %v4133_v10 = vld [vmem:[#allocation15 + $0x30] sm:$0xff] }
 0xaee   : > { %4543 = vmatmul.mubr.msk.f32.vlgmr.msra.gmra.mxu1 %vm542_vm0, %v3797_v60  ;;  %v4132_v60 = vld [vmem:[#allocation15 + $0x28] sm:$0xff] }
 0xaef   : > { %4573 = vmatpush3.msra.mxu1 %v4048_v28  ;;  %4604 = vmatprep.mubr.msk.f32.mxu1 %vm5122_vm8, %v5121_v9  ;;  %v4027_v28 = vrot.slane %v3899_v49, 5 }
 0xaf0   : > { %4574 = vmatprep.subr.mxu1 %v5121_v9  ;;  %v3904_v46 = vpop.permute.xlu1 %3903 }
 0xaf1   : > { %4575 = vmatpush3.msra.mxu1 %v4047_v32  ;;  %v3916_v59 = vsel %vm542_vm0, %v4797_v18, %v3904_v46 }
 0xaf2   : > { %4576 = vmatprep.subr.mxu1 %v5121_v9 }
 0xaf3   : > { %4577 = vmatpush3.msra.mxu1 %v4046_v56 }
 0xaf4   : > { %4578 = vmatprep.subr.mxu1 %v5121_v9 }
 0xaf5   : > { %4579 = vmatpush3.msra.mxu1 %v4045_v8 }
 0xaf6   : > { %4580 = vmatprep.subr.mxu1 %v5121_v9 }
 0xaf7   : > { %4581 = vmatpush3.msra.mxu1 %v4044_v20 }
 0xaf8   : > { %4582 = vmatprep.subr.mxu1 %v5121_v9 }
 0xaf9   : > { %4583 = vmatpush3.msra.mxu1 %v4043_v30 }
 0xafa   : > { %4584 = vmatprep.subr.mxu1 %v5121_v9 }
 0xafb   : > { %4585 = vmatpush3.msra.mxu1 %v4042_v26 }
 0xafc   : > { %4586 = vmatprep.subr.mxu1 %v5121_v9 }
 0xafd   : > { %4587 = vmatpush3.msra.mxu1 %v4041_v58 }
 0xafe   : > { %4588 = vmatprep.subr.mxu1 %v5121_v9 }
 0xaff   : > { %4589 = vmatpush3.msra.mxu1 %v4040_v29 }
 0xb00   : > { %4590 = vmatprep.subr.mxu1 %v5121_v9 }
 0xb01   : > { %4591 = vmatpush3.msra.mxu1 %v4039_v27 }
 0xb02   : > { %4592 = vmatprep.subr.mxu1 %v5121_v9 }
 0xb03   : > { %4593 = vmatpush3.msra.mxu1 %v4038_v11 }
 0xb04   : > { %4594 = vmatprep.subr.mxu1 %v5121_v9 }
 0xb05   : > { %4595 = vmatpush3.msra.mxu1 %v4037_v24 }
 0xb06   : > { %4596 = vmatprep.subr.mxu1 %v5121_v9 }
 0xb07   : > { %4597 = vmatpush3.msra.mxu1 %v4036_v15 }
 0xb08   : > { %4598 = vmatprep.subr.mxu1 %v5121_v9 }
 0xb09   : > { %4599 = vmatpush3.msra.mxu1 %v4035_v44 }
 0xb0a   : > { %4600 = vmatprep.subr.mxu1 %v5121_v9 }
 0xb0b   : > { %4601 = vmatpush3.msra.mxu1 %v4034_v4 }
 0xb0c   : > { %4602 = vmatprep.subr.mxu1 %v5121_v9 }
 0xb0d   : > { %4603 = vmatpush3.msra.mxu1 %v4033_v37 }
 0xbae   : > { %v4544_v51 = vpop.f32.mrf.mxu1 }
 0xbaf   : > { %v3886_v43 = vmul.f32 0.5, %v4544_v51 }
 0xbb0   : > { %v3876_v34 = vpop.f32.mrf.mxu1 }
 0xbb1   : > { %v3892_v14 = vadd.f32 %v3890_v47, %v3886_v43  ;;  %v3885_v40 = vmul.f32 0.5, %v3876_v34 }
 0xbb3   : > { %v3896_v57 = vmul.f32 0.01, %v3892_v14  ;;  %v3891_v38 = vadd.f32 %v3890_v47, %v3885_v40  ;;  %vm3894_vm3 = vcmp.gt.f32.partialorder %v3892_v14, 0.0  ;;  %v4129_v40 = vld [vmem:[#allocation15 + $0x10] sm:$0xff] }
 0xbb5   : > { %v3895_v31 = vmul.f32 0.01, %v3891_v38  ;;  %v3898_v17 = vsel %vm3894_vm3, %v3892_v14, %v3896_v57  ;;  %vm3893_vm5 = vcmp.gt.f32.partialorder %v3891_v38, 0.0  ;;  %v4128_v57 = vld [vmem:[#allocation15 + $0x8] sm:$0xff] }
 0xbb6   : > { %3911 = vrot.lane.b32.xlu1 %v3898_v17, %s5116_s16 }
 0xbb7   : > { %v3897_v16 = vsel %vm3893_vm5, %v3891_v38, %v3895_v31  ;;  %v4127_v38 = vld [vmem:[#allocation15] sm:$0xff]  ;;  %v4052_v31 = vrot.slane %v3899_v49, 1 }
 0xbb8   : > { %3909 = vrot.lane.b32.xlu0 %v3897_v16, %s5116_s16 }
 0xc28   : > { %v3912_v63 = vpop.permute.xlu1 %3911 }
 0xc29   : > { %v3919_v7 = vsel %vm3917_vm6, %v3916_v59, %v3912_v63 }
 0xc2a   : > { %v3910_v19 = vpop.permute.xlu0 %3909 }
 0xc2b   : > { %v3918_v13 = vsel %vm3917_vm6, %v3915_v45, %v3910_v19 }
 0xc2c   : > { %4569 = vmatprep.mubr.msk.f32.mxu0 %vm3932_vm7, %v3918_v13 }
 0xc2d   : > { %4570 = vmatmul.mubr.msk.f32.vlgmr.msra.gmra.mxu0 %vm3932_vm7, %v3919_v7 }
 0xc2e   : > { %4639 = vmatprep.mubr.msk.f32.mxu0 %vm5122_vm8, %v5121_v9  ;;  %4608 = vmatpush3.msra.mxu0 %v4142_v61 }
 0xc2f   : > { %4609 = vmatprep.subr.mxu0 %v5121_v9 }
 0xc30   : > { %4610 = vmatpush3.msra.mxu0 %v4141_v3 }
 0xc31   : > { %4611 = vmatprep.subr.mxu0 %v5121_v9 }
 0xc32   : > { %4612 = vmatpush3.msra.mxu0 %v4140_v25 }
 0xc33   : > { %4613 = vmatprep.subr.mxu0 %v5121_v9 }
 0xc34   : > { %4614 = vmatpush3.msra.mxu0 %v4139_v36 }
 0xc35   : > { %4615 = vmatprep.subr.mxu0 %v5121_v9 }
 0xc36   : > { %4616 = vmatpush3.msra.mxu0 %v4138_v62 }
 0xc37   : > { %4617 = vmatprep.subr.mxu0 %v5121_v9 }
 0xc38   : > { %4618 = vmatpush3.msra.mxu0 %v4137_v48 }
 0xc39   : > { %4619 = vmatprep.subr.mxu0 %v5121_v9 }
 0xc3a   : > { %4620 = vmatpush3.msra.mxu0 %v4136_v6 }
 0xc3b   : > { %4621 = vmatprep.subr.mxu0 %v5121_v9 }
 0xc3c   : > { %4622 = vmatpush3.msra.mxu0 %v4135_v5 }
 0xc3d   : > { %4623 = vmatprep.subr.mxu0 %v5121_v9 }
 0xc3e   : > { %4624 = vmatpush3.msra.mxu0 %v4134_v12 }
 0xc3f   : > { %4625 = vmatprep.subr.mxu0 %v5121_v9 }
 0xc40   : > { %4626 = vmatpush3.msra.mxu0 %v4133_v10 }
 0xc41   : > { %4627 = vmatprep.subr.mxu0 %v5121_v9 }
 0xc42   : > { %4628 = vmatpush3.msra.mxu0 %v4132_v60 }
 0xc43   : > { %4629 = vmatprep.subr.mxu0 %v5121_v9 }
 0xc44   : > { %4630 = vmatpush3.msra.mxu0 %v4131_v55 }
 0xc45   : > { %4631 = vmatprep.subr.mxu0 %v5121_v9 }
 0xc46   : > { %4632 = vmatpush3.msra.mxu0 %v4130_v0 }
 0xc47   : > { %4633 = vmatprep.subr.mxu0 %v5121_v9 }
 0xc48   : > { %4634 = vmatpush3.msra.mxu0 %v4129_v40 }
 0xc49   : > { %4635 = vmatprep.subr.mxu0 %v5121_v9 }
 0xc4a   : > { %4636 = vmatpush3.msra.mxu0 %v4128_v57 }
 0xc4b   : > { %4637 = vmatprep.subr.mxu0 %v5121_v9 }
 0xc4c   : > { %4638 = vmatpush3.msra.mxu0 %v4127_v38 }
 0xced   : > { %v4571_v33 = vpop.f32.mrf.mxu0 }
 0xcef   : > { %v4005_v54 = vpop.f32.mrf.mxu0 }
 0xcf0   : > { %v4014_v21 = vadd.f32 %v4571_v33, %v4005_v54 }
 0xcf2   : > { %v4015_v22 = vrot.slane %v4014_v21, 4 }
 0xcf4   : > { %v4016_v39 = vadd.f32 %v4015_v22, %v4014_v21 }
 0xcf6   : > { %v4017_v50 = vrot.slane %v4016_v39, 2 }
 0xcf8   : > { %v4018_v53 = vadd.f32 %v4017_v50, %v4016_v39 }
 0xcfa   : > { %v4019_v42 = vrot.slane %v4018_v53, 1 }
 0xcfc   : > { %v4020_v23 = vadd.f32 %v4019_v42, %v4018_v53 }
 0xcfe   : > { %v4022_v47 = vmul.f32 0.0625, %v4020_v23 }
 0xd00   : > { %v4025_v51 = vadd.f32 %v4024_v1, %v4022_v47 }
 0xd02   : > { %v4029_v32 = vadd.f32 %v4027_v28, %v4025_v51 }
 0xd04   : > { %vm4030_vm0 = vcmp.gt.f32.partialorder %v4029_v32, 0.0  ;;  %v4031_v43 = vmul.f32 0.01, %v4029_v32 }
 0xd06   : > { %v4032_v34 = vsel %vm4030_vm0, %v4029_v32, %v4031_v43 }
 0xd07   : > { %v4050_v14 = vrot.slane %v4032_v34, 3 }
 0xd09   : > { %4605 = vmatmul.mubr.f32.vlgmr.msra.gmra.mxu1 %v4050_v14 }
 0xdc9   : > { %v4120_v17 = vpop.f32.mrf.mxu1 }
 0xdca   : > { %v4121_v16 = vadd.f32 %v4120_v17, %v4052_v31 }
 0xdcb   : > { %v4606_v46 = vpop.f32.mrf.mxu1 }
 0xdcc   : > { %vm4124_vm9 = vcmp.gt.f32.partialorder %v4121_v16, 0.0  ;;  %v4125_v35 = vmul.f32 0.01, %v4121_v16 }
 0xdce   : > { %v4126_v63 = vsel %vm4124_vm9, %v4121_v16, %v4125_v35 }
 0xdcf   : > { %4640 = vmatmul.mubr.f32.vlgmr.msra.gmra.mxu0 %v4126_v63 }
 0xe8f   : > { %v4211_v45 = vpop.f32.mrf.mxu0 }
 0xe90   : > { %v4212_v19 = vadd.f32 %v4211_v45, %v4143_v41 }
 0xe91   : > { %v4641_v9 = vpop.f32.mrf.mxu0 }
 0xe92   : > { %v4218_v18 = vrot.slane %v4212_v19, %v5470_v2 }
 0xe94   : > { %4219 = vst [vmem:[%s519_s21] sm:$0xff] %v4218_v18 }
 0xe95 PF: > { %s7625_s27 = sld [smem:[#allocation24_spill]]  ;;  %p32_p6 = scmp.ge.s32.totalorder %s5270_s26, 6  }
 0xe96   : > { %s7626_s0 = smov %s5094_s18  ;;  %s7627_s18 = smov %s5098_s19 }
 0xe97   : > { %s7629_s20 = smov %s5270_s26  ;;  %34 = sbr.rel (!%p32_p6) target bundleno = 25 (0x19), region = 144 }
 0xe9b   : > { %s7628_s19 = smov %s7625_s27 }
 0xe9c   :  { %4239 = vsyncpa [#allocation5], 1 }
 0xe9d   :  { %4241 = vsyncpa [#allocation5 + $0x1], 1 }
 0xe9e   :  { %4242 = vsyncpa [#allocation7], 1 }
 0xe9f   :  { %4244 = vsyncpa [#allocation7 + $0x1], 1 }
 0xea0   :  { %4245 = vsyncpa [#allocation10], 1 }
 0xea1   :  { %4246 = vsyncpa [#allocation13], 1 }
 0xea2   :  { %4247 = vsyncpa [#allocation16], 1 }

</bundles_post_ra>
